<compile_context>
chip_gen: v5e
topology: v5e:2x2
jax: 0.10.0
libtpu: 0.0.40
codegen_flags: <defaults>
</compile_context>

<pallas_src>
import functools

import jax
import jax.numpy as jnp
from jax.experimental import pallas as pl
from jax.experimental.pallas import tpu as pltpu

_EPS = 1e-5              # nn.BatchNorm default eps
_SLOPE = 0.2             # nn.LeakyReLU(0.2)
_USE_BF16_MATMUL = True  # bf16 MXU operands, f32 accumulation + f32 epilogue


def _round_up(x, m):
    return (x + m - 1) // m * m


def _pad2(a, rows, cols):
    return jnp.pad(a, ((0, rows - a.shape[0]), (0, cols - a.shape[1])))


def _dot(x, w):
    if _USE_BF16_MATMUL:
        x = x.astype(jnp.bfloat16)
        w = w.astype(jnp.bfloat16)
    return jnp.dot(x, w, preferred_element_type=jnp.float32)


# ----------------------------------------------------------------------------
# Kernels
# ----------------------------------------------------------------------------
def _stats_kernel(x_ref, w_ref, b_ref, s_ref, q_ref, *, m_valid, tm):
    """Accumulate per-column sum / sum-of-squares of y = x @ w + b over all
    valid rows of the tiled M axis.  M grid axis is 'arbitrary'; the (1, N_pad)
    outputs use a constant index_map so they stay resident as accumulators."""
    m_idx = pl.program_id(0)

    @pl.when(m_idx == 0)
    def _():
        s_ref[...] = jnp.zeros_like(s_ref)
        q_ref[...] = jnp.zeros_like(q_ref)

    y = _dot(x_ref[...], w_ref[...]) + b_ref[...]
    row = jax.lax.broadcasted_iota(jnp.int32, (tm, 1), 0) + m_idx * tm
    y = y * (row < m_valid).astype(jnp.float32)        # mask padded rows
    s_ref[...] += jnp.sum(y, axis=0, keepdims=True)
    q_ref[...] += jnp.sum(y * y, axis=0, keepdims=True)


def _gemm_apply_kernel(*refs, has_affine, act, has_res):
    """Fused GEMM + bias + (folded BatchNorm scale/shift) + (LeakyReLU 0.2) +
    (residual add).  One lane-dense (tm, N_pad) output tile per grid step."""
    it = iter(refs)
    x_ref, w_ref, b_ref = next(it), next(it), next(it)
    sc_ref = sh_ref = r_ref = None
    if has_affine:
        sc_ref, sh_ref = next(it), next(it)
    if has_res:
        r_ref = next(it)
    o_ref = next(it)

    y = _dot(x_ref[...], w_ref[...]) + b_ref[...]
    if has_affine:
        y = y * sc_ref[...] + sh_ref[...]
    if act:
        y = jnp.where(y >= 0.0, y, _SLOPE * y)
    if has_res:
        y = y + r_ref[...]
    o_ref[...] = y


def _mlp_kernel(*refs, n_layers, b_valid, b_pad):
    """Whole MLP head fused in one call: [Linear+BN1d+LeakyReLU] x (n-1) then a
    final plain Linear.  The batch rows and all weights are fully VMEM
    resident, so BatchNorm1d batch statistics are exact; padded batch rows are
    masked out of the statistics."""
    h = refs[0][...]
    mask = (jax.lax.broadcasted_iota(jnp.int32, (b_pad, 1), 0)
            < b_valid).astype(jnp.float32)
    idx = 1
    for li in range(n_layers):
        last = li == n_layers - 1
        w = refs[idx][...]; idx += 1
        b = refs[idx][...]; idx += 1
        y = _dot(h, w) + b
        if not last:
            g = refs[idx][...]; idx += 1
            bt = refs[idx][...]; idx += 1
            mean = jnp.sum(y * mask, axis=0, keepdims=True) / b_valid
            d = y - mean
            var = jnp.sum(d * d * mask, axis=0, keepdims=True) / b_valid
            y = d * jax.lax.rsqrt(var + _EPS) * g + bt
            y = jnp.where(y >= 0.0, y, _SLOPE * y)
        h = y
    refs[idx][...] = h                                   # output ref


# ----------------------------------------------------------------------------
# Fused GEMM + BatchNorm + LeakyReLU + residual (tiled over M)
# ----------------------------------------------------------------------------
def gemm_bn_act(x, w, b, gamma=None, beta=None, *, bn, act, residual=None,
                tile_m=256):
    """y = x @ w + b, optional training-mode BatchNorm over rows (exact across
    M tiles), optional LeakyReLU(0.2), optional residual add.  x:(M,K) w:(K,N)."""
    M, K = x.shape
    N = w.shape[1]
    K_pad = _round_up(K, 128)
    N_pad = _round_up(N, 128)
    tm = min(_round_up(tile_m, 8), _round_up(M, 8))
    M_pad = _round_up(M, tm)
    n_tiles = M_pad // tm

    xp = _pad2(x, M_pad, K_pad)
    wp = _pad2(w, K_pad, N_pad)
    bp = _pad2(b.reshape(1, -1), 1, N_pad)

    x_spec = pl.BlockSpec((tm, K_pad), lambda m: (m, 0))
    w_spec = pl.BlockSpec((K_pad, N_pad), lambda m: (0, 0))   # VMEM-resident
    row_spec = pl.BlockSpec((1, N_pad), lambda m: (0, 0))
    out_spec = pl.BlockSpec((tm, N_pad), lambda m: (m, 0))

    if bn:
        s, q = pl.pallas_call(
            functools.partial(_stats_kernel, m_valid=M, tm=tm),
            out_shape=(jax.ShapeDtypeStruct((1, N_pad), jnp.float32),
                       jax.ShapeDtypeStruct((1, N_pad), jnp.float32)),
            grid=(n_tiles,),
            in_specs=[x_spec, w_spec, row_spec],
            out_specs=(row_spec, row_spec),
            compiler_params=pltpu.CompilerParams(
                dimension_semantics=("arbitrary",)),
        )(xp, wp, bp)
        mean = s / M
        var = jnp.maximum(q / M - mean * mean, 0.0)  # biased var (training BN)
        inv = jax.lax.rsqrt(var + _EPS)
        scale = _pad2(gamma.reshape(1, -1), 1, N_pad) * inv
        shift = _pad2(beta.reshape(1, -1), 1, N_pad) - mean * scale

    args = [xp, wp, bp]
    in_specs = [x_spec, w_spec, row_spec]
    if bn:
        args += [scale, shift]
        in_specs += [row_spec, row_spec]
    if residual is not None:
        args.append(_pad2(residual, M_pad, N_pad))
        in_specs.append(out_spec)

    out = pl.pallas_call(
        functools.partial(_gemm_apply_kernel, has_affine=bn, act=act,
                          has_res=residual is not None),
        out_shape=jax.ShapeDtypeStruct((M_pad, N_pad), jnp.float32),
        grid=(n_tiles,),
        in_specs=in_specs,
        out_specs=out_spec,
        compiler_params=pltpu.CompilerParams(
            dimension_semantics=("parallel",)),   # v7x: 2 TCs split row tiles
    )(*args)
    return out[:M, :N]


# ----------------------------------------------------------------------------
# Conv2dBlock / ResBlock in NHWC
# ----------------------------------------------------------------------------
def conv2d_block_nhwc(x, w, b, gamma, beta, stride, pad, *, bn, act,
                      residual=None, tile_m=256):
    """x:(B,H,W,Cin) NHWC ; w:(Cout,Cin,kh,kw) (PyTorch layout)."""
    B, H, W, Cin = x.shape
    Cout, _, kh, kw = w.shape
    xp = jnp.pad(x, ((0, 0), (pad, pad), (pad, pad), (0, 0)))
    Ho = (H + 2 * pad - kh) // stride + 1
    Wo = (W + 2 * pad - kw) // stride + 1
    # TODO(synk): move patch extraction into the kernel (kh*kw shifted-window
    # matmuls over an NHWC VMEM tile) to remove the kh*kw HBM amplification of
    # host-side im2col.
    taps = []
    for i in range(kh):
        for j in range(kw):
            taps.append(xp[:, i:i + (Ho - 1) * stride + 1:stride,
                           j:j + (Wo - 1) * stride + 1:stride, :])
    patches = jnp.concatenate(taps, axis=-1).reshape(B * Ho * Wo, kh * kw * Cin)
    wm = jnp.transpose(w, (2, 3, 1, 0)).reshape(kh * kw * Cin, Cout)
    res_rows = None
    if residual is not None:        # NHWC residual -> plain reshape, no transpose
        res_rows = residual.reshape(B * Ho * Wo, Cout)
    y = gemm_bn_act(patches, wm, b, gamma, beta, bn=bn, act=act,
                    residual=res_rows, tile_m=tile_m)
    return y.reshape(B, Ho, Wo, Cout)


def res_block(x, rp, tile_m):
    h = conv2d_block_nhwc(x, rp["w1"], rp["b1"], rp["g1"], rp["bt1"], 1, 1,
                          bn=True, act=True, tile_m=tile_m)
    return conv2d_block_nhwc(h, rp["w2"], rp["b2"], rp["g2"], rp["bt2"], 1, 1,
                             bn=True, act=False, residual=x, tile_m=tile_m)


# ----------------------------------------------------------------------------
# Fused MLP head
# ----------------------------------------------------------------------------
def mlp_forward(mlp_params, h):
    B, D0 = h.shape
    n_layers = len(mlp_params)
    B_pad = _round_up(B, 8)
    dims = [D0] + [p["w"].shape[1] for p in mlp_params]
    dpad = [_round_up(d, 128) for d in dims]

    args = [_pad2(h, B_pad, dpad[0])]
    for li, p in enumerate(mlp_params):
        args.append(_pad2(p["w"], dpad[li], dpad[li + 1]))
        args.append(_pad2(p["b"].reshape(1, -1), 1, dpad[li + 1]))
        if li != n_layers - 1:                    # final LinearBlock: norm/act none
            args.append(_pad2(p["g"].reshape(1, -1), 1, dpad[li + 1]))
            args.append(_pad2(p["bt"].reshape(1, -1), 1, dpad[li + 1]))

    vmem = pl.BlockSpec(memory_space=pltpu.MemorySpace.VMEM)
    out = pl.pallas_call(
        functools.partial(_mlp_kernel, n_layers=n_layers, b_valid=B, b_pad=B_pad),
        out_shape=jax.ShapeDtypeStruct((B_pad, dpad[-1]), jnp.float32),
        in_specs=[vmem] * len(args),
        out_specs=vmem,
    )(*args)
    return out[:B, :dims[-1]]


# ----------------------------------------------------------------------------
# CatEncoder forward
# ----------------------------------------------------------------------------
def cat_encoder_forward(params, x, *, tile_m=256):
    b = x.shape[0]
    h = jnp.transpose(x, (0, 2, 3, 1))                 # NCHW -> NHWC, once
    for p in params["downs"]:
        h = conv2d_block_nhwc(h, p["w"], p["b"], p["g"], p["bt"], 2, 1,
                              bn=True, act=True, tile_m=tile_m)
    for rp in params["res"]:
        h = res_block(h, rp, tile_m)
    # match PyTorch .view(b, -1) on NCHW: single transpose at the boundary
    h = jnp.transpose(h, (0, 3, 1, 2)).reshape(b, -1)
    return mlp_forward(params["mlp"], h)


# ----------------------------------------------------------------------------
# Parameter initialization (deterministic, synthetic)
# ----------------------------------------------------------------------------
def _init_conv(key, cin, cout, k):
    k1, k2, k3 = jax.random.split(key, 3)
    w = jax.random.normal(k1, (cout, cin, k, k), jnp.float32) / jnp.sqrt(cin * k * k)
    b = jax.random.normal(k2, (cout,), jnp.float32) * 0.01
    g = jax.random.uniform(k3, (cout,), jnp.float32, 0.5, 1.5)
    bt = jnp.zeros((cout,), jnp.float32)
    return {"w": w, "b": b, "g": g, "bt": bt}


def _init_linear(key, din, dout):
    k1, k2, k3 = jax.random.split(key, 3)
    w = jax.random.normal(k1, (din, dout), jnp.float32) / jnp.sqrt(din)
    b = jax.random.normal(k2, (dout,), jnp.float32) * 0.01
    g = jax.random.uniform(k3, (dout,), jnp.float32, 0.5, 1.5)
    bt = jnp.zeros((dout,), jnp.float32)
    return {"w": w, "b": b, "g": g, "bt": bt}


def init_cat_encoder(key, n_downsample, n_res, n_mlp, input_size, input_dim,
                     dim, mlp_dim, latent):
    out_dim = latent["continious"] * 2 + latent["categorical"]
    keys = iter(jax.random.split(key, 64))

    downs = [_init_conv(next(keys), input_dim, dim, 4)]
    for _ in range(n_downsample - 1):
        downs.append(_init_conv(next(keys), dim, 2 * dim, 4))
        dim *= 2

    res = []
    for _ in range(n_res):
        c1 = _init_conv(next(keys), dim, dim, 3)
        c2 = _init_conv(next(keys), dim, dim, 3)
        res.append({"w1": c1["w"], "b1": c1["b"], "g1": c1["g"], "bt1": c1["bt"],
                    "w2": c2["w"], "b2": c2["b"], "g2": c2["g"], "bt2": c2["bt"]})

    flat = dim * (input_size // 2 ** n_downsample) ** 2
    mlp = [_init_linear(next(keys), flat, mlp_dim)]
    for _ in range(n_mlp - 2):
        mlp.append(_init_linear(next(keys), mlp_dim, mlp_dim))
    mlp.append(_init_linear(next(keys), mlp_dim, out_dim))

    return {"downs": downs, "res": res, "mlp": mlp}


# ----------------------------------------------------------------------------
# Pure-JAX reference (mirrors the bf16 MXU operand rounding) for a self-check
# ----------------------------------------------------------------------------
def _lrelu(v):
    return jnp.where(v >= 0.0, v, _SLOPE * v)


def _ref_conv(x, w, b, stride, pad):
    if _USE_BF16_MATMUL:
        x = x.astype(jnp.bfloat16)
        w = w.astype(jnp.bfloat16)
    y = jax.lax.conv_general_dilated(
        x, w, window_strides=(stride, stride),
        padding=((pad, pad), (pad, pad)),
        dimension_numbers=("NCHW", "OIHW", "NCHW"),
        preferred_element_type=jnp.float32)
    return y + b.reshape(1, -1, 1, 1)


def _ref_bn(y, g, bt, axes, shape):
    m = jnp.mean(y, axis=axes, keepdims=True)
    v = jnp.mean((y - m) ** 2, axis=axes, keepdims=True)
    return (y - m) * jax.lax.rsqrt(v + _EPS) * g.reshape(shape) + bt.reshape(shape)


def cat_encoder_reference(params, x):
    h = x
    for p in params["downs"]:
        h = _lrelu(_ref_bn(_ref_conv(h, p["w"], p["b"], 2, 1),
                           p["g"], p["bt"], (0, 2, 3), (1, -1, 1, 1)))
    for rp in params["res"]:
        r = h
        h = _lrelu(_ref_bn(_ref_conv(h, rp["w1"], rp["b1"], 1, 1),
                           rp["g1"], rp["bt1"], (0, 2, 3), (1, -1, 1, 1)))
        h = _ref_bn(_ref_conv(h, rp["w2"], rp["b2"], 1, 1),
                    rp["g2"], rp["bt2"], (0, 2, 3), (1, -1, 1, 1)) + r
    h = h.reshape(x.shape[0], -1)
    for p in params["mlp"][:-1]:
        h = _lrelu(_ref_bn(_dot(h, p["w"]) + p["b"],
                           p["g"], p["bt"], (0,), (1, -1)))
    p = params["mlp"][-1]
    return _dot(h, p["w"]) + p["b"]


if __name__ == "__main__":
    key = jax.random.PRNGKey(0)
    k_param, k_x = jax.random.split(key)

    n_downsample, n_res, n_mlp = 2, 1, 3
    input_size, input_dim, dim, mlp_dim = 16, 3, 8, 32
    latent = {"continious": 4, "categorical": 6}

    params = init_cat_encoder(k_param, n_downsample, n_res, n_mlp,
                              input_size, input_dim, dim, mlp_dim, latent)
    x = jax.random.normal(k_x, (2, input_dim, input_size, input_size), jnp.float32)

    out = jax.jit(functools.partial(cat_encoder_forward, tile_m=256))(params, x)
    jax.block_until_ready(out)
    assert out.shape == (2, latent["continious"] * 2 + latent["categorical"])

    # Also exercise the multi-tile + partial-tile (masked) cross-tile BN path.
    out_tiled = jax.jit(functools.partial(cat_encoder_forward, tile_m=48))(params, x)
    jax.block_until_ready(out_tiled)

    ref = cat_encoder_reference(params, x)
    err = max(float(jnp.max(jnp.abs(out - ref))),
              float(jnp.max(jnp.abs(out_tiled - ref))))
    assert err < 3e-2, f"max abs err vs reference: {err}"
    print("KERNEL_OK")
</pallas_src>

<mosaic_0001>
module attributes {stable_mosaic.version = 11 : i64} {
  func.func @_stats_kernel(%arg0: i32, %arg1: memref<128x128xf32, #tpu.memory_space<vmem>>, %arg2: memref<128x128xf32, #tpu.memory_space<vmem>>, %arg3: memref<1x128xf32, #tpu.memory_space<vmem>>, %arg4: memref<1x128xf32, #tpu.memory_space<vmem>>, %arg5: memref<1x128xf32, #tpu.memory_space<vmem>>) attributes {dimension_semantics = [#tpu.dimension_semantics<arbitrary>], iteration_bounds = array<i64: 1>, scalar_prefetch = 0 : i64, scratch_operands = 0 : i64, tpu.core_type = #tpu.core_type<tc>, window_params = [{transform_indices = @transform_0, window_bounds = array<i64: 128, 128>}, {pipeline_mode = #tpu.pipeline_mode<synchronous>, transform_indices = @transform_1, window_bounds = array<i64: 128, 128>}, {pipeline_mode = #tpu.pipeline_mode<synchronous>, transform_indices = @transform_2, window_bounds = array<i64: 1, 128>}, {pipeline_mode = #tpu.pipeline_mode<synchronous>, transform_indices = @transform_3, window_bounds = array<i64: 1, 128>}, {pipeline_mode = #tpu.pipeline_mode<synchronous>, transform_indices = @transform_4, window_bounds = array<i64: 1, 128>}]} {
    %c0_i32 = arith.constant 0 : i32
    %0 = arith.cmpi eq, %arg0, %c0_i32 : i32
    %1 = arith.extui %0 : i1 to i32
    %c0_i32_0 = arith.constant 0 : i32
    %2 = arith.cmpi ne, %1, %c0_i32_0 : i32
    scf.if %2 {
      %cst_17 = arith.constant 0.000000e+00 : f32
      %32 = vector.broadcast %cst_17 : f32 to vector<1x128xf32>
      %c0_18 = arith.constant 0 : index
      %c0_19 = arith.constant 0 : index
      %33 = vector.load %arg4[%c0_18, %c0_19] : memref<1x128xf32, #tpu.memory_space<vmem>>, vector<1x128xf32>
      tpu.vector_store %arg4[%c0_18, %c0_19], %32 {strides = array<i32>} : memref<1x128xf32, #tpu.memory_space<vmem>>, vector<1x128xf32>,
      %cst_20 = arith.constant 0.000000e+00 : f32
      %34 = vector.broadcast %cst_20 : f32 to vector<1x128xf32>
      %c0_21 = arith.constant 0 : index
      %c0_22 = arith.constant 0 : index
      %35 = vector.load %arg5[%c0_21, %c0_22] : memref<1x128xf32, #tpu.memory_space<vmem>>, vector<1x128xf32>
      tpu.vector_store %arg5[%c0_21, %c0_22], %34 {strides = array<i32>} : memref<1x128xf32, #tpu.memory_space<vmem>>, vector<1x128xf32>,
    } else {
    }
    %c0 = arith.constant 0 : index
    %c0_1 = arith.constant 0 : index
    %3 = vector.load %arg1[%c0, %c0_1] : memref<128x128xf32, #tpu.memory_space<vmem>>, vector<128x128xf32>
    %c0_2 = arith.constant 0 : index
    %c0_3 = arith.constant 0 : index
    %4 = vector.load %arg2[%c0_2, %c0_3] : memref<128x128xf32, #tpu.memory_space<vmem>>, vector<128x128xf32>
    %5 = arith.truncf %3 : vector<128x128xf32> to vector<128x128xbf16>
    %6 = arith.truncf %4 : vector<128x128xf32> to vector<128x128xbf16>
    %cst = arith.constant dense<0.000000e+00> : vector<128x128xf32>
    %7 = tpu.matmul %5, %6, %cst {dimension_numbers = #tpu.dot_dimension_numbers<[1], [0], [0], [1], [0, 0, 1, 1], [], []>} : vector<128x128xbf16>, vector<128x128xbf16>, vector<128x128xf32> -> vector<128x128xf32>
    %c0_4 = arith.constant 0 : index
    %c0_5 = arith.constant 0 : index
    %8 = vector.load %arg3[%c0_4, %c0_5] : memref<1x128xf32, #tpu.memory_space<vmem>>, vector<1x128xf32>
    %9 = vector.broadcast %8 : vector<1x128xf32> to vector<128x128xf32>
    %10 = arith.addf %7, %9 : vector<128x128xf32>
    %11 = tpu.iota {dimensions = array<i32: 0>} : vector<128x1xi32>
    %c128_i32 = arith.constant 128 : i32
    %12 = arith.muli %arg0, %c128_i32 : i32
    %13 = vector.broadcast %12 : i32 to vector<128x1xi32>
    %14 = arith.addi %11, %13 : vector<128x1xi32>
    %c128_i32_6 = arith.constant 128 : i32
    %15 = vector.broadcast %c128_i32_6 : i32 to vector<128x1xi32>
    %16 = arith.cmpi slt, %14, %15 : vector<128x1xi32>
    %17 = arith.extui %16 : vector<128x1xi1> to vector<128x1xi32>
    %18 = arith.sitofp %17 : vector<128x1xi32> to vector<128x1xf32>
    %19 = vector.broadcast %18 : vector<128x1xf32> to vector<128x128xf32>
    %20 = arith.mulf %10, %19 : vector<128x128xf32>
    %c0_7 = arith.constant 0 : index
    %c0_8 = arith.constant 0 : index
    %21 = vector.load %arg4[%c0_7, %c0_8] : memref<1x128xf32, #tpu.memory_space<vmem>>, vector<1x128xf32>
    %cst_9 = arith.constant dense<0.000000e+00> : vector<128xf32>
    %22 = vector.multi_reduction <add>, %20, %cst_9 [0] : vector<128x128xf32> to vector<128xf32>
    %23 = vector.shape_cast %22 : vector<128xf32> to vector<1x128xf32>
    %24 = arith.addf %21, %23 : vector<1x128xf32>
    %c0_10 = arith.constant 0 : index
    %c0_11 = arith.constant 0 : index
    %25 = vector.load %arg4[%c0_10, %c0_11] : memref<1x128xf32, #tpu.memory_space<vmem>>, vector<1x128xf32>
    tpu.vector_store %arg4[%c0_10, %c0_11], %24 {strides = array<i32>} : memref<1x128xf32, #tpu.memory_space<vmem>>, vector<1x128xf32>,
    %c0_12 = arith.constant 0 : index
    %c0_13 = arith.constant 0 : index
    %26 = vector.load %arg5[%c0_12, %c0_13] : memref<1x128xf32, #tpu.memory_space<vmem>>, vector<1x128xf32>
    %27 = arith.mulf %20, %20 : vector<128x128xf32>
    %cst_14 = arith.constant dense<0.000000e+00> : vector<128xf32>
    %28 = vector.multi_reduction <add>, %27, %cst_14 [0] : vector<128x128xf32> to vector<128xf32>
    %29 = vector.shape_cast %28 : vector<128xf32> to vector<1x128xf32>
    %30 = arith.addf %26, %29 : vector<1x128xf32>
    %c0_15 = arith.constant 0 : index
    %c0_16 = arith.constant 0 : index
    %31 = vector.load %arg5[%c0_15, %c0_16] : memref<1x128xf32, #tpu.memory_space<vmem>>, vector<1x128xf32>
    tpu.vector_store %arg5[%c0_15, %c0_16], %30 {strides = array<i32>} : memref<1x128xf32, #tpu.memory_space<vmem>>, vector<1x128xf32>,
    return
  }
  func.func @transform_0(%arg0: i32) -> (i32, i32) {
    %c0_i32 = arith.constant 0 : i32
    %c0_i32_0 = arith.constant 0 : i32
    return %arg0, %c0_i32 : i32, i32
  }
  func.func @transform_1(%arg0: i32) -> (i32, i32) {
    %c0_i32 = arith.constant 0 : i32
    %c0_i32_0 = arith.constant 0 : i32
    %c0_i32_1 = arith.constant 0 : i32
    return %c0_i32, %c0_i32_0 : i32, i32
  }
  func.func @transform_2(%arg0: i32) -> (i32, i32) {
    %c0_i32 = arith.constant 0 : i32
    %c0_i32_0 = arith.constant 0 : i32
    %c0_i32_1 = arith.constant 0 : i32
    return %c0_i32, %c0_i32_0 : i32, i32
  }
  func.func @transform_3(%arg0: i32) -> (i32, i32) {
    %c0_i32 = arith.constant 0 : i32
    %c0_i32_0 = arith.constant 0 : i32
    %c0_i32_1 = arith.constant 0 : i32
    return %c0_i32, %c0_i32_0 : i32, i32
  }
  func.func @transform_4(%arg0: i32) -> (i32, i32) {
    %c0_i32 = arith.constant 0 : i32
    %c0_i32_0 = arith.constant 0 : i32
    %c0_i32_1 = arith.constant 0 : i32
    return %c0_i32, %c0_i32_0 : i32, i32
  }
}

module attributes {stable_mosaic.version = 11 : i64} {
  func.func @_gemm_apply_kernel(%arg0: i32, %arg1: memref<128x128xf32, #tpu.memory_space<vmem>>, %arg2: memref<128x128xf32, #tpu.memory_space<vmem>>, %arg3: memref<1x128xf32, #tpu.memory_space<vmem>>, %arg4: memref<1x128xf32, #tpu.memory_space<vmem>>, %arg5: memref<1x128xf32, #tpu.memory_space<vmem>>, %arg6: memref<128x128xf32, #tpu.memory_space<vmem>>) attributes {dimension_semantics = [#tpu.dimension_semantics<parallel>], iteration_bounds = array<i64: 1>, scalar_prefetch = 0 : i64, scratch_operands = 0 : i64, tpu.core_type = #tpu.core_type<tc>, window_params = [{transform_indices = @transform_0, window_bounds = array<i64: 128, 128>}, {pipeline_mode = #tpu.pipeline_mode<synchronous>, transform_indices = @transform_1, window_bounds = array<i64: 128, 128>}, {pipeline_mode = #tpu.pipeline_mode<synchronous>, transform_indices = @transform_2, window_bounds = array<i64: 1, 128>}, {pipeline_mode = #tpu.pipeline_mode<synchronous>, transform_indices = @transform_3, window_bounds = array<i64: 1, 128>}, {pipeline_mode = #tpu.pipeline_mode<synchronous>, transform_indices = @transform_4, window_bounds = array<i64: 1, 128>}, {transform_indices = @transform_5, window_bounds = array<i64: 128, 128>}]} {
    %c0 = arith.constant 0 : index
    %c0_0 = arith.constant 0 : index
    %0 = vector.load %arg1[%c0, %c0_0] : memref<128x128xf32, #tpu.memory_space<vmem>>, vector<128x128xf32>
    %c0_1 = arith.constant 0 : index
    %c0_2 = arith.constant 0 : index
    %1 = vector.load %arg2[%c0_1, %c0_2] : memref<128x128xf32, #tpu.memory_space<vmem>>, vector<128x128xf32>
    %2 = arith.truncf %0 : vector<128x128xf32> to vector<128x128xbf16>
    %3 = arith.truncf %1 : vector<128x128xf32> to vector<128x128xbf16>
    %cst = arith.constant dense<0.000000e+00> : vector<128x128xf32>
    %4 = tpu.matmul %2, %3, %cst {dimension_numbers = #tpu.dot_dimension_numbers<[1], [0], [0], [1], [0, 0, 1, 1], [], []>} : vector<128x128xbf16>, vector<128x128xbf16>, vector<128x128xf32> -> vector<128x128xf32>
    %c0_3 = arith.constant 0 : index
    %c0_4 = arith.constant 0 : index
    %5 = vector.load %arg3[%c0_3, %c0_4] : memref<1x128xf32, #tpu.memory_space<vmem>>, vector<1x128xf32>
    %6 = vector.broadcast %5 : vector<1x128xf32> to vector<128x128xf32>
    %7 = arith.addf %4, %6 : vector<128x128xf32>
    %c0_5 = arith.constant 0 : index
    %c0_6 = arith.constant 0 : index
    %8 = vector.load %arg4[%c0_5, %c0_6] : memref<1x128xf32, #tpu.memory_space<vmem>>, vector<1x128xf32>
    %9 = vector.broadcast %8 : vector<1x128xf32> to vector<128x128xf32>
    %10 = arith.mulf %7, %9 : vector<128x128xf32>
    %c0_7 = arith.constant 0 : index
    %c0_8 = arith.constant 0 : index
    %11 = vector.load %arg5[%c0_7, %c0_8] : memref<1x128xf32, #tpu.memory_space<vmem>>, vector<1x128xf32>
    %12 = vector.broadcast %11 : vector<1x128xf32> to vector<128x128xf32>
    %13 = arith.addf %10, %12 : vector<128x128xf32>
    %cst_9 = arith.constant 0.000000e+00 : f32
    %14 = vector.broadcast %cst_9 : f32 to vector<128x128xf32>
    %15 = arith.cmpf oge, %13, %14 : vector<128x128xf32>
    %cst_10 = arith.constant 2.000000e-01 : f32
    %16 = vector.broadcast %cst_10 : f32 to vector<128x128xf32>
    %17 = arith.mulf %16, %13 : vector<128x128xf32>
    %18 = arith.select %15, %13, %17 : vector<128x128xi1>, vector<128x128xf32>
    %c0_11 = arith.constant 0 : index
    %c0_12 = arith.constant 0 : index
    %19 = vector.load %arg6[%c0_11, %c0_12] : memref<128x128xf32, #tpu.memory_space<vmem>>, vector<128x128xf32>
    tpu.vector_store %arg6[%c0_11, %c0_12], %18 {strides = array<i32>} : memref<128x128xf32, #tpu.memory_space<vmem>>, vector<128x128xf32>,
    return
  }
  func.func @transform_0(%arg0: i32) -> (i32, i32) {
    %c0_i32 = arith.constant 0 : i32
    %c0_i32_0 = arith.constant 0 : i32
    return %arg0, %c0_i32 : i32, i32
  }
  func.func @transform_1(%arg0: i32) -> (i32, i32) {
    %c0_i32 = arith.constant 0 : i32
    %c0_i32_0 = arith.constant 0 : i32
    %c0_i32_1 = arith.constant 0 : i32
    return %c0_i32, %c0_i32_0 : i32, i32
  }
  func.func @transform_2(%arg0: i32) -> (i32, i32) {
    %c0_i32 = arith.constant 0 : i32
    %c0_i32_0 = arith.constant 0 : i32
    %c0_i32_1 = arith.constant 0 : i32
    return %c0_i32, %c0_i32_0 : i32, i32
  }
  func.func @transform_3(%arg0: i32) -> (i32, i32) {
    %c0_i32 = arith.constant 0 : i32
    %c0_i32_0 = arith.constant 0 : i32
    %c0_i32_1 = arith.constant 0 : i32
    return %c0_i32, %c0_i32_0 : i32, i32
  }
  func.func @transform_4(%arg0: i32) -> (i32, i32) {
    %c0_i32 = arith.constant 0 : i32
    %c0_i32_0 = arith.constant 0 : i32
    %c0_i32_1 = arith.constant 0 : i32
    return %c0_i32, %c0_i32_0 : i32, i32
  }
  func.func @transform_5(%arg0: i32) -> (i32, i32) {
    %c0_i32 = arith.constant 0 : i32
    %c0_i32_0 = arith.constant 0 : i32
    return %arg0, %c0_i32 : i32, i32
  }
}

module attributes {stable_mosaic.version = 11 : i64} {
  func.func @_gemm_apply_kernel(%arg0: i32, %arg1: memref<32x128xf32, #tpu.memory_space<vmem>>, %arg2: memref<128x128xf32, #tpu.memory_space<vmem>>, %arg3: memref<1x128xf32, #tpu.memory_space<vmem>>, %arg4: memref<1x128xf32, #tpu.memory_space<vmem>>, %arg5: memref<1x128xf32, #tpu.memory_space<vmem>>, %arg6: memref<32x128xf32, #tpu.memory_space<vmem>>) attributes {dimension_semantics = [#tpu.dimension_semantics<parallel>], iteration_bounds = array<i64: 1>, scalar_prefetch = 0 : i64, scratch_operands = 0 : i64, tpu.core_type = #tpu.core_type<tc>, window_params = [{transform_indices = @transform_0, window_bounds = array<i64: 32, 128>}, {pipeline_mode = #tpu.pipeline_mode<synchronous>, transform_indices = @transform_1, window_bounds = array<i64: 128, 128>}, {pipeline_mode = #tpu.pipeline_mode<synchronous>, transform_indices = @transform_2, window_bounds = array<i64: 1, 128>}, {pipeline_mode = #tpu.pipeline_mode<synchronous>, transform_indices = @transform_3, window_bounds = array<i64: 1, 128>}, {pipeline_mode = #tpu.pipeline_mode<synchronous>, transform_indices = @transform_4, window_bounds = array<i64: 1, 128>}, {transform_indices = @transform_5, window_bounds = array<i64: 32, 128>}]} {
    %c0 = arith.constant 0 : index
    %c0_0 = arith.constant 0 : index
    %0 = vector.load %arg1[%c0, %c0_0] : memref<32x128xf32, #tpu.memory_space<vmem>>, vector<32x128xf32>
    %c0_1 = arith.constant 0 : index
    %c0_2 = arith.constant 0 : index
    %1 = vector.load %arg2[%c0_1, %c0_2] : memref<128x128xf32, #tpu.memory_space<vmem>>, vector<128x128xf32>
    %2 = arith.truncf %0 : vector<32x128xf32> to vector<32x128xbf16>
    %3 = arith.truncf %1 : vector<128x128xf32> to vector<128x128xbf16>
    %cst = arith.constant dense<0.000000e+00> : vector<32x128xf32>
    %4 = tpu.matmul %2, %3, %cst {dimension_numbers = #tpu.dot_dimension_numbers<[1], [0], [0], [1], [0, 0, 1, 1], [], []>} : vector<32x128xbf16>, vector<128x128xbf16>, vector<32x128xf32> -> vector<32x128xf32>
    %c0_3 = arith.constant 0 : index
    %c0_4 = arith.constant 0 : index
    %5 = vector.load %arg3[%c0_3, %c0_4] : memref<1x128xf32, #tpu.memory_space<vmem>>, vector<1x128xf32>
    %6 = vector.broadcast %5 : vector<1x128xf32> to vector<32x128xf32>
    %7 = arith.addf %4, %6 : vector<32x128xf32>
    %c0_5 = arith.constant 0 : index
    %c0_6 = arith.constant 0 : index
    %8 = vector.load %arg4[%c0_5, %c0_6] : memref<1x128xf32, #tpu.memory_space<vmem>>, vector<1x128xf32>
    %9 = vector.broadcast %8 : vector<1x128xf32> to vector<32x128xf32>
    %10 = arith.mulf %7, %9 : vector<32x128xf32>
    %c0_7 = arith.constant 0 : index
    %c0_8 = arith.constant 0 : index
    %11 = vector.load %arg5[%c0_7, %c0_8] : memref<1x128xf32, #tpu.memory_space<vmem>>, vector<1x128xf32>
    %12 = vector.broadcast %11 : vector<1x128xf32> to vector<32x128xf32>
    %13 = arith.addf %10, %12 : vector<32x128xf32>
    %cst_9 = arith.constant 0.000000e+00 : f32
    %14 = vector.broadcast %cst_9 : f32 to vector<32x128xf32>
    %15 = arith.cmpf oge, %13, %14 : vector<32x128xf32>
    %cst_10 = arith.constant 2.000000e-01 : f32
    %16 = vector.broadcast %cst_10 : f32 to vector<32x128xf32>
    %17 = arith.mulf %16, %13 : vector<32x128xf32>
    %18 = arith.select %15, %13, %17 : vector<32x128xi1>, vector<32x128xf32>
    %c0_11 = arith.constant 0 : index
    %c0_12 = arith.constant 0 : index
    %19 = vector.load %arg6[%c0_11, %c0_12] : memref<32x128xf32, #tpu.memory_space<vmem>>, vector<32x128xf32>
    tpu.vector_store %arg6[%c0_11, %c0_12], %18 {strides = array<i32>} : memref<32x128xf32, #tpu.memory_space<vmem>>, vector<32x128xf32>,
    return
  }
  func.func @transform_0(%arg0: i32) -> (i32, i32) {
    %c0_i32 = arith.constant 0 : i32
    %c0_i32_0 = arith.constant 0 : i32
    return %arg0, %c0_i32 : i32, i32
  }
  func.func @transform_1(%arg0: i32) -> (i32, i32) {
    %c0_i32 = arith.constant 0 : i32
    %c0_i32_0 = arith.constant 0 : i32
    %c0_i32_1 = arith.constant 0 : i32
    return %c0_i32, %c0_i32_0 : i32, i32
  }
  func.func @transform_2(%arg0: i32) -> (i32, i32) {
    %c0_i32 = arith.constant 0 : i32
    %c0_i32_0 = arith.constant 0 : i32
    %c0_i32_1 = arith.constant 0 : i32
    return %c0_i32, %c0_i32_0 : i32, i32
  }
  func.func @transform_3(%arg0: i32) -> (i32, i32) {
    %c0_i32 = arith.constant 0 : i32
    %c0_i32_0 = arith.constant 0 : i32
    %c0_i32_1 = arith.constant 0 : i32
    return %c0_i32, %c0_i32_0 : i32, i32
  }
  func.func @transform_4(%arg0: i32) -> (i32, i32) {
    %c0_i32 = arith.constant 0 : i32
    %c0_i32_0 = arith.constant 0 : i32
    %c0_i32_1 = arith.constant 0 : i32
    return %c0_i32, %c0_i32_0 : i32, i32
  }
  func.func @transform_5(%arg0: i32) -> (i32, i32) {
    %c0_i32 = arith.constant 0 : i32
    %c0_i32_0 = arith.constant 0 : i32
    return %arg0, %c0_i32 : i32, i32
  }
}

module attributes {stable_mosaic.version = 11 : i64} {
  func.func @_stats_kernel(%arg0: i32, %arg1: memref<32x128xf32, #tpu.memory_space<vmem>>, %arg2: memref<128x128xf32, #tpu.memory_space<vmem>>, %arg3: memref<1x128xf32, #tpu.memory_space<vmem>>, %arg4: memref<1x128xf32, #tpu.memory_space<vmem>>, %arg5: memref<1x128xf32, #tpu.memory_space<vmem>>) attributes {dimension_semantics = [#tpu.dimension_semantics<arbitrary>], iteration_bounds = array<i64: 1>, scalar_prefetch = 0 : i64, scratch_operands = 0 : i64, tpu.core_type = #tpu.core_type<tc>, window_params = [{transform_indices = @transform_0, window_bounds = array<i64: 32, 128>}, {pipeline_mode = #tpu.pipeline_mode<synchronous>, transform_indices = @transform_1, window_bounds = array<i64: 128, 128>}, {pipeline_mode = #tpu.pipeline_mode<synchronous>, transform_indices = @transform_2, window_bounds = array<i64: 1, 128>}, {pipeline_mode = #tpu.pipeline_mode<synchronous>, transform_indices = @transform_3, window_bounds = array<i64: 1, 128>}, {pipeline_mode = #tpu.pipeline_mode<synchronous>, transform_indices = @transform_4, window_bounds = array<i64: 1, 128>}]} {
    %c0_i32 = arith.constant 0 : i32
    %0 = arith.cmpi eq, %arg0, %c0_i32 : i32
    %1 = arith.extui %0 : i1 to i32
    %c0_i32_0 = arith.constant 0 : i32
    %2 = arith.cmpi ne, %1, %c0_i32_0 : i32
    scf.if %2 {
      %cst_17 = arith.constant 0.000000e+00 : f32
      %32 = vector.broadcast %cst_17 : f32 to vector<1x128xf32>
      %c0_18 = arith.constant 0 : index
      %c0_19 = arith.constant 0 : index
      %33 = vector.load %arg4[%c0_18, %c0_19] : memref<1x128xf32, #tpu.memory_space<vmem>>, vector<1x128xf32>
      tpu.vector_store %arg4[%c0_18, %c0_19], %32 {strides = array<i32>} : memref<1x128xf32, #tpu.memory_space<vmem>>, vector<1x128xf32>,
      %cst_20 = arith.constant 0.000000e+00 : f32
      %34 = vector.broadcast %cst_20 : f32 to vector<1x128xf32>
      %c0_21 = arith.constant 0 : index
      %c0_22 = arith.constant 0 : index
      %35 = vector.load %arg5[%c0_21, %c0_22] : memref<1x128xf32, #tpu.memory_space<vmem>>, vector<1x128xf32>
      tpu.vector_store %arg5[%c0_21, %c0_22], %34 {strides = array<i32>} : memref<1x128xf32, #tpu.memory_space<vmem>>, vector<1x128xf32>,
    } else {
    }
    %c0 = arith.constant 0 : index
    %c0_1 = arith.constant 0 : index
    %3 = vector.load %arg1[%c0, %c0_1] : memref<32x128xf32, #tpu.memory_space<vmem>>, vector<32x128xf32>
    %c0_2 = arith.constant 0 : index
    %c0_3 = arith.constant 0 : index
    %4 = vector.load %arg2[%c0_2, %c0_3] : memref<128x128xf32, #tpu.memory_space<vmem>>, vector<128x128xf32>
    %5 = arith.truncf %3 : vector<32x128xf32> to vector<32x128xbf16>
    %6 = arith.truncf %4 : vector<128x128xf32> to vector<128x128xbf16>
    %cst = arith.constant dense<0.000000e+00> : vector<32x128xf32>
    %7 = tpu.matmul %5, %6, %cst {dimension_numbers = #tpu.dot_dimension_numbers<[1], [0], [0], [1], [0, 0, 1, 1], [], []>} : vector<32x128xbf16>, vector<128x128xbf16>, vector<32x128xf32> -> vector<32x128xf32>
    %c0_4 = arith.constant 0 : index
    %c0_5 = arith.constant 0 : index
    %8 = vector.load %arg3[%c0_4, %c0_5] : memref<1x128xf32, #tpu.memory_space<vmem>>, vector<1x128xf32>
    %9 = vector.broadcast %8 : vector<1x128xf32> to vector<32x128xf32>
    %10 = arith.addf %7, %9 : vector<32x128xf32>
    %11 = tpu.iota {dimensions = array<i32: 0>} : vector<32x1xi32>
    %c32_i32 = arith.constant 32 : i32
    %12 = arith.muli %arg0, %c32_i32 : i32
    %13 = vector.broadcast %12 : i32 to vector<32x1xi32>
    %14 = arith.addi %11, %13 : vector<32x1xi32>
    %c32_i32_6 = arith.constant 32 : i32
    %15 = vector.broadcast %c32_i32_6 : i32 to vector<32x1xi32>
    %16 = arith.cmpi slt, %14, %15 : vector<32x1xi32>
    %17 = arith.extui %16 : vector<32x1xi1> to vector<32x1xi32>
    %18 = arith.sitofp %17 : vector<32x1xi32> to vector<32x1xf32>
    %19 = vector.broadcast %18 : vector<32x1xf32> to vector<32x128xf32>
    %20 = arith.mulf %10, %19 : vector<32x128xf32>
    %c0_7 = arith.constant 0 : index
    %c0_8 = arith.constant 0 : index
    %21 = vector.load %arg4[%c0_7, %c0_8] : memref<1x128xf32, #tpu.memory_space<vmem>>, vector<1x128xf32>
    %cst_9 = arith.constant dense<0.000000e+00> : vector<128xf32>
    %22 = vector.multi_reduction <add>, %20, %cst_9 [0] : vector<32x128xf32> to vector<128xf32>
    %23 = vector.shape_cast %22 : vector<128xf32> to vector<1x128xf32>
    %24 = arith.addf %21, %23 : vector<1x128xf32>
    %c0_10 = arith.constant 0 : index
    %c0_11 = arith.constant 0 : index
    %25 = vector.load %arg4[%c0_10, %c0_11] : memref<1x128xf32, #tpu.memory_space<vmem>>, vector<1x128xf32>
    tpu.vector_store %arg4[%c0_10, %c0_11], %24 {strides = array<i32>} : memref<1x128xf32, #tpu.memory_space<vmem>>, vector<1x128xf32>,
    %c0_12 = arith.constant 0 : index
    %c0_13 = arith.constant 0 : index
    %26 = vector.load %arg5[%c0_12, %c0_13] : memref<1x128xf32, #tpu.memory_space<vmem>>, vector<1x128xf32>
    %27 = arith.mulf %20, %20 : vector<32x128xf32>
    %cst_14 = arith.constant dense<0.000000e+00> : vector<128xf32>
    %28 = vector.multi_reduction <add>, %27, %cst_14 [0] : vector<32x128xf32> to vector<128xf32>
    %29 = vector.shape_cast %28 : vector<128xf32> to vector<1x128xf32>
    %30 = arith.addf %26, %29 : vector<1x128xf32>
    %c0_15 = arith.constant 0 : index
    %c0_16 = arith.constant 0 : index
    %31 = vector.load %arg5[%c0_15, %c0_16] : memref<1x128xf32, #tpu.memory_space<vmem>>, vector<1x128xf32>
    tpu.vector_store %arg5[%c0_15, %c0_16], %30 {strides = array<i32>} : memref<1x128xf32, #tpu.memory_space<vmem>>, vector<1x128xf32>,
    return
  }
  func.func @transform_0(%arg0: i32) -> (i32, i32) {
    %c0_i32 = arith.constant 0 : i32
    %c0_i32_0 = arith.constant 0 : i32
    return %arg0, %c0_i32 : i32, i32
  }
  func.func @transform_1(%arg0: i32) -> (i32, i32) {
    %c0_i32 = arith.constant 0 : i32
    %c0_i32_0 = arith.constant 0 : i32
    %c0_i32_1 = arith.constant 0 : i32
    return %c0_i32, %c0_i32_0 : i32, i32
  }
  func.func @transform_2(%arg0: i32) -> (i32, i32) {
    %c0_i32 = arith.constant 0 : i32
    %c0_i32_0 = arith.constant 0 : i32
    %c0_i32_1 = arith.constant 0 : i32
    return %c0_i32, %c0_i32_0 : i32, i32
  }
  func.func @transform_3(%arg0: i32) -> (i32, i32) {
    %c0_i32 = arith.constant 0 : i32
    %c0_i32_0 = arith.constant 0 : i32
    %c0_i32_1 = arith.constant 0 : i32
    return %c0_i32, %c0_i32_0 : i32, i32
  }
  func.func @transform_4(%arg0: i32) -> (i32, i32) {
    %c0_i32 = arith.constant 0 : i32
    %c0_i32_0 = arith.constant 0 : i32
    %c0_i32_1 = arith.constant 0 : i32
    return %c0_i32, %c0_i32_0 : i32, i32
  }
}

module attributes {stable_mosaic.version = 11 : i64} {
  func.func @_stats_kernel(%arg0: i32, %arg1: memref<32x256xf32, #tpu.memory_space<vmem>>, %arg2: memref<256x128xf32, #tpu.memory_space<vmem>>, %arg3: memref<1x128xf32, #tpu.memory_space<vmem>>, %arg4: memref<1x128xf32, #tpu.memory_space<vmem>>, %arg5: memref<1x128xf32, #tpu.memory_space<vmem>>) attributes {dimension_semantics = [#tpu.dimension_semantics<arbitrary>], iteration_bounds = array<i64: 1>, scalar_prefetch = 0 : i64, scratch_operands = 0 : i64, tpu.core_type = #tpu.core_type<tc>, window_params = [{transform_indices = @transform_0, window_bounds = array<i64: 32, 256>}, {pipeline_mode = #tpu.pipeline_mode<synchronous>, transform_indices = @transform_1, window_bounds = array<i64: 256, 128>}, {pipeline_mode = #tpu.pipeline_mode<synchronous>, transform_indices = @transform_2, window_bounds = array<i64: 1, 128>}, {pipeline_mode = #tpu.pipeline_mode<synchronous>, transform_indices = @transform_3, window_bounds = array<i64: 1, 128>}, {pipeline_mode = #tpu.pipeline_mode<synchronous>, transform_indices = @transform_4, window_bounds = array<i64: 1, 128>}]} {
    %c0_i32 = arith.constant 0 : i32
    %0 = arith.cmpi eq, %arg0, %c0_i32 : i32
    %1 = arith.extui %0 : i1 to i32
    %c0_i32_0 = arith.constant 0 : i32
    %2 = arith.cmpi ne, %1, %c0_i32_0 : i32
    scf.if %2 {
      %cst_17 = arith.constant 0.000000e+00 : f32
      %32 = vector.broadcast %cst_17 : f32 to vector<1x128xf32>
      %c0_18 = arith.constant 0 : index
      %c0_19 = arith.constant 0 : index
      %33 = vector.load %arg4[%c0_18, %c0_19] : memref<1x128xf32, #tpu.memory_space<vmem>>, vector<1x128xf32>
      tpu.vector_store %arg4[%c0_18, %c0_19], %32 {strides = array<i32>} : memref<1x128xf32, #tpu.memory_space<vmem>>, vector<1x128xf32>,
      %cst_20 = arith.constant 0.000000e+00 : f32
      %34 = vector.broadcast %cst_20 : f32 to vector<1x128xf32>
      %c0_21 = arith.constant 0 : index
      %c0_22 = arith.constant 0 : index
      %35 = vector.load %arg5[%c0_21, %c0_22] : memref<1x128xf32, #tpu.memory_space<vmem>>, vector<1x128xf32>
      tpu.vector_store %arg5[%c0_21, %c0_22], %34 {strides = array<i32>} : memref<1x128xf32, #tpu.memory_space<vmem>>, vector<1x128xf32>,
    } else {
    }
    %c0 = arith.constant 0 : index
    %c0_1 = arith.constant 0 : index
    %3 = vector.load %arg1[%c0, %c0_1] : memref<32x256xf32, #tpu.memory_space<vmem>>, vector<32x256xf32>
    %c0_2 = arith.constant 0 : index
    %c0_3 = arith.constant 0 : index
    %4 = vector.load %arg2[%c0_2, %c0_3] : memref<256x128xf32, #tpu.memory_space<vmem>>, vector<256x128xf32>
    %5 = arith.truncf %3 : vector<32x256xf32> to vector<32x256xbf16>
    %6 = arith.truncf %4 : vector<256x128xf32> to vector<256x128xbf16>
    %cst = arith.constant dense<0.000000e+00> : vector<32x128xf32>
    %7 = tpu.matmul %5, %6, %cst {dimension_numbers = #tpu.dot_dimension_numbers<[1], [0], [0], [1], [0, 0, 1, 1], [], []>} : vector<32x256xbf16>, vector<256x128xbf16>, vector<32x128xf32> -> vector<32x128xf32>
    %c0_4 = arith.constant 0 : index
    %c0_5 = arith.constant 0 : index
    %8 = vector.load %arg3[%c0_4, %c0_5] : memref<1x128xf32, #tpu.memory_space<vmem>>, vector<1x128xf32>
    %9 = vector.broadcast %8 : vector<1x128xf32> to vector<32x128xf32>
    %10 = arith.addf %7, %9 : vector<32x128xf32>
    %11 = tpu.iota {dimensions = array<i32: 0>} : vector<32x1xi32>
    %c32_i32 = arith.constant 32 : i32
    %12 = arith.muli %arg0, %c32_i32 : i32
    %13 = vector.broadcast %12 : i32 to vector<32x1xi32>
    %14 = arith.addi %11, %13 : vector<32x1xi32>
    %c32_i32_6 = arith.constant 32 : i32
    %15 = vector.broadcast %c32_i32_6 : i32 to vector<32x1xi32>
    %16 = arith.cmpi slt, %14, %15 : vector<32x1xi32>
    %17 = arith.extui %16 : vector<32x1xi1> to vector<32x1xi32>
    %18 = arith.sitofp %17 : vector<32x1xi32> to vector<32x1xf32>
    %19 = vector.broadcast %18 : vector<32x1xf32> to vector<32x128xf32>
    %20 = arith.mulf %10, %19 : vector<32x128xf32>
    %c0_7 = arith.constant 0 : index
    %c0_8 = arith.constant 0 : index
    %21 = vector.load %arg4[%c0_7, %c0_8] : memref<1x128xf32, #tpu.memory_space<vmem>>, vector<1x128xf32>
    %cst_9 = arith.constant dense<0.000000e+00> : vector<128xf32>
    %22 = vector.multi_reduction <add>, %20, %cst_9 [0] : vector<32x128xf32> to vector<128xf32>
    %23 = vector.shape_cast %22 : vector<128xf32> to vector<1x128xf32>
    %24 = arith.addf %21, %23 : vector<1x128xf32>
    %c0_10 = arith.constant 0 : index
    %c0_11 = arith.constant 0 : index
    %25 = vector.load %arg4[%c0_10, %c0_11] : memref<1x128xf32, #tpu.memory_space<vmem>>, vector<1x128xf32>
    tpu.vector_store %arg4[%c0_10, %c0_11], %24 {strides = array<i32>} : memref<1x128xf32, #tpu.memory_space<vmem>>, vector<1x128xf32>,
    %c0_12 = arith.constant 0 : index
    %c0_13 = arith.constant 0 : index
    %26 = vector.load %arg5[%c0_12, %c0_13] : memref<1x128xf32, #tpu.memory_space<vmem>>, vector<1x128xf32>
    %27 = arith.mulf %20, %20 : vector<32x128xf32>
    %cst_14 = arith.constant dense<0.000000e+00> : vector<128xf32>
    %28 = vector.multi_reduction <add>, %27, %cst_14 [0] : vector<32x128xf32> to vector<128xf32>
    %29 = vector.shape_cast %28 : vector<128xf32> to vector<1x128xf32>
    %30 = arith.addf %26, %29 : vector<1x128xf32>
    %c0_15 = arith.constant 0 : index
    %c0_16 = arith.constant 0 : index
    %31 = vector.load %arg5[%c0_15, %c0_16] : memref<1x128xf32, #tpu.memory_space<vmem>>, vector<1x128xf32>
    tpu.vector_store %arg5[%c0_15, %c0_16], %30 {strides = array<i32>} : memref<1x128xf32, #tpu.memory_space<vmem>>, vector<1x128xf32>,
    return
  }
  func.func @transform_0(%arg0: i32) -> (i32, i32) {
    %c0_i32 = arith.constant 0 : i32
    %c0_i32_0 = arith.constant 0 : i32
    return %arg0, %c0_i32 : i32, i32
  }
  func.func @transform_1(%arg0: i32) -> (i32, i32) {
    %c0_i32 = arith.constant 0 : i32
    %c0_i32_0 = arith.constant 0 : i32
    %c0_i32_1 = arith.constant 0 : i32
    return %c0_i32, %c0_i32_0 : i32, i32
  }
  func.func @transform_2(%arg0: i32) -> (i32, i32) {
    %c0_i32 = arith.constant 0 : i32
    %c0_i32_0 = arith.constant 0 : i32
    %c0_i32_1 = arith.constant 0 : i32
    return %c0_i32, %c0_i32_0 : i32, i32
  }
  func.func @transform_3(%arg0: i32) -> (i32, i32) {
    %c0_i32 = arith.constant 0 : i32
    %c0_i32_0 = arith.constant 0 : i32
    %c0_i32_1 = arith.constant 0 : i32
    return %c0_i32, %c0_i32_0 : i32, i32
  }
  func.func @transform_4(%arg0: i32) -> (i32, i32) {
    %c0_i32 = arith.constant 0 : i32
    %c0_i32_0 = arith.constant 0 : i32
    %c0_i32_1 = arith.constant 0 : i32
    return %c0_i32, %c0_i32_0 : i32, i32
  }
}

module attributes {stable_mosaic.version = 11 : i64} {
  func.func @_gemm_apply_kernel(%arg0: i32, %arg1: memref<32x256xf32, #tpu.memory_space<vmem>>, %arg2: memref<256x128xf32, #tpu.memory_space<vmem>>, %arg3: memref<1x128xf32, #tpu.memory_space<vmem>>, %arg4: memref<1x128xf32, #tpu.memory_space<vmem>>, %arg5: memref<1x128xf32, #tpu.memory_space<vmem>>, %arg6: memref<32x128xf32, #tpu.memory_space<vmem>>) attributes {dimension_semantics = [#tpu.dimension_semantics<parallel>], iteration_bounds = array<i64: 1>, scalar_prefetch = 0 : i64, scratch_operands = 0 : i64, tpu.core_type = #tpu.core_type<tc>, window_params = [{transform_indices = @transform_0, window_bounds = array<i64: 32, 256>}, {pipeline_mode = #tpu.pipeline_mode<synchronous>, transform_indices = @transform_1, window_bounds = array<i64: 256, 128>}, {pipeline_mode = #tpu.pipeline_mode<synchronous>, transform_indices = @transform_2, window_bounds = array<i64: 1, 128>}, {pipeline_mode = #tpu.pipeline_mode<synchronous>, transform_indices = @transform_3, window_bounds = array<i64: 1, 128>}, {pipeline_mode = #tpu.pipeline_mode<synchronous>, transform_indices = @transform_4, window_bounds = array<i64: 1, 128>}, {transform_indices = @transform_5, window_bounds = array<i64: 32, 128>}]} {
    %c0 = arith.constant 0 : index
    %c0_0 = arith.constant 0 : index
    %0 = vector.load %arg1[%c0, %c0_0] : memref<32x256xf32, #tpu.memory_space<vmem>>, vector<32x256xf32>
    %c0_1 = arith.constant 0 : index
    %c0_2 = arith.constant 0 : index
    %1 = vector.load %arg2[%c0_1, %c0_2] : memref<256x128xf32, #tpu.memory_space<vmem>>, vector<256x128xf32>
    %2 = arith.truncf %0 : vector<32x256xf32> to vector<32x256xbf16>
    %3 = arith.truncf %1 : vector<256x128xf32> to vector<256x128xbf16>
    %cst = arith.constant dense<0.000000e+00> : vector<32x128xf32>
    %4 = tpu.matmul %2, %3, %cst {dimension_numbers = #tpu.dot_dimension_numbers<[1], [0], [0], [1], [0, 0, 1, 1], [], []>} : vector<32x256xbf16>, vector<256x128xbf16>, vector<32x128xf32> -> vector<32x128xf32>
    %c0_3 = arith.constant 0 : index
    %c0_4 = arith.constant 0 : index
    %5 = vector.load %arg3[%c0_3, %c0_4] : memref<1x128xf32, #tpu.memory_space<vmem>>, vector<1x128xf32>
    %6 = vector.broadcast %5 : vector<1x128xf32> to vector<32x128xf32>
    %7 = arith.addf %4, %6 : vector<32x128xf32>
    %c0_5 = arith.constant 0 : index
    %c0_6 = arith.constant 0 : index
    %8 = vector.load %arg4[%c0_5, %c0_6] : memref<1x128xf32, #tpu.memory_space<vmem>>, vector<1x128xf32>
    %9 = vector.broadcast %8 : vector<1x128xf32> to vector<32x128xf32>
    %10 = arith.mulf %7, %9 : vector<32x128xf32>
    %c0_7 = arith.constant 0 : index
    %c0_8 = arith.constant 0 : index
    %11 = vector.load %arg5[%c0_7, %c0_8] : memref<1x128xf32, #tpu.memory_space<vmem>>, vector<1x128xf32>
    %12 = vector.broadcast %11 : vector<1x128xf32> to vector<32x128xf32>
    %13 = arith.addf %10, %12 : vector<32x128xf32>
    %cst_9 = arith.constant 0.000000e+00 : f32
    %14 = vector.broadcast %cst_9 : f32 to vector<32x128xf32>
    %15 = arith.cmpf oge, %13, %14 : vector<32x128xf32>
    %cst_10 = arith.constant 2.000000e-01 : f32
    %16 = vector.broadcast %cst_10 : f32 to vector<32x128xf32>
    %17 = arith.mulf %16, %13 : vector<32x128xf32>
    %18 = arith.select %15, %13, %17 : vector<32x128xi1>, vector<32x128xf32>
    %c0_11 = arith.constant 0 : index
    %c0_12 = arith.constant 0 : index
    %19 = vector.load %arg6[%c0_11, %c0_12] : memref<32x128xf32, #tpu.memory_space<vmem>>, vector<32x128xf32>
    tpu.vector_store %arg6[%c0_11, %c0_12], %18 {strides = array<i32>} : memref<32x128xf32, #tpu.memory_space<vmem>>, vector<32x128xf32>,
    return
  }
  func.func @transform_0(%arg0: i32) -> (i32, i32) {
    %c0_i32 = arith.constant 0 : i32
    %c0_i32_0 = arith.constant 0 : i32
    return %arg0, %c0_i32 : i32, i32
  }
  func.func @transform_1(%arg0: i32) -> (i32, i32) {
    %c0_i32 = arith.constant 0 : i32
    %c0_i32_0 = arith.constant 0 : i32
    %c0_i32_1 = arith.constant 0 : i32
    return %c0_i32, %c0_i32_0 : i32, i32
  }
  func.func @transform_2(%arg0: i32) -> (i32, i32) {
    %c0_i32 = arith.constant 0 : i32
    %c0_i32_0 = arith.constant 0 : i32
    %c0_i32_1 = arith.constant 0 : i32
    return %c0_i32, %c0_i32_0 : i32, i32
  }
  func.func @transform_3(%arg0: i32) -> (i32, i32) {
    %c0_i32 = arith.constant 0 : i32
    %c0_i32_0 = arith.constant 0 : i32
    %c0_i32_1 = arith.constant 0 : i32
    return %c0_i32, %c0_i32_0 : i32, i32
  }
  func.func @transform_4(%arg0: i32) -> (i32, i32) {
    %c0_i32 = arith.constant 0 : i32
    %c0_i32_0 = arith.constant 0 : i32
    %c0_i32_1 = arith.constant 0 : i32
    return %c0_i32, %c0_i32_0 : i32, i32
  }
  func.func @transform_5(%arg0: i32) -> (i32, i32) {
    %c0_i32 = arith.constant 0 : i32
    %c0_i32_0 = arith.constant 0 : i32
    return %arg0, %c0_i32 : i32, i32
  }
}

module attributes {stable_mosaic.version = 11 : i64} {
  func.func @_gemm_apply_kernel(%arg0: i32, %arg1: memref<32x256xf32, #tpu.memory_space<vmem>>, %arg2: memref<256x128xf32, #tpu.memory_space<vmem>>, %arg3: memref<1x128xf32, #tpu.memory_space<vmem>>, %arg4: memref<1x128xf32, #tpu.memory_space<vmem>>, %arg5: memref<1x128xf32, #tpu.memory_space<vmem>>, %arg6: memref<32x128xf32, #tpu.memory_space<vmem>>, %arg7: memref<32x128xf32, #tpu.memory_space<vmem>>) attributes {dimension_semantics = [#tpu.dimension_semantics<parallel>], iteration_bounds = array<i64: 1>, scalar_prefetch = 0 : i64, scratch_operands = 0 : i64, tpu.core_type = #tpu.core_type<tc>, window_params = [{transform_indices = @transform_0, window_bounds = array<i64: 32, 256>}, {pipeline_mode = #tpu.pipeline_mode<synchronous>, transform_indices = @transform_1, window_bounds = array<i64: 256, 128>}, {pipeline_mode = #tpu.pipeline_mode<synchronous>, transform_indices = @transform_2, window_bounds = array<i64: 1, 128>}, {pipeline_mode = #tpu.pipeline_mode<synchronous>, transform_indices = @transform_3, window_bounds = array<i64: 1, 128>}, {pipeline_mode = #tpu.pipeline_mode<synchronous>, transform_indices = @transform_4, window_bounds = array<i64: 1, 128>}, {transform_indices = @transform_5, window_bounds = array<i64: 32, 128>}, {transform_indices = @transform_6, window_bounds = array<i64: 32, 128>}]} {
    %c0 = arith.constant 0 : index
    %c0_0 = arith.constant 0 : index
    %0 = vector.load %arg1[%c0, %c0_0] : memref<32x256xf32, #tpu.memory_space<vmem>>, vector<32x256xf32>
    %c0_1 = arith.constant 0 : index
    %c0_2 = arith.constant 0 : index
    %1 = vector.load %arg2[%c0_1, %c0_2] : memref<256x128xf32, #tpu.memory_space<vmem>>, vector<256x128xf32>
    %2 = arith.truncf %0 : vector<32x256xf32> to vector<32x256xbf16>
    %3 = arith.truncf %1 : vector<256x128xf32> to vector<256x128xbf16>
    %cst = arith.constant dense<0.000000e+00> : vector<32x128xf32>
    %4 = tpu.matmul %2, %3, %cst {dimension_numbers = #tpu.dot_dimension_numbers<[1], [0], [0], [1], [0, 0, 1, 1], [], []>} : vector<32x256xbf16>, vector<256x128xbf16>, vector<32x128xf32> -> vector<32x128xf32>
    %c0_3 = arith.constant 0 : index
    %c0_4 = arith.constant 0 : index
    %5 = vector.load %arg3[%c0_3, %c0_4] : memref<1x128xf32, #tpu.memory_space<vmem>>, vector<1x128xf32>
    %6 = vector.broadcast %5 : vector<1x128xf32> to vector<32x128xf32>
    %7 = arith.addf %4, %6 : vector<32x128xf32>
    %c0_5 = arith.constant 0 : index
    %c0_6 = arith.constant 0 : index
    %8 = vector.load %arg4[%c0_5, %c0_6] : memref<1x128xf32, #tpu.memory_space<vmem>>, vector<1x128xf32>
    %9 = vector.broadcast %8 : vector<1x128xf32> to vector<32x128xf32>
    %10 = arith.mulf %7, %9 : vector<32x128xf32>
    %c0_7 = arith.constant 0 : index
    %c0_8 = arith.constant 0 : index
    %11 = vector.load %arg5[%c0_7, %c0_8] : memref<1x128xf32, #tpu.memory_space<vmem>>, vector<1x128xf32>
    %12 = vector.broadcast %11 : vector<1x128xf32> to vector<32x128xf32>
    %13 = arith.addf %10, %12 : vector<32x128xf32>
    %c0_9 = arith.constant 0 : index
    %c0_10 = arith.constant 0 : index
    %14 = vector.load %arg6[%c0_9, %c0_10] : memref<32x128xf32, #tpu.memory_space<vmem>>, vector<32x128xf32>
    %15 = arith.addf %13, %14 : vector<32x128xf32>
    %c0_11 = arith.constant 0 : index
    %c0_12 = arith.constant 0 : index
    %16 = vector.load %arg7[%c0_11, %c0_12] : memref<32x128xf32, #tpu.memory_space<vmem>>, vector<32x128xf32>
    tpu.vector_store %arg7[%c0_11, %c0_12], %15 {strides = array<i32>} : memref<32x128xf32, #tpu.memory_space<vmem>>, vector<32x128xf32>,
    return
  }
  func.func @transform_0(%arg0: i32) -> (i32, i32) {
    %c0_i32 = arith.constant 0 : i32
    %c0_i32_0 = arith.constant 0 : i32
    return %arg0, %c0_i32 : i32, i32
  }
  func.func @transform_1(%arg0: i32) -> (i32, i32) {
    %c0_i32 = arith.constant 0 : i32
    %c0_i32_0 = arith.constant 0 : i32
    %c0_i32_1 = arith.constant 0 : i32
    return %c0_i32, %c0_i32_0 : i32, i32
  }
  func.func @transform_2(%arg0: i32) -> (i32, i32) {
    %c0_i32 = arith.constant 0 : i32
    %c0_i32_0 = arith.constant 0 : i32
    %c0_i32_1 = arith.constant 0 : i32
    return %c0_i32, %c0_i32_0 : i32, i32
  }
  func.func @transform_3(%arg0: i32) -> (i32, i32) {
    %c0_i32 = arith.constant 0 : i32
    %c0_i32_0 = arith.constant 0 : i32
    %c0_i32_1 = arith.constant 0 : i32
    return %c0_i32, %c0_i32_0 : i32, i32
  }
  func.func @transform_4(%arg0: i32) -> (i32, i32) {
    %c0_i32 = arith.constant 0 : i32
    %c0_i32_0 = arith.constant 0 : i32
    %c0_i32_1 = arith.constant 0 : i32
    return %c0_i32, %c0_i32_0 : i32, i32
  }
  func.func @transform_5(%arg0: i32) -> (i32, i32) {
    %c0_i32 = arith.constant 0 : i32
    %c0_i32_0 = arith.constant 0 : i32
    return %arg0, %c0_i32 : i32, i32
  }
  func.func @transform_6(%arg0: i32) -> (i32, i32) {
    %c0_i32 = arith.constant 0 : i32
    %c0_i32_0 = arith.constant 0 : i32
    return %arg0, %c0_i32 : i32, i32
  }
}

module attributes {stable_mosaic.version = 11 : i64} {
  func.func @_mlp_kernel(%arg0: memref<8x256xf32, #tpu.memory_space<vmem>>, %arg1: memref<256x128xf32, #tpu.memory_space<vmem>>, %arg2: memref<1x128xf32, #tpu.memory_space<vmem>>, %arg3: memref<1x128xf32, #tpu.memory_space<vmem>>, %arg4: memref<1x128xf32, #tpu.memory_space<vmem>>, %arg5: memref<128x128xf32, #tpu.memory_space<vmem>>, %arg6: memref<1x128xf32, #tpu.memory_space<vmem>>, %arg7: memref<1x128xf32, #tpu.memory_space<vmem>>, %arg8: memref<1x128xf32, #tpu.memory_space<vmem>>, %arg9: memref<128x128xf32, #tpu.memory_space<vmem>>, %arg10: memref<1x128xf32, #tpu.memory_space<vmem>>, %arg11: memref<8x128xf32, #tpu.memory_space<vmem>>) attributes {dimension_semantics = [], scalar_prefetch = 0 : i64, scratch_operands = 0 : i64, tpu.core_type = #tpu.core_type<tc>} {
    %c0 = arith.constant 0 : index
    %c0_0 = arith.constant 0 : index
    %0 = vector.load %arg0[%c0, %c0_0] : memref<8x256xf32, #tpu.memory_space<vmem>>, vector<8x256xf32>
    %1 = tpu.iota {dimensions = array<i32: 0>} : vector<8x1xi32>
    %c2_i32 = arith.constant 2 : i32
    %2 = vector.broadcast %c2_i32 : i32 to vector<8x1xi32>
    %3 = arith.cmpi slt, %1, %2 : vector<8x1xi32>
    %4 = arith.extui %3 : vector<8x1xi1> to vector<8x1xi32>
    %5 = arith.sitofp %4 : vector<8x1xi32> to vector<8x1xf32>
    %c0_1 = arith.constant 0 : index
    %c0_2 = arith.constant 0 : index
    %6 = vector.load %arg1[%c0_1, %c0_2] : memref<256x128xf32, #tpu.memory_space<vmem>>, vector<256x128xf32>
    %c0_3 = arith.constant 0 : index
    %c0_4 = arith.constant 0 : index
    %7 = vector.load %arg2[%c0_3, %c0_4] : memref<1x128xf32, #tpu.memory_space<vmem>>, vector<1x128xf32>
    %8 = arith.truncf %0 : vector<8x256xf32> to vector<8x256xbf16>
    %9 = arith.truncf %6 : vector<256x128xf32> to vector<256x128xbf16>
    %cst = arith.constant dense<0.000000e+00> : vector<8x128xf32>
    %10 = tpu.matmul %8, %9, %cst {dimension_numbers = #tpu.dot_dimension_numbers<[1], [0], [0], [1], [0, 0, 1, 1], [], []>} : vector<8x256xbf16>, vector<256x128xbf16>, vector<8x128xf32> -> vector<8x128xf32>
    %11 = vector.broadcast %7 : vector<1x128xf32> to vector<8x128xf32>
    %12 = arith.addf %10, %11 : vector<8x128xf32>
    %c0_5 = arith.constant 0 : index
    %c0_6 = arith.constant 0 : index
    %13 = vector.load %arg3[%c0_5, %c0_6] : memref<1x128xf32, #tpu.memory_space<vmem>>, vector<1x128xf32>
    %c0_7 = arith.constant 0 : index
    %c0_8 = arith.constant 0 : index
    %14 = vector.load %arg4[%c0_7, %c0_8] : memref<1x128xf32, #tpu.memory_space<vmem>>, vector<1x128xf32>
    %15 = vector.broadcast %5 : vector<8x1xf32> to vector<8x128xf32>
    %16 = arith.mulf %12, %15 : vector<8x128xf32>
    %cst_9 = arith.constant dense<0.000000e+00> : vector<128xf32>
    %17 = vector.multi_reduction <add>, %16, %cst_9 [0] : vector<8x128xf32> to vector<128xf32>
    %18 = vector.shape_cast %17 : vector<128xf32> to vector<1x128xf32>
    %cst_10 = arith.constant 2.000000e+00 : f32
    %19 = vector.broadcast %cst_10 : f32 to vector<1x128xf32>
    %20 = arith.divf %18, %19 : vector<1x128xf32>
    %21 = vector.broadcast %20 : vector<1x128xf32> to vector<8x128xf32>
    %22 = arith.subf %12, %21 : vector<8x128xf32>
    %23 = arith.mulf %22, %22 : vector<8x128xf32>
    %24 = vector.broadcast %5 : vector<8x1xf32> to vector<8x128xf32>
    %25 = arith.mulf %23, %24 : vector<8x128xf32>
    %cst_11 = arith.constant dense<0.000000e+00> : vector<128xf32>
    %26 = vector.multi_reduction <add>, %25, %cst_11 [0] : vector<8x128xf32> to vector<128xf32>
    %27 = vector.shape_cast %26 : vector<128xf32> to vector<1x128xf32>
    %cst_12 = arith.constant 2.000000e+00 : f32
    %28 = vector.broadcast %cst_12 : f32 to vector<1x128xf32>
    %29 = arith.divf %27, %28 : vector<1x128xf32>
    %cst_13 = arith.constant 9.99999974E-6 : f32
    %30 = vector.broadcast %cst_13 : f32 to vector<1x128xf32>
    %31 = arith.addf %29, %30 : vector<1x128xf32>
    %32 = math.rsqrt %31 : vector<1x128xf32>
    %33 = vector.broadcast %32 : vector<1x128xf32> to vector<8x128xf32>
    %34 = arith.mulf %22, %33 : vector<8x128xf32>
    %35 = vector.broadcast %13 : vector<1x128xf32> to vector<8x128xf32>
    %36 = arith.mulf %34, %35 : vector<8x128xf32>
    %37 = vector.broadcast %14 : vector<1x128xf32> to vector<8x128xf32>
    %38 = arith.addf %36, %37 : vector<8x128xf32>
    %cst_14 = arith.constant 0.000000e+00 : f32
    %39 = vector.broadcast %cst_14 : f32 to vector<8x128xf32>
    %40 = arith.cmpf oge, %38, %39 : vector<8x128xf32>
    %cst_15 = arith.constant 2.000000e-01 : f32
    %41 = vector.broadcast %cst_15 : f32 to vector<8x128xf32>
    %42 = arith.mulf %41, %38 : vector<8x128xf32>
    %43 = arith.select %40, %38, %42 : vector<8x128xi1>, vector<8x128xf32>
    %c0_16 = arith.constant 0 : index
    %c0_17 = arith.constant 0 : index
    %44 = vector.load %arg5[%c0_16, %c0_17] : memref<128x128xf32, #tpu.memory_space<vmem>>, vector<128x128xf32>
    %c0_18 = arith.constant 0 : index
    %c0_19 = arith.constant 0 : index
    %45 = vector.load %arg6[%c0_18, %c0_19] : memref<1x128xf32, #tpu.memory_space<vmem>>, vector<1x128xf32>
    %46 = arith.truncf %43 : vector<8x128xf32> to vector<8x128xbf16>
    %47 = arith.truncf %44 : vector<128x128xf32> to vector<128x128xbf16>
    %cst_20 = arith.constant dense<0.000000e+00> : vector<8x128xf32>
    %48 = tpu.matmul %46, %47, %cst_20 {dimension_numbers = #tpu.dot_dimension_numbers<[1], [0], [0], [1], [0, 0, 1, 1], [], []>} : vector<8x128xbf16>, vector<128x128xbf16>, vector<8x128xf32> -> vector<8x128xf32>
    %49 = vector.broadcast %45 : vector<1x128xf32> to vector<8x128xf32>
    %50 = arith.addf %48, %49 : vector<8x128xf32>
    %c0_21 = arith.constant 0 : index
    %c0_22 = arith.constant 0 : index
    %51 = vector.load %arg7[%c0_21, %c0_22] : memref<1x128xf32, #tpu.memory_space<vmem>>, vector<1x128xf32>
    %c0_23 = arith.constant 0 : index
    %c0_24 = arith.constant 0 : index
    %52 = vector.load %arg8[%c0_23, %c0_24] : memref<1x128xf32, #tpu.memory_space<vmem>>, vector<1x128xf32>
    %53 = vector.broadcast %5 : vector<8x1xf32> to vector<8x128xf32>
    %54 = arith.mulf %50, %53 : vector<8x128xf32>
    %cst_25 = arith.constant dense<0.000000e+00> : vector<128xf32>
    %55 = vector.multi_reduction <add>, %54, %cst_25 [0] : vector<8x128xf32> to vector<128xf32>
    %56 = vector.shape_cast %55 : vector<128xf32> to vector<1x128xf32>
    %cst_26 = arith.constant 2.000000e+00 : f32
    %57 = vector.broadcast %cst_26 : f32 to vector<1x128xf32>
    %58 = arith.divf %56, %57 : vector<1x128xf32>
    %59 = vector.broadcast %58 : vector<1x128xf32> to vector<8x128xf32>
    %60 = arith.subf %50, %59 : vector<8x128xf32>
    %61 = arith.mulf %60, %60 : vector<8x128xf32>
    %62 = vector.broadcast %5 : vector<8x1xf32> to vector<8x128xf32>
    %63 = arith.mulf %61, %62 : vector<8x128xf32>
    %cst_27 = arith.constant dense<0.000000e+00> : vector<128xf32>
    %64 = vector.multi_reduction <add>, %63, %cst_27 [0] : vector<8x128xf32> to vector<128xf32>
    %65 = vector.shape_cast %64 : vector<128xf32> to vector<1x128xf32>
    %cst_28 = arith.constant 2.000000e+00 : f32
    %66 = vector.broadcast %cst_28 : f32 to vector<1x128xf32>
    %67 = arith.divf %65, %66 : vector<1x128xf32>
    %cst_29 = arith.constant 9.99999974E-6 : f32
    %68 = vector.broadcast %cst_29 : f32 to vector<1x128xf32>
    %69 = arith.addf %67, %68 : vector<1x128xf32>
    %70 = math.rsqrt %69 : vector<1x128xf32>
    %71 = vector.broadcast %70 : vector<1x128xf32> to vector<8x128xf32>
    %72 = arith.mulf %60, %71 : vector<8x128xf32>
    %73 = vector.broadcast %51 : vector<1x128xf32> to vector<8x128xf32>
    %74 = arith.mulf %72, %73 : vector<8x128xf32>
    %75 = vector.broadcast %52 : vector<1x128xf32> to vector<8x128xf32>
    %76 = arith.addf %74, %75 : vector<8x128xf32>
    %cst_30 = arith.constant 0.000000e+00 : f32
    %77 = vector.broadcast %cst_30 : f32 to vector<8x128xf32>
    %78 = arith.cmpf oge, %76, %77 : vector<8x128xf32>
    %cst_31 = arith.constant 2.000000e-01 : f32
    %79 = vector.broadcast %cst_31 : f32 to vector<8x128xf32>
    %80 = arith.mulf %79, %76 : vector<8x128xf32>
    %81 = arith.select %78, %76, %80 : vector<8x128xi1>, vector<8x128xf32>
    %c0_32 = arith.constant 0 : index
    %c0_33 = arith.constant 0 : index
    %82 = vector.load %arg9[%c0_32, %c0_33] : memref<128x128xf32, #tpu.memory_space<vmem>>, vector<128x128xf32>
    %c0_34 = arith.constant 0 : index
    %c0_35 = arith.constant 0 : index
    %83 = vector.load %arg10[%c0_34, %c0_35] : memref<1x128xf32, #tpu.memory_space<vmem>>, vector<1x128xf32>
    %84 = arith.truncf %81 : vector<8x128xf32> to vector<8x128xbf16>
    %85 = arith.truncf %82 : vector<128x128xf32> to vector<128x128xbf16>
    %cst_36 = arith.constant dense<0.000000e+00> : vector<8x128xf32>
    %86 = tpu.matmul %84, %85, %cst_36 {dimension_numbers = #tpu.dot_dimension_numbers<[1], [0], [0], [1], [0, 0, 1, 1], [], []>} : vector<8x128xbf16>, vector<128x128xbf16>, vector<8x128xf32> -> vector<8x128xf32>
    %87 = vector.broadcast %83 : vector<1x128xf32> to vector<8x128xf32>
    %88 = arith.addf %86, %87 : vector<8x128xf32>
    %c0_37 = arith.constant 0 : index
    %c0_38 = arith.constant 0 : index
    %89 = vector.load %arg11[%c0_37, %c0_38] : memref<8x128xf32, #tpu.memory_space<vmem>>, vector<8x128xf32>
    tpu.vector_store %arg11[%c0_37, %c0_38], %88 {strides = array<i32>} : memref<8x128xf32, #tpu.memory_space<vmem>>, vector<8x128xf32>,
    return
  }
}

</mosaic_0001>

<bundles_post_ra>
// kernel: cat_encoder_forward.10
= control target key start
LH: loop header
LB: loop body
LE: loop exit
PB: predicated region body
PF: predicated region fallthrough
CT: control target
= control target key end

     0   :  { %s493_s1 = inlined_call_operand.vmem [shape: f32[128,128], index: 1, kind: input, shape index: {}]   ;;  %s494_s2 = inlined_call_operand.vmem [shape: f32[1,128], index: 2, kind: input, shape index: {}]   ;;  %s495_s3 = inlined_call_operand.vmem [shape: f32[1,128], index: 3, kind: input, shape index: {}]   ;;  %s496_s4 = inlined_call_operand.vmem [shape: f32[1,128], index: 4, kind: input, shape index: {}]   ;;  %s497_s0 = inlined_call_operand.vmem [shape: f32[128,128], index: 0, kind: input, shape index: {}]   ;;  %s498_s5 = inlined_call_operand.vmem [shape: f32[128,128], index: 5, kind: output, shape index: {}]  }
   0x1   :  { %v50_v0 = vld [vmem:[%s493_s1 + $0x70] sm:$0xff]  ;;  %v51_v1 = vld [vmem:[%s493_s1 + $0x78] sm:$0xff]  ;;  %v48_v2 = vld [vmem:[%s493_s1 + $0x60] sm:$0xff] }
   0x2   :  { %v67_v3 = vpack.c.bf16 %v51_v1, %v50_v0  ;;  %v49_v4 = vld [vmem:[%s493_s1 + $0x68] sm:$0xff]  ;;  %v46_v6 = vld [vmem:[%s493_s1 + $0x50] sm:$0xff]  ;;  %v47_v7 = vld [vmem:[%s493_s1 + $0x58] sm:$0xff] }
   0x3   :  { %v66_v5 = vpack.c.bf16 %v49_v4, %v48_v2  ;;  %v65_v8 = vpack.c.bf16 %v47_v7, %v46_v6  ;;  %v44_v9 = vld [vmem:[%s493_s1 + $0x40] sm:$0xff]  ;;  %v45_v10 = vld [vmem:[%s493_s1 + $0x48] sm:$0xff]  ;;  %v42_v12 = vld [vmem:[%s493_s1 + $0x30] sm:$0xff] }
   0x4   :  { %72 = vmatpush.bf16.msra.mxu0 %v67_v3  ;;  %229 = vmatpush.bf16.msra.mxu1 %v67_v3  ;;  %v64_v11 = vpack.c.bf16 %v45_v10, %v44_v9  ;;  %v43_v13 = vld [vmem:[%s493_s1 + $0x38] sm:$0xff]  ;;  %v40_v15 = vld [vmem:[%s493_s1 + $0x20] sm:$0xff]  ;;  %v41_v16 = vld [vmem:[%s493_s1 + $0x28] sm:$0xff] }
   0x5   :  { %230 = vmatpush.bf16.msra.mxu2 %v67_v3  ;;  %231 = vmatpush.bf16.msra.mxu3 %v67_v3  ;;  %v63_v14 = vpack.c.bf16 %v43_v13, %v42_v12  ;;  %v62_v17 = vpack.c.bf16 %v41_v16, %v40_v15  ;;  %v38_v18 = vld [vmem:[%s493_s1 + $0x10] sm:$0xff]  ;;  %v39_v19 = vld [vmem:[%s493_s1 + $0x18] sm:$0xff]  ;;  %v36_v21 = vld [vmem:[%s493_s1] sm:$0xff] }
   0x6   :  { %v61_v20 = vpack.c.bf16 %v39_v19, %v38_v18  ;;  %v37_v22 = vld [vmem:[%s493_s1 + $0x8] sm:$0xff]  ;;  %v20_v23 = vld [vmem:[%s497_s0] sm:$0xff]  ;;  %v22_v36 = vld [vmem:[%s497_s0 + $0x10] sm:$0xff] }
   0x7   :  { %v21_v24 = vld [vmem:[%s497_s0 + $0x8] sm:$0xff]  ;;  %v60_v25 = vpack.c.bf16 %v37_v22, %v36_v21  ;;  %v24_v26 = vld [vmem:[%s497_s0 + $0x20] sm:$0xff]  ;;  %v23_v37 = vld [vmem:[%s497_s0 + $0x18] sm:$0xff] }
   0x8   :  { %73 = vmatpush.bf16.msra.mxu0 %v66_v5  ;;  %232 = vmatpush.bf16.msra.mxu1 %v66_v5  ;;  %v25_v27 = vld [vmem:[%s497_s0 + $0x28] sm:$0xff]  ;;  %v28_v28 = vld [vmem:[%s497_s0 + $0x40] sm:$0xff]  ;;  %v52_v32 = vpack.c.bf16 %v21_v24, %v20_v23  ;;  %v26_v38 = vld [vmem:[%s497_s0 + $0x30] sm:$0xff]  ;;  %v53_v44 = vpack.c.bf16 %v23_v37, %v22_v36 }
   0x9   :  { %233 = vmatpush.bf16.msra.mxu2 %v66_v5  ;;  %234 = vmatpush.bf16.msra.mxu3 %v66_v5  ;;  %v29_v29 = vld [vmem:[%s497_s0 + $0x48] sm:$0xff]  ;;  %v32_v30 = vld [vmem:[%s497_s0 + $0x60] sm:$0xff]  ;;  %v54_v33 = vpack.c.bf16 %v25_v27, %v24_v26  ;;  %v27_v39 = vld [vmem:[%s497_s0 + $0x38] sm:$0xff] }
   0xa   :  { %v33_v31 = vld [vmem:[%s497_s0 + $0x68] sm:$0xff]  ;;  %v56_v34 = vpack.c.bf16 %v29_v29, %v28_v28  ;;  %v30_v40 = vld [vmem:[%s497_s0 + $0x50] sm:$0xff]  ;;  %v31_v41 = vld [vmem:[%s497_s0 + $0x58] sm:$0xff]  ;;  %v55_v45 = vpack.c.bf16 %v27_v39, %v26_v38 }
   0xb   :  { %v58_v35 = vpack.c.bf16 %v33_v31, %v32_v30  ;;  %v34_v42 = vld [vmem:[%s497_s0 + $0x70] sm:$0xff]  ;;  %v35_v43 = vld [vmem:[%s497_s0 + $0x78] sm:$0xff]  ;;  %v57_v46 = vpack.c.bf16 %v31_v41, %v30_v40  ;;  %v385_v48 = vld [vmem:[%s494_s2] ss:$0 sm:$0xff] }
   0xc   :  { %74 = vmatpush.bf16.msra.mxu0 %v65_v8  ;;  %235 = vmatpush.bf16.msra.mxu1 %v65_v8  ;;  %v59_v47 = vpack.c.bf16 %v35_v43, %v34_v42  ;;  %v390_v49 = vld [vmem:[%s495_s3] ss:$0 sm:$0xff] }
   0xd   :  { %236 = vmatpush.bf16.msra.mxu2 %v65_v8  ;;  %237 = vmatpush.bf16.msra.mxu3 %v65_v8  ;;  %v396_v53 = vld [vmem:[%s496_s4] ss:$0 sm:$0xff] }
  0x10   :  { %75 = vmatpush.bf16.msra.mxu0 %v64_v11  ;;  %238 = vmatpush.bf16.msra.mxu1 %v64_v11 }
  0x11   :  { %239 = vmatpush.bf16.msra.mxu2 %v64_v11  ;;  %240 = vmatpush.bf16.msra.mxu3 %v64_v11 }
  0x14   :  { %76 = vmatpush.bf16.msra.mxu0 %v63_v14  ;;  %241 = vmatpush.bf16.msra.mxu1 %v63_v14 }
  0x15   :  { %242 = vmatpush.bf16.msra.mxu2 %v63_v14  ;;  %243 = vmatpush.bf16.msra.mxu3 %v63_v14 }
  0x18   :  { %77 = vmatpush.bf16.msra.mxu0 %v62_v17  ;;  %244 = vmatpush.bf16.msra.mxu1 %v62_v17 }
  0x19   :  { %245 = vmatpush.bf16.msra.mxu2 %v62_v17  ;;  %246 = vmatpush.bf16.msra.mxu3 %v62_v17 }
  0x1c   :  { %78 = vmatpush.bf16.msra.mxu0 %v61_v20  ;;  %247 = vmatpush.bf16.msra.mxu1 %v61_v20 }
  0x1d   :  { %248 = vmatpush.bf16.msra.mxu2 %v61_v20  ;;  %249 = vmatpush.bf16.msra.mxu3 %v61_v20 }
  0x20   :  { %79 = vmatpush.bf16.msra.mxu0 %v60_v25  ;;  %250 = vmatpush.bf16.msra.mxu1 %v60_v25 }
  0x21   :  { %251 = vmatpush.bf16.msra.mxu2 %v60_v25  ;;  %252 = vmatpush.bf16.msra.mxu3 %v60_v25 }
  0x23   :  { %80 = vmatmul.bf16.vlgmr.msra.gmra.mxu0 %v52_v32  ;;  %90 = vmatmul.bf16.vlgmr.msra.gmra.mxu1 %v54_v33 }
  0x24   :  { %100 = vmatmul.bf16.vlgmr.msra.gmra.mxu2 %v56_v34  ;;  %110 = vmatmul.bf16.vlgmr.msra.gmra.mxu3 %v58_v35 }
  0x33   :  { %85 = vmatmul.bf16.gmra.mxu0 %v53_v44  ;;  %95 = vmatmul.bf16.gmra.mxu1 %v55_v45 }
  0x34   :  { %105 = vmatmul.bf16.gmra.mxu2 %v57_v46  ;;  %115 = vmatmul.bf16.gmra.mxu3 %v59_v47 }
  0xa0   :  { %v81_v50 = vpop.f32.mrf.mxu0  ;;  %v91_v51 = vpop.f32.mrf.mxu1 }
  0xa1   :  { %v82_v52 = vadd.f32 %v385_v48, %v81_v50  ;;  %v92_v54 = vadd.f32 %v385_v48, %v91_v51 }
  0xa3   :  { %v125_v55 = vmul.f32 %v390_v49, %v82_v52  ;;  %v129_v56 = vmul.f32 %v390_v49, %v92_v54 }
  0xa5   :  { %v145_v57 = vadd.f32 %v396_v53, %v125_v55  ;;  %v149_v58 = vadd.f32 %v396_v53, %v129_v56 }
  0xa7   :  { %vm161_vm0 = vcmp.ge.f32.partialorder %v145_v57, 0.0  ;;  %v177_v59 = vmul.f32 0.2, %v145_v57  ;;  %vm165_vm1 = vcmp.ge.f32.partialorder %v149_v58, 0.0  ;;  %v181_v60 = vmul.f32 0.2, %v149_v58  ;;  %v101_v61 = vpop.f32.mrf.mxu2  ;;  %v111_v62 = vpop.f32.mrf.mxu3 }
  0xa8   :  { %v102_v63 = vadd.f32 %v385_v48, %v101_v61  ;;  %v112_v0 = vadd.f32 %v385_v48, %v111_v62  ;;  %v83_v1 = vpop.f32.mrf.mxu0  ;;  %v93_v2 = vpop.f32.mrf.mxu1 }
  0xa9   :  { %v193_v3 = vsel %vm161_vm0, %v145_v57, %v177_v59  ;;  %v197_v4 = vsel %vm165_vm1, %v149_v58, %v181_v60  ;;  %v84_v5 = vadd.f32 %v385_v48, %v83_v1  ;;  %v94_v6 = vadd.f32 %v385_v48, %v93_v2 }
  0xaa   :  { %209 = vst [vmem:[%s498_s5] sm:$0xff] %v193_v3  ;;  %v133_v7 = vmul.f32 %v390_v49, %v102_v63  ;;  %v137_v8 = vmul.f32 %v390_v49, %v112_v0 }
  0xab   :  { %213 = vst [vmem:[%s498_s5 + $0x20] sm:$0xff] %v197_v4  ;;  %v126_v9 = vmul.f32 %v390_v49, %v84_v5  ;;  %v130_v10 = vmul.f32 %v390_v49, %v94_v6 }
  0xac   :  { %v153_v11 = vadd.f32 %v396_v53, %v133_v7  ;;  %v157_v12 = vadd.f32 %v396_v53, %v137_v8 }
  0xad   :  { %v146_v13 = vadd.f32 %v396_v53, %v126_v9  ;;  %v150_v14 = vadd.f32 %v396_v53, %v130_v10 }
  0xae   :  { %vm169_vm2 = vcmp.ge.f32.partialorder %v153_v11, 0.0  ;;  %v185_v15 = vmul.f32 0.2, %v153_v11  ;;  %vm173_vm3 = vcmp.ge.f32.partialorder %v157_v12, 0.0  ;;  %v189_v16 = vmul.f32 0.2, %v157_v12 }
  0xaf   :  { %vm162_vm4 = vcmp.ge.f32.partialorder %v146_v13, 0.0  ;;  %v178_v17 = vmul.f32 0.2, %v146_v13  ;;  %vm166_vm5 = vcmp.ge.f32.partialorder %v150_v14, 0.0  ;;  %v182_v18 = vmul.f32 0.2, %v150_v14  ;;  %v103_v19 = vpop.f32.mrf.mxu2  ;;  %v113_v20 = vpop.f32.mrf.mxu3 }
  0xb0   :  { %v201_v21 = vsel %vm169_vm2, %v153_v11, %v185_v15  ;;  %v205_v22 = vsel %vm173_vm3, %v157_v12, %v189_v16  ;;  %v104_v23 = vadd.f32 %v385_v48, %v103_v19  ;;  %v114_v24 = vadd.f32 %v385_v48, %v113_v20  ;;  %v86_v25 = vpop.f32.mrf.mxu0  ;;  %v96_v26 = vpop.f32.mrf.mxu1 }
  0xb1   :  { %217 = vst [vmem:[%s498_s5 + $0x40] sm:$0xff] %v201_v21  ;;  %v194_v27 = vsel %vm162_vm4, %v146_v13, %v178_v17  ;;  %v198_v28 = vsel %vm166_vm5, %v150_v14, %v182_v18  ;;  %v87_v29 = vadd.f32 %v385_v48, %v86_v25  ;;  %v97_v30 = vadd.f32 %v385_v48, %v96_v26 }
  0xb2   :  { %221 = vst [vmem:[%s498_s5 + $0x60] sm:$0xff] %v205_v22  ;;  %v134_v31 = vmul.f32 %v390_v49, %v104_v23  ;;  %v138_v32 = vmul.f32 %v390_v49, %v114_v24 }
  0xb3   :  { %210 = vst [vmem:[%s498_s5 + $0x8] sm:$0xff] %v194_v27  ;;  %v127_v33 = vmul.f32 %v390_v49, %v87_v29  ;;  %v131_v34 = vmul.f32 %v390_v49, %v97_v30 }
  0xb4   :  { %214 = vst [vmem:[%s498_s5 + $0x28] sm:$0xff] %v198_v28  ;;  %v154_v35 = vadd.f32 %v396_v53, %v134_v31  ;;  %v158_v36 = vadd.f32 %v396_v53, %v138_v32 }
  0xb5   :  { %v147_v37 = vadd.f32 %v396_v53, %v127_v33  ;;  %v151_v38 = vadd.f32 %v396_v53, %v131_v34 }
  0xb6   :  { %vm170_vm6 = vcmp.ge.f32.partialorder %v154_v35, 0.0  ;;  %v186_v39 = vmul.f32 0.2, %v154_v35  ;;  %vm174_vm7 = vcmp.ge.f32.partialorder %v158_v36, 0.0  ;;  %v190_v40 = vmul.f32 0.2, %v158_v36 }
  0xb7   :  { %vm163_vm8 = vcmp.ge.f32.partialorder %v147_v37, 0.0  ;;  %v179_v41 = vmul.f32 0.2, %v147_v37  ;;  %vm167_vm9 = vcmp.ge.f32.partialorder %v151_v38, 0.0  ;;  %v183_v42 = vmul.f32 0.2, %v151_v38  ;;  %v106_v43 = vpop.f32.mrf.mxu2  ;;  %v116_v44 = vpop.f32.mrf.mxu3 }
  0xb8   :  { %v202_v45 = vsel %vm170_vm6, %v154_v35, %v186_v39  ;;  %v206_v46 = vsel %vm174_vm7, %v158_v36, %v190_v40  ;;  %v107_v47 = vadd.f32 %v385_v48, %v106_v43  ;;  %v117_v50 = vadd.f32 %v385_v48, %v116_v44  ;;  %v88_v51 = vpop.f32.mrf.mxu0  ;;  %v98_v52 = vpop.f32.mrf.mxu1 }
  0xb9   :  { %218 = vst [vmem:[%s498_s5 + $0x48] sm:$0xff] %v202_v45  ;;  %v195_v54 = vsel %vm163_vm8, %v147_v37, %v179_v41  ;;  %v199_v55 = vsel %vm167_vm9, %v151_v38, %v183_v42  ;;  %v89_v56 = vadd.f32 %v385_v48, %v88_v51  ;;  %v99_v57 = vadd.f32 %v385_v48, %v98_v52 }
  0xba   :  { %222 = vst [vmem:[%s498_s5 + $0x68] sm:$0xff] %v206_v46  ;;  %v135_v58 = vmul.f32 %v390_v49, %v107_v47  ;;  %v139_v59 = vmul.f32 %v390_v49, %v117_v50 }
  0xbb   :  { %211 = vst [vmem:[%s498_s5 + $0x10] sm:$0xff] %v195_v54  ;;  %v128_v60 = vmul.f32 %v390_v49, %v89_v56  ;;  %v132_v61 = vmul.f32 %v390_v49, %v99_v57 }
  0xbc   :  { %215 = vst [vmem:[%s498_s5 + $0x30] sm:$0xff] %v199_v55  ;;  %v155_v62 = vadd.f32 %v396_v53, %v135_v58  ;;  %v159_v63 = vadd.f32 %v396_v53, %v139_v59 }
  0xbd   :  { %v148_v0 = vadd.f32 %v396_v53, %v128_v60  ;;  %v152_v1 = vadd.f32 %v396_v53, %v132_v61 }
  0xbe   :  { %vm171_vm10 = vcmp.ge.f32.partialorder %v155_v62, 0.0  ;;  %v187_v2 = vmul.f32 0.2, %v155_v62  ;;  %vm175_vm11 = vcmp.ge.f32.partialorder %v159_v63, 0.0  ;;  %v191_v3 = vmul.f32 0.2, %v159_v63 }
  0xbf   :  { %vm164_vm12 = vcmp.ge.f32.partialorder %v148_v0, 0.0  ;;  %v180_v4 = vmul.f32 0.2, %v148_v0  ;;  %vm168_vm13 = vcmp.ge.f32.partialorder %v152_v1, 0.0  ;;  %v184_v5 = vmul.f32 0.2, %v152_v1  ;;  %v108_v6 = vpop.f32.mrf.mxu2  ;;  %v118_v7 = vpop.f32.mrf.mxu3 }
  0xc0   :  { %v203_v8 = vsel %vm171_vm10, %v155_v62, %v187_v2  ;;  %v207_v9 = vsel %vm175_vm11, %v159_v63, %v191_v3  ;;  %v109_v10 = vadd.f32 %v385_v48, %v108_v6  ;;  %v119_v11 = vadd.f32 %v385_v48, %v118_v7 }
  0xc1   :  { %219 = vst [vmem:[%s498_s5 + $0x50] sm:$0xff] %v203_v8  ;;  %v196_v12 = vsel %vm164_vm12, %v148_v0, %v180_v4  ;;  %v200_v13 = vsel %vm168_vm13, %v152_v1, %v184_v5 }
  0xc2   :  { %223 = vst [vmem:[%s498_s5 + $0x70] sm:$0xff] %v207_v9  ;;  %v136_v14 = vmul.f32 %v390_v49, %v109_v10  ;;  %v140_v15 = vmul.f32 %v390_v49, %v119_v11 }
  0xc3   :  { %212 = vst [vmem:[%s498_s5 + $0x18] sm:$0xff] %v196_v12 }
  0xc4   :  { %216 = vst [vmem:[%s498_s5 + $0x38] sm:$0xff] %v200_v13  ;;  %v156_v48 = vadd.f32 %v396_v53, %v136_v14  ;;  %v160_v16 = vadd.f32 %v396_v53, %v140_v15 }
  0xc6   :  { %vm172_vm14 = vcmp.ge.f32.partialorder %v156_v48, 0.0  ;;  %v188_v17 = vmul.f32 0.2, %v156_v48  ;;  %vm176_vm15 = vcmp.ge.f32.partialorder %v160_v16, 0.0  ;;  %v192_v18 = vmul.f32 0.2, %v160_v16 }
  0xc8   :  { %v204_v19 = vsel %vm172_vm14, %v156_v48, %v188_v17  ;;  %v208_v20 = vsel %vm176_vm15, %v160_v16, %v192_v18 }
  0xc9   :  { %220 = vst [vmem:[%s498_s5 + $0x58] sm:$0xff] %v204_v19 }
  0xca   :  { %224 = vst [vmem:[%s498_s5 + $0x78] sm:$0xff] %v208_v20 }

// kernel: cat_encoder_forward.9
= control target key start
LH: loop header
LB: loop body
LE: loop exit
PB: predicated region body
PF: predicated region fallthrough
CT: control target
= control target key end

     0   :  { %v320_v61 = vmov 0.0   ;;  %s481_s1 = inlined_call_operand.vmem [shape: f32[128,128], index: 1, kind: input, shape index: {}]   ;;  %s482_s2 = inlined_call_operand.vmem [shape: f32[1,128], index: 2, kind: input, shape index: {}]   ;;  %s483_s0 = inlined_call_operand.vmem [shape: f32[128,128], index: 0, kind: input, shape index: {}]   ;;  %s484_s3 = inlined_call_operand.vmem [shape: f32[1,128], index: 3, kind: output, shape index: {0}]   ;;  %s485_s4 = inlined_call_operand.vmem [shape: f32[1,128], index: 4, kind: output, shape index: {1}]  }
   0x1   :  { %v52_v0 = vld [vmem:[%s481_s1 + $0x70] sm:$0xff]  ;;  %v53_v1 = vld [vmem:[%s481_s1 + $0x78] sm:$0xff]  ;;  %v50_v2 = vld [vmem:[%s481_s1 + $0x60] sm:$0xff]  ;;  %20 = vst [vmem:[%s484_s3] sm:$0x1] %v320_v61 }
   0x2   :  { %v69_v3 = vpack.c.bf16 %v53_v1, %v52_v0  ;;  %v51_v4 = vld [vmem:[%s481_s1 + $0x68] sm:$0xff]  ;;  %v48_v6 = vld [vmem:[%s481_s1 + $0x50] sm:$0xff]  ;;  %v49_v7 = vld [vmem:[%s481_s1 + $0x58] sm:$0xff]  ;;  %21 = vst [vmem:[%s485_s4] sm:$0x1] %v320_v61 }
   0x3   :  { %v68_v5 = vpack.c.bf16 %v51_v4, %v50_v2  ;;  %v67_v8 = vpack.c.bf16 %v49_v7, %v48_v6  ;;  %v46_v9 = vld [vmem:[%s481_s1 + $0x40] sm:$0xff]  ;;  %v47_v10 = vld [vmem:[%s481_s1 + $0x48] sm:$0xff]  ;;  %v44_v12 = vld [vmem:[%s481_s1 + $0x30] sm:$0xff] }
   0x4   :  { %74 = vmatpush.bf16.msra.mxu0 %v69_v3  ;;  %294 = vmatpush.bf16.msra.mxu1 %v69_v3  ;;  %v66_v11 = vpack.c.bf16 %v47_v10, %v46_v9  ;;  %v45_v13 = vld [vmem:[%s481_s1 + $0x38] sm:$0xff]  ;;  %v42_v15 = vld [vmem:[%s481_s1 + $0x20] sm:$0xff]  ;;  %v43_v16 = vld [vmem:[%s481_s1 + $0x28] sm:$0xff] }
   0x5   :  { %295 = vmatpush.bf16.msra.mxu2 %v69_v3  ;;  %296 = vmatpush.bf16.msra.mxu3 %v69_v3  ;;  %v65_v14 = vpack.c.bf16 %v45_v13, %v44_v12  ;;  %v64_v17 = vpack.c.bf16 %v43_v16, %v42_v15  ;;  %v40_v18 = vld [vmem:[%s481_s1 + $0x10] sm:$0xff]  ;;  %v41_v19 = vld [vmem:[%s481_s1 + $0x18] sm:$0xff]  ;;  %v38_v21 = vld [vmem:[%s481_s1] sm:$0xff] }
   0x6   :  { %v63_v20 = vpack.c.bf16 %v41_v19, %v40_v18  ;;  %v39_v22 = vld [vmem:[%s481_s1 + $0x8] sm:$0xff]  ;;  %v22_v23 = vld [vmem:[%s483_s0] sm:$0xff]  ;;  %v24_v36 = vld [vmem:[%s483_s0 + $0x10] sm:$0xff] }
   0x7   :  { %v23_v24 = vld [vmem:[%s483_s0 + $0x8] sm:$0xff]  ;;  %v62_v25 = vpack.c.bf16 %v39_v22, %v38_v21  ;;  %v26_v26 = vld [vmem:[%s483_s0 + $0x20] sm:$0xff]  ;;  %v25_v37 = vld [vmem:[%s483_s0 + $0x18] sm:$0xff] }
   0x8   :  { %75 = vmatpush.bf16.msra.mxu0 %v68_v5  ;;  %297 = vmatpush.bf16.msra.mxu1 %v68_v5  ;;  %v27_v27 = vld [vmem:[%s483_s0 + $0x28] sm:$0xff]  ;;  %v30_v28 = vld [vmem:[%s483_s0 + $0x40] sm:$0xff]  ;;  %v54_v32 = vpack.c.bf16 %v23_v24, %v22_v23  ;;  %v28_v38 = vld [vmem:[%s483_s0 + $0x30] sm:$0xff]  ;;  %v55_v44 = vpack.c.bf16 %v25_v37, %v24_v36 }
   0x9   :  { %298 = vmatpush.bf16.msra.mxu2 %v68_v5  ;;  %299 = vmatpush.bf16.msra.mxu3 %v68_v5  ;;  %v31_v29 = vld [vmem:[%s483_s0 + $0x48] sm:$0xff]  ;;  %v34_v30 = vld [vmem:[%s483_s0 + $0x60] sm:$0xff]  ;;  %v56_v33 = vpack.c.bf16 %v27_v27, %v26_v26  ;;  %v29_v39 = vld [vmem:[%s483_s0 + $0x38] sm:$0xff] }
   0xa   :  { %v35_v31 = vld [vmem:[%s483_s0 + $0x68] sm:$0xff]  ;;  %v58_v34 = vpack.c.bf16 %v31_v29, %v30_v28  ;;  %v32_v40 = vld [vmem:[%s483_s0 + $0x50] sm:$0xff]  ;;  %v33_v41 = vld [vmem:[%s483_s0 + $0x58] sm:$0xff]  ;;  %v57_v45 = vpack.c.bf16 %v29_v39, %v28_v38 }
   0xb   :  { %v60_v35 = vpack.c.bf16 %v35_v31, %v34_v30  ;;  %v36_v42 = vld [vmem:[%s483_s0 + $0x70] sm:$0xff]  ;;  %v37_v43 = vld [vmem:[%s483_s0 + $0x78] sm:$0xff]  ;;  %v59_v46 = vpack.c.bf16 %v33_v41, %v32_v40  ;;  %v445_v54 = vld [vmem:[%s482_s2] ss:$0 sm:$0xff] }
   0xc   :  { %76 = vmatpush.bf16.msra.mxu0 %v67_v8  ;;  %300 = vmatpush.bf16.msra.mxu1 %v67_v8  ;;  %v61_v47 = vpack.c.bf16 %v37_v43, %v36_v42 }
   0xd   :  { %301 = vmatpush.bf16.msra.mxu2 %v67_v8  ;;  %302 = vmatpush.bf16.msra.mxu3 %v67_v8 }
  0x10   :  { %77 = vmatpush.bf16.msra.mxu0 %v66_v11  ;;  %303 = vmatpush.bf16.msra.mxu1 %v66_v11 }
  0x11   :  { %304 = vmatpush.bf16.msra.mxu2 %v66_v11  ;;  %305 = vmatpush.bf16.msra.mxu3 %v66_v11 }
  0x14   :  { %78 = vmatpush.bf16.msra.mxu0 %v65_v14  ;;  %306 = vmatpush.bf16.msra.mxu1 %v65_v14 }
  0x15   :  { %307 = vmatpush.bf16.msra.mxu2 %v65_v14  ;;  %308 = vmatpush.bf16.msra.mxu3 %v65_v14 }
  0x18   :  { %79 = vmatpush.bf16.msra.mxu0 %v64_v17  ;;  %309 = vmatpush.bf16.msra.mxu1 %v64_v17 }
  0x19   :  { %310 = vmatpush.bf16.msra.mxu2 %v64_v17  ;;  %311 = vmatpush.bf16.msra.mxu3 %v64_v17 }
  0x1c   :  { %80 = vmatpush.bf16.msra.mxu0 %v63_v20  ;;  %312 = vmatpush.bf16.msra.mxu1 %v63_v20 }
  0x1d   :  { %313 = vmatpush.bf16.msra.mxu2 %v63_v20  ;;  %314 = vmatpush.bf16.msra.mxu3 %v63_v20 }
  0x20   :  { %81 = vmatpush.bf16.msra.mxu0 %v62_v25  ;;  %315 = vmatpush.bf16.msra.mxu1 %v62_v25 }
  0x21   :  { %316 = vmatpush.bf16.msra.mxu2 %v62_v25  ;;  %317 = vmatpush.bf16.msra.mxu3 %v62_v25 }
  0x23   :  { %82 = vmatmul.bf16.vlgmr.msra.gmra.mxu0 %v54_v32  ;;  %92 = vmatmul.bf16.vlgmr.msra.gmra.mxu1 %v56_v33 }
  0x24   :  { %102 = vmatmul.bf16.vlgmr.msra.gmra.mxu2 %v58_v34  ;;  %112 = vmatmul.bf16.vlgmr.msra.gmra.mxu3 %v60_v35 }
  0x33   :  { %87 = vmatmul.bf16.gmra.mxu0 %v55_v44  ;;  %97 = vmatmul.bf16.gmra.mxu1 %v57_v45 }
  0x34   :  { %107 = vmatmul.bf16.gmra.mxu2 %v59_v46  ;;  %117 = vmatmul.bf16.gmra.mxu3 %v61_v47 }
  0xa0   :  { %v83_v48 = vpop.f32.mrf.mxu0  ;;  %v93_v49 = vpop.f32.mrf.mxu1 }
  0xa1   :  { %v84_v59 = vadd.f32 %v445_v54, %v83_v48  ;;  %v94_v4 = vadd.f32 %v445_v54, %v93_v49 }
  0xa3   :  { %v247_v63 = vmul.f32 %v84_v59, %v84_v59  ;;  %v251_v14 = vmul.f32 %v94_v4, %v94_v4 }
  0xa7   :  { %v103_v50 = vpop.f32.mrf.mxu2  ;;  %v113_v53 = vpop.f32.mrf.mxu3 }
  0xa8   :  { %v85_v51 = vpop.f32.mrf.mxu0  ;;  %v95_v52 = vpop.f32.mrf.mxu1  ;;  %v104_v22 = vadd.f32 %v445_v54, %v103_v50  ;;  %v114_v40 = vadd.f32 %v445_v54, %v113_v53 }
  0xa9   :  { %v86_v57 = vadd.f32 %v445_v54, %v85_v51  ;;  %v96_v9 = vadd.f32 %v445_v54, %v95_v52 }
  0xaa   :  { %v255_v32 = vmul.f32 %v104_v22, %v104_v22  ;;  %v259_v49 = vmul.f32 %v114_v40, %v114_v40 }
  0xab   :  { %v248_v62 = vmul.f32 %v86_v57, %v86_v57  ;;  %v223_v0 = vadd.f32 %v86_v57, %v84_v59  ;;  %v252_v18 = vmul.f32 %v96_v9, %v96_v9 }
  0xad   :  { %v263_v5 = vadd.f32 %v248_v62, %v247_v63 }
  0xaf   :  { %v105_v56 = vpop.f32.mrf.mxu2  ;;  %v115_v3 = vpop.f32.mrf.mxu3 }
  0xb0   :  { %v88_v55 = vpop.f32.mrf.mxu0  ;;  %v98_v58 = vpop.f32.mrf.mxu1  ;;  %v106_v27 = vadd.f32 %v445_v54, %v105_v56  ;;  %v116_v45 = vadd.f32 %v445_v54, %v115_v3 }
  0xb1   :  { %v89_v60 = vadd.f32 %v445_v54, %v88_v55  ;;  %v99_v15 = vadd.f32 %v445_v54, %v98_v58 }
  0xb2   :  { %v256_v36 = vmul.f32 %v106_v27, %v106_v27  ;;  %v260_v55 = vmul.f32 %v116_v45, %v116_v45 }
  0xb3   :  { %v249_v1 = vmul.f32 %v89_v60, %v89_v60  ;;  %v224_v6 = vadd.f32 %v223_v0, %v89_v60  ;;  %v253_v23 = vmul.f32 %v99_v15, %v99_v15 }
  0xb5   :  { %v264_v10 = vadd.f32 %v263_v5, %v249_v1 }
  0xb7   :  { %v108_v8 = vpop.f32.mrf.mxu2  ;;  %v118_v26 = vpop.f32.mrf.mxu3 }
  0xb8   :  { %v90_v2 = vpop.f32.mrf.mxu0  ;;  %v100_v13 = vpop.f32.mrf.mxu1  ;;  %v109_v35 = vadd.f32 %v445_v54, %v108_v8  ;;  %v119_v52 = vadd.f32 %v445_v54, %v118_v26 }
  0xb9   :  { %v91_v7 = vadd.f32 %v445_v54, %v90_v2  ;;  %v101_v20 = vadd.f32 %v445_v54, %v100_v13 }
  0xba   :  { %v257_v42 = vmul.f32 %v109_v35, %v109_v35  ;;  %v261_v59 = vmul.f32 %v119_v52, %v119_v52 }
  0xbb   :  { %v225_v11 = vadd.f32 %v224_v6, %v91_v7  ;;  %v250_v12 = vmul.f32 %v91_v7, %v91_v7  ;;  %v254_v29 = vmul.f32 %v101_v20, %v101_v20 }
  0xbd   :  { %v226_v16 = vadd.f32 %v225_v11, %v94_v4  ;;  %v265_v17 = vadd.f32 %v264_v10, %v250_v12  ;;  %v246_v12 = vld [vmem:[%s485_s4] sm:$0x1] }
  0xbf   :  { %v266_v19 = vadd.f32 %v265_v17, %v251_v14  ;;  %v227_v21 = vadd.f32 %v226_v16, %v96_v9  ;;  %v110_v31 = vpop.f32.mrf.mxu2  ;;  %v120_v48 = vpop.f32.mrf.mxu3 }
  0xc0   :  { %v111_v39 = vadd.f32 %v445_v54, %v110_v31  ;;  %v121_v58 = vadd.f32 %v445_v54, %v120_v48  ;;  %v222_v54 = vld [vmem:[%s484_s3] sm:$0x1] }
  0xc1   :  { %v228_v24 = vadd.f32 %v227_v21, %v99_v15  ;;  %v267_v25 = vadd.f32 %v266_v19, %v252_v18 }
  0xc2   :  { %v258_v47 = vmul.f32 %v111_v39, %v111_v39  ;;  %v262_v63 = vmul.f32 %v121_v58, %v121_v58 }
  0xc3   :  { %v229_v28 = vadd.f32 %v228_v24, %v101_v20  ;;  %v268_v30 = vadd.f32 %v267_v25, %v253_v23 }
  0xc5   :  { %v230_v33 = vadd.f32 %v229_v28, %v104_v22  ;;  %v269_v34 = vadd.f32 %v268_v30, %v254_v29 }
  0xc7   :  { %v270_v37 = vadd.f32 %v269_v34, %v255_v32  ;;  %v231_v38 = vadd.f32 %v230_v33, %v106_v27 }
  0xc9   :  { %v232_v41 = vadd.f32 %v231_v38, %v109_v35  ;;  %v271_v43 = vadd.f32 %v270_v37, %v256_v36 }
  0xcb   :  { %v272_v44 = vadd.f32 %v271_v43, %v257_v42  ;;  %v233_v46 = vadd.f32 %v232_v41, %v111_v39 }
  0xcd   :  { %v234_v50 = vadd.f32 %v233_v46, %v114_v40  ;;  %v273_v51 = vadd.f32 %v272_v44, %v258_v47 }
  0xcf   :  { %v274_v56 = vadd.f32 %v273_v51, %v259_v49  ;;  %v235_v57 = vadd.f32 %v234_v50, %v116_v45 }
  0xd1   :  { %v236_v53 = vadd.f32 %v235_v57, %v119_v52  ;;  %v275_v60 = vadd.f32 %v274_v56, %v260_v55 }
  0xd3   :  { %v276_v61 = vadd.f32 %v275_v60, %v261_v59  ;;  %v237_v62 = vadd.f32 %v236_v53, %v121_v58 }
  0xd5   :  { %v238_v0 = vrot.slane %v237_v62, 4  ;;  %v277_v1 = vadd.f32 %v276_v61, %v262_v63 }
  0xd7   :  { %v239_v2 = vadd.f32 %v238_v0, %v237_v62  ;;  %v278_v3 = vrot.slane %v277_v1, 4 }
  0xd9   :  { %v240_v4 = vrot.slane %v239_v2, 2  ;;  %v279_v5 = vadd.f32 %v278_v3, %v277_v1 }
  0xdb   :  { %v241_v6 = vadd.f32 %v240_v4, %v239_v2  ;;  %v280_v7 = vrot.slane %v279_v5, 2 }
  0xdd   :  { %v242_v8 = vrot.slane %v241_v6, 1  ;;  %v281_v9 = vadd.f32 %v280_v7, %v279_v5 }
  0xdf   :  { %v243_v10 = vadd.f32 %v242_v8, %v241_v6  ;;  %v282_v11 = vrot.slane %v281_v9, 1 }
  0xe1   :  { %v244_v13 = vadd.f32 %v243_v10, %v222_v54  ;;  %v283_v14 = vadd.f32 %v282_v11, %v281_v9 }
  0xe3   :  { %245 = vst [vmem:[%s484_s3] sm:$0x1] %v244_v13  ;;  %v284_v15 = vadd.f32 %v283_v14, %v246_v12 }
  0xe5   :  { %285 = vst [vmem:[%s485_s4] sm:$0x1] %v284_v15 }

// kernel: cat_encoder_forward.11
= control target key start
LH: loop header
LB: loop body
LE: loop exit
PB: predicated region body
PF: predicated region fallthrough
CT: control target
= control target key end

     0   :  { %v148_v30 = vmov 0.0   ;;  %s255_s1 = inlined_call_operand.vmem [shape: f32[128,128], index: 1, kind: input, shape index: {}]   ;;  %s256_s2 = inlined_call_operand.vmem [shape: f32[1,128], index: 2, kind: input, shape index: {}]   ;;  %s257_s0 = inlined_call_operand.vmem [shape: f32[32,128], index: 0, kind: input, shape index: {}]   ;;  %s258_s3 = inlined_call_operand.vmem [shape: f32[1,128], index: 3, kind: output, shape index: {0}]   ;;  %s259_s4 = inlined_call_operand.vmem [shape: f32[1,128], index: 4, kind: output, shape index: {1}]  }
   0x1   :  { %v40_v0 = vld [vmem:[%s255_s1 + $0x70] sm:$0xff]  ;;  %v41_v1 = vld [vmem:[%s255_s1 + $0x78] sm:$0xff]  ;;  %v38_v2 = vld [vmem:[%s255_s1 + $0x60] sm:$0xff]  ;;  %20 = vst [vmem:[%s258_s3] sm:$0x1] %v148_v30 }
   0x2   :  { %v51_v3 = vpack.c.bf16 %v41_v1, %v40_v0  ;;  %v39_v4 = vld [vmem:[%s255_s1 + $0x68] sm:$0xff]  ;;  %v36_v6 = vld [vmem:[%s255_s1 + $0x50] sm:$0xff]  ;;  %v37_v7 = vld [vmem:[%s255_s1 + $0x58] sm:$0xff]  ;;  %21 = vst [vmem:[%s259_s4] sm:$0x1] %v148_v30 }
   0x3   :  { %v50_v5 = vpack.c.bf16 %v39_v4, %v38_v2  ;;  %v49_v8 = vpack.c.bf16 %v37_v7, %v36_v6  ;;  %v34_v9 = vld [vmem:[%s255_s1 + $0x40] sm:$0xff]  ;;  %v35_v10 = vld [vmem:[%s255_s1 + $0x48] sm:$0xff]  ;;  %v32_v12 = vld [vmem:[%s255_s1 + $0x30] sm:$0xff] }
   0x4   :  { %56 = vmatpush.bf16.msra.mxu0 %v51_v3  ;;  %138 = vmatpush.bf16.msra.mxu1 %v51_v3  ;;  %v48_v11 = vpack.c.bf16 %v35_v10, %v34_v9  ;;  %v33_v13 = vld [vmem:[%s255_s1 + $0x38] sm:$0xff]  ;;  %v30_v15 = vld [vmem:[%s255_s1 + $0x20] sm:$0xff]  ;;  %v31_v16 = vld [vmem:[%s255_s1 + $0x28] sm:$0xff] }
   0x5   :  { %v47_v14 = vpack.c.bf16 %v33_v13, %v32_v12  ;;  %v46_v17 = vpack.c.bf16 %v31_v16, %v30_v15  ;;  %v28_v18 = vld [vmem:[%s255_s1 + $0x10] sm:$0xff]  ;;  %v29_v19 = vld [vmem:[%s255_s1 + $0x18] sm:$0xff]  ;;  %v26_v21 = vld [vmem:[%s255_s1] sm:$0xff] }
   0x6   :  { %v45_v20 = vpack.c.bf16 %v29_v19, %v28_v18  ;;  %v27_v22 = vld [vmem:[%s255_s1 + $0x8] sm:$0xff]  ;;  %v22_v23 = vld [vmem:[%s257_s0] sm:$0xff]  ;;  %v24_v26 = vld [vmem:[%s257_s0 + $0x10] sm:$0xff] }
   0x7   :  { %v44_v24 = vpack.c.bf16 %v27_v22, %v26_v21  ;;  %v23_v25 = vld [vmem:[%s257_s0 + $0x8] sm:$0xff]  ;;  %v25_v27 = vld [vmem:[%s257_s0 + $0x18] sm:$0xff]  ;;  %v147_v33 = vld [vmem:[%s256_s2] ss:$0 sm:$0xff] }
   0x8   :  { %57 = vmatpush.bf16.msra.mxu0 %v50_v5  ;;  %139 = vmatpush.bf16.msra.mxu1 %v50_v5  ;;  %v42_v28 = vpack.c.bf16 %v23_v25, %v22_v23  ;;  %v43_v29 = vpack.c.bf16 %v25_v27, %v24_v26  ;;  %v102_v59 = vld [vmem:[%s258_s3] sm:$0x1] }
   0x9   :  { %v114_v62 = vld [vmem:[%s259_s4] sm:$0x1] }
   0xc   :  { %58 = vmatpush.bf16.msra.mxu0 %v49_v8  ;;  %140 = vmatpush.bf16.msra.mxu1 %v49_v8 }
  0x10   :  { %59 = vmatpush.bf16.msra.mxu0 %v48_v11  ;;  %141 = vmatpush.bf16.msra.mxu1 %v48_v11 }
  0x14   :  { %60 = vmatpush.bf16.msra.mxu0 %v47_v14  ;;  %142 = vmatpush.bf16.msra.mxu1 %v47_v14 }
  0x18   :  { %61 = vmatpush.bf16.msra.mxu0 %v46_v17  ;;  %143 = vmatpush.bf16.msra.mxu1 %v46_v17 }
  0x1c   :  { %62 = vmatpush.bf16.msra.mxu0 %v45_v20  ;;  %144 = vmatpush.bf16.msra.mxu1 %v45_v20 }
  0x20   :  { %63 = vmatpush.bf16.msra.mxu0 %v44_v24  ;;  %145 = vmatpush.bf16.msra.mxu1 %v44_v24 }
  0x23   :  { %64 = vmatmul.bf16.vlgmr.msra.gmra.mxu0 %v42_v28  ;;  %69 = vmatmul.bf16.vlgmr.msra.gmra.mxu1 %v43_v29 }
  0xa0   :  { %v65_v31 = vpop.f32.mrf.mxu0  ;;  %v70_v32 = vpop.f32.mrf.mxu1 }
  0xa1   :  { %v66_v34 = vadd.f32 %v147_v33, %v65_v31  ;;  %v71_v37 = vadd.f32 %v147_v33, %v70_v32 }
  0xa3   :  { %v115_v39 = vmul.f32 %v66_v34, %v66_v34  ;;  %v117_v43 = vmul.f32 %v71_v37, %v71_v37 }
  0xa8   :  { %v67_v35 = vpop.f32.mrf.mxu0  ;;  %v72_v36 = vpop.f32.mrf.mxu1 }
  0xa9   :  { %v68_v38 = vadd.f32 %v147_v33, %v67_v35  ;;  %v73_v42 = vadd.f32 %v147_v33, %v72_v36 }
  0xab   :  { %v103_v40 = vadd.f32 %v68_v38, %v66_v34  ;;  %v116_v41 = vmul.f32 %v68_v38, %v68_v38  ;;  %v118_v47 = vmul.f32 %v73_v42, %v73_v42 }
  0xad   :  { %v119_v44 = vadd.f32 %v116_v41, %v115_v39  ;;  %v104_v45 = vadd.f32 %v103_v40, %v71_v37 }
  0xaf   :  { %v105_v46 = vadd.f32 %v104_v45, %v73_v42  ;;  %v120_v48 = vadd.f32 %v119_v44, %v117_v43 }
  0xb1   :  { %v106_v49 = vrot.slane %v105_v46, 4  ;;  %v121_v50 = vadd.f32 %v120_v48, %v118_v47 }
  0xb3   :  { %v107_v51 = vadd.f32 %v106_v49, %v105_v46  ;;  %v122_v52 = vrot.slane %v121_v50, 4 }
  0xb5   :  { %v108_v53 = vrot.slane %v107_v51, 2  ;;  %v123_v54 = vadd.f32 %v122_v52, %v121_v50 }
  0xb7   :  { %v109_v55 = vadd.f32 %v108_v53, %v107_v51  ;;  %v124_v56 = vrot.slane %v123_v54, 2 }
  0xb9   :  { %v110_v57 = vrot.slane %v109_v55, 1  ;;  %v125_v58 = vadd.f32 %v124_v56, %v123_v54 }
  0xbb   :  { %v111_v60 = vadd.f32 %v110_v57, %v109_v55  ;;  %v126_v61 = vrot.slane %v125_v58, 1 }
  0xbd   :  { %v112_v63 = vadd.f32 %v111_v60, %v102_v59  ;;  %v127_v0 = vadd.f32 %v126_v61, %v125_v58 }
  0xbf   :  { %113 = vst [vmem:[%s258_s3] sm:$0x1] %v112_v63  ;;  %v128_v1 = vadd.f32 %v127_v0, %v114_v62 }
  0xc1   :  { %129 = vst [vmem:[%s259_s4] sm:$0x1] %v128_v1 }

// kernel: cat_encoder_forward.12
= control target key start
LH: loop header
LB: loop body
LE: loop exit
PB: predicated region body
PF: predicated region fallthrough
CT: control target
= control target key end

     0   :  { %s231_s1 = inlined_call_operand.vmem [shape: f32[128,128], index: 1, kind: input, shape index: {}]   ;;  %s232_s2 = inlined_call_operand.vmem [shape: f32[1,128], index: 2, kind: input, shape index: {}]   ;;  %s233_s3 = inlined_call_operand.vmem [shape: f32[1,128], index: 3, kind: input, shape index: {}]   ;;  %s234_s4 = inlined_call_operand.vmem [shape: f32[1,128], index: 4, kind: input, shape index: {}]   ;;  %s235_s0 = inlined_call_operand.vmem [shape: f32[32,128], index: 0, kind: input, shape index: {}]   ;;  %s236_s5 = inlined_call_operand.vmem [shape: f32[32,128], index: 5, kind: output, shape index: {}]  }
   0x1   :  { %v38_v0 = vld [vmem:[%s231_s1 + $0x70] sm:$0xff]  ;;  %v39_v1 = vld [vmem:[%s231_s1 + $0x78] sm:$0xff]  ;;  %v36_v2 = vld [vmem:[%s231_s1 + $0x60] sm:$0xff] }
   0x2   :  { %v49_v3 = vpack.c.bf16 %v39_v1, %v38_v0  ;;  %v37_v4 = vld [vmem:[%s231_s1 + $0x68] sm:$0xff]  ;;  %v34_v6 = vld [vmem:[%s231_s1 + $0x50] sm:$0xff]  ;;  %v35_v7 = vld [vmem:[%s231_s1 + $0x58] sm:$0xff] }
   0x3   :  { %v48_v5 = vpack.c.bf16 %v37_v4, %v36_v2  ;;  %v47_v8 = vpack.c.bf16 %v35_v7, %v34_v6  ;;  %v32_v9 = vld [vmem:[%s231_s1 + $0x40] sm:$0xff]  ;;  %v33_v10 = vld [vmem:[%s231_s1 + $0x48] sm:$0xff]  ;;  %v30_v12 = vld [vmem:[%s231_s1 + $0x30] sm:$0xff] }
   0x4   :  { %54 = vmatpush.bf16.msra.mxu0 %v49_v3  ;;  %109 = vmatpush.bf16.msra.mxu1 %v49_v3  ;;  %v46_v11 = vpack.c.bf16 %v33_v10, %v32_v9  ;;  %v31_v13 = vld [vmem:[%s231_s1 + $0x38] sm:$0xff]  ;;  %v28_v15 = vld [vmem:[%s231_s1 + $0x20] sm:$0xff]  ;;  %v29_v16 = vld [vmem:[%s231_s1 + $0x28] sm:$0xff] }
   0x5   :  { %v45_v14 = vpack.c.bf16 %v31_v13, %v30_v12  ;;  %v44_v17 = vpack.c.bf16 %v29_v16, %v28_v15  ;;  %v26_v18 = vld [vmem:[%s231_s1 + $0x10] sm:$0xff]  ;;  %v27_v19 = vld [vmem:[%s231_s1 + $0x18] sm:$0xff]  ;;  %v24_v21 = vld [vmem:[%s231_s1] sm:$0xff] }
   0x6   :  { %v43_v20 = vpack.c.bf16 %v27_v19, %v26_v18  ;;  %v25_v22 = vld [vmem:[%s231_s1 + $0x8] sm:$0xff]  ;;  %v20_v23 = vld [vmem:[%s235_s0] sm:$0xff]  ;;  %v22_v26 = vld [vmem:[%s235_s0 + $0x10] sm:$0xff] }
   0x7   :  { %v42_v24 = vpack.c.bf16 %v25_v22, %v24_v21  ;;  %v21_v25 = vld [vmem:[%s235_s0 + $0x8] sm:$0xff]  ;;  %v23_v27 = vld [vmem:[%s235_s0 + $0x18] sm:$0xff]  ;;  %v117_v30 = vld [vmem:[%s232_s2] ss:$0 sm:$0xff] }
   0x8   :  { %55 = vmatpush.bf16.msra.mxu0 %v48_v5  ;;  %110 = vmatpush.bf16.msra.mxu1 %v48_v5  ;;  %v40_v28 = vpack.c.bf16 %v21_v25, %v20_v23  ;;  %v41_v29 = vpack.c.bf16 %v23_v27, %v22_v26  ;;  %v118_v31 = vld [vmem:[%s233_s3] ss:$0 sm:$0xff] }
   0x9   :  { %v119_v35 = vld [vmem:[%s234_s4] ss:$0 sm:$0xff] }
   0xc   :  { %56 = vmatpush.bf16.msra.mxu0 %v47_v8  ;;  %111 = vmatpush.bf16.msra.mxu1 %v47_v8 }
  0x10   :  { %57 = vmatpush.bf16.msra.mxu0 %v46_v11  ;;  %112 = vmatpush.bf16.msra.mxu1 %v46_v11 }
  0x14   :  { %58 = vmatpush.bf16.msra.mxu0 %v45_v14  ;;  %113 = vmatpush.bf16.msra.mxu1 %v45_v14 }
  0x18   :  { %59 = vmatpush.bf16.msra.mxu0 %v44_v17  ;;  %114 = vmatpush.bf16.msra.mxu1 %v44_v17 }
  0x1c   :  { %60 = vmatpush.bf16.msra.mxu0 %v43_v20  ;;  %115 = vmatpush.bf16.msra.mxu1 %v43_v20 }
  0x20   :  { %61 = vmatpush.bf16.msra.mxu0 %v42_v24  ;;  %116 = vmatpush.bf16.msra.mxu1 %v42_v24 }
  0x23   :  { %62 = vmatmul.bf16.vlgmr.msra.gmra.mxu0 %v40_v28  ;;  %67 = vmatmul.bf16.vlgmr.msra.gmra.mxu1 %v41_v29 }
  0xa0   :  { %v63_v32 = vpop.f32.mrf.mxu0  ;;  %v68_v33 = vpop.f32.mrf.mxu1 }
  0xa1   :  { %v64_v34 = vadd.f32 %v117_v30, %v63_v32  ;;  %v69_v36 = vadd.f32 %v117_v30, %v68_v33 }
  0xa3   :  { %v77_v37 = vmul.f32 %v118_v31, %v64_v34  ;;  %v79_v38 = vmul.f32 %v118_v31, %v69_v36 }
  0xa5   :  { %v85_v39 = vadd.f32 %v119_v35, %v77_v37  ;;  %v87_v40 = vadd.f32 %v119_v35, %v79_v38 }
  0xa7   :  { %vm89_vm0 = vcmp.ge.f32.partialorder %v85_v39, 0.0  ;;  %v93_v41 = vmul.f32 0.2, %v85_v39  ;;  %vm91_vm1 = vcmp.ge.f32.partialorder %v87_v40, 0.0  ;;  %v95_v42 = vmul.f32 0.2, %v87_v40 }
  0xa8   :  { %v65_v43 = vpop.f32.mrf.mxu0  ;;  %v70_v44 = vpop.f32.mrf.mxu1 }
  0xa9   :  { %v97_v45 = vsel %vm89_vm0, %v85_v39, %v93_v41  ;;  %v99_v46 = vsel %vm91_vm1, %v87_v40, %v95_v42  ;;  %v66_v47 = vadd.f32 %v117_v30, %v65_v43  ;;  %v71_v48 = vadd.f32 %v117_v30, %v70_v44 }
  0xaa   :  { %101 = vst [vmem:[%s236_s5] sm:$0xff] %v97_v45 }
  0xab   :  { %103 = vst [vmem:[%s236_s5 + $0x10] sm:$0xff] %v99_v46  ;;  %v78_v49 = vmul.f32 %v118_v31, %v66_v47  ;;  %v80_v50 = vmul.f32 %v118_v31, %v71_v48 }
  0xad   :  { %v86_v51 = vadd.f32 %v119_v35, %v78_v49  ;;  %v88_v52 = vadd.f32 %v119_v35, %v80_v50 }
  0xaf   :  { %vm90_vm2 = vcmp.ge.f32.partialorder %v86_v51, 0.0  ;;  %v94_v53 = vmul.f32 0.2, %v86_v51  ;;  %vm92_vm3 = vcmp.ge.f32.partialorder %v88_v52, 0.0  ;;  %v96_v54 = vmul.f32 0.2, %v88_v52 }
  0xb1   :  { %v98_v55 = vsel %vm90_vm2, %v86_v51, %v94_v53  ;;  %v100_v56 = vsel %vm92_vm3, %v88_v52, %v96_v54 }
  0xb2   :  { %102 = vst [vmem:[%s236_s5 + $0x8] sm:$0xff] %v98_v55 }
  0xb3   :  { %104 = vst [vmem:[%s236_s5 + $0x18] sm:$0xff] %v100_v56 }

// kernel: cat_encoder_forward.13
= control target key start
LH: loop header
LB: loop body
LE: loop exit
PB: predicated region body
PF: predicated region fallthrough
CT: control target
= control target key end

     0   :  { %v205_v60 = vmov 0.0   ;;  %s372_s1 = inlined_call_operand.vmem [shape: f32[256,128], index: 1, kind: input, shape index: {}]   ;;  %s373_s2 = inlined_call_operand.vmem [shape: f32[1,128], index: 2, kind: input, shape index: {}]   ;;  %s374_s0 = inlined_call_operand.vmem [shape: f32[32,256], index: 0, kind: input, shape index: {}]   ;;  %s375_s3 = inlined_call_operand.vmem [shape: f32[1,128], index: 3, kind: output, shape index: {0}]   ;;  %s376_s4 = inlined_call_operand.vmem [shape: f32[1,128], index: 4, kind: output, shape index: {1}]  }
   0x1   :  { %v44_v0 = vld [vmem:[%s372_s1 + $0x70] sm:$0xff]  ;;  %v45_v1 = vld [vmem:[%s372_s1 + $0x78] sm:$0xff]  ;;  %v42_v5 = vld [vmem:[%s372_s1 + $0x60] sm:$0xff]  ;;  %20 = vst [vmem:[%s375_s3] sm:$0x1] %v205_v60 }
   0x2   :  { %v60_v2 = vld [vmem:[%s372_s1 + $0xf0] sm:$0xff]  ;;  %v73_v3 = vpack.c.bf16 %v45_v1, %v44_v0  ;;  %v61_v4 = vld [vmem:[%s372_s1 + $0xf8] sm:$0xff]  ;;  %v43_v6 = vld [vmem:[%s372_s1 + $0x68] sm:$0xff]  ;;  %21 = vst [vmem:[%s376_s4] sm:$0x1] %v205_v60 }
   0x3   :  { %v81_v7 = vpack.c.bf16 %v61_v4, %v60_v2  ;;  %v58_v8 = vld [vmem:[%s372_s1 + $0xe0] sm:$0xff]  ;;  %v59_v9 = vld [vmem:[%s372_s1 + $0xe8] sm:$0xff]  ;;  %v72_v10 = vpack.c.bf16 %v43_v6, %v42_v5  ;;  %v40_v12 = vld [vmem:[%s372_s1 + $0x50] sm:$0xff] }
   0x4   :  { %86 = vmatpush.bf16.msra.mxu0 %v73_v3  ;;  %187 = vmatpush.bf16.msra.mxu2 %v73_v3  ;;  %v80_v11 = vpack.c.bf16 %v59_v9, %v58_v8  ;;  %v41_v13 = vld [vmem:[%s372_s1 + $0x58] sm:$0xff]  ;;  %v56_v14 = vld [vmem:[%s372_s1 + $0xd0] sm:$0xff]  ;;  %v38_v18 = vld [vmem:[%s372_s1 + $0x40] sm:$0xff] }
   0x5   :  { %105 = vmatpush.bf16.msra.mxu1 %v81_v7  ;;  %195 = vmatpush.bf16.msra.mxu3 %v81_v7  ;;  %v57_v15 = vld [vmem:[%s372_s1 + $0xd8] sm:$0xff]  ;;  %v71_v16 = vpack.c.bf16 %v41_v13, %v40_v12  ;;  %v39_v19 = vld [vmem:[%s372_s1 + $0x48] sm:$0xff]  ;;  %v54_v20 = vld [vmem:[%s372_s1 + $0xc0] sm:$0xff] }
   0x6   :  { %v79_v17 = vpack.c.bf16 %v57_v15, %v56_v14  ;;  %v55_v21 = vld [vmem:[%s372_s1 + $0xc8] sm:$0xff]  ;;  %v70_v22 = vpack.c.bf16 %v39_v19, %v38_v18  ;;  %v36_v24 = vld [vmem:[%s372_s1 + $0x30] sm:$0xff]  ;;  %v37_v25 = vld [vmem:[%s372_s1 + $0x38] sm:$0xff] }
   0x7   :  { %v78_v23 = vpack.c.bf16 %v55_v21, %v54_v20  ;;  %v52_v26 = vld [vmem:[%s372_s1 + $0xb0] sm:$0xff]  ;;  %v53_v27 = vld [vmem:[%s372_s1 + $0xb8] sm:$0xff]  ;;  %v69_v28 = vpack.c.bf16 %v37_v25, %v36_v24  ;;  %v34_v30 = vld [vmem:[%s372_s1 + $0x20] sm:$0xff] }
   0x8   :  { %87 = vmatpush.bf16.msra.mxu0 %v72_v10  ;;  %188 = vmatpush.bf16.msra.mxu2 %v72_v10  ;;  %v77_v29 = vpack.c.bf16 %v53_v27, %v52_v26  ;;  %v35_v31 = vld [vmem:[%s372_s1 + $0x28] sm:$0xff]  ;;  %v50_v32 = vld [vmem:[%s372_s1 + $0xa0] sm:$0xff]  ;;  %v32_v36 = vld [vmem:[%s372_s1 + $0x10] sm:$0xff] }
   0x9   :  { %106 = vmatpush.bf16.msra.mxu1 %v80_v11  ;;  %196 = vmatpush.bf16.msra.mxu3 %v80_v11  ;;  %v51_v33 = vld [vmem:[%s372_s1 + $0xa8] sm:$0xff]  ;;  %v68_v34 = vpack.c.bf16 %v35_v31, %v34_v30  ;;  %v33_v37 = vld [vmem:[%s372_s1 + $0x18] sm:$0xff]  ;;  %v48_v38 = vld [vmem:[%s372_s1 + $0x90] sm:$0xff] }
   0xa   :  { %v76_v35 = vpack.c.bf16 %v51_v33, %v50_v32  ;;  %v49_v39 = vld [vmem:[%s372_s1 + $0x98] sm:$0xff]  ;;  %v67_v40 = vpack.c.bf16 %v33_v37, %v32_v36  ;;  %v30_v42 = vld [vmem:[%s372_s1] sm:$0xff]  ;;  %v31_v43 = vld [vmem:[%s372_s1 + $0x8] sm:$0xff] }
   0xb   :  { %v75_v41 = vpack.c.bf16 %v49_v39, %v48_v38  ;;  %v46_v44 = vld [vmem:[%s372_s1 + $0x80] sm:$0xff]  ;;  %v47_v45 = vld [vmem:[%s372_s1 + $0x88] sm:$0xff]  ;;  %v24_v47 = vld [vmem:[%s374_s0 + $0x10] sm:$0xff]  ;;  %v66_v48 = vpack.c.bf16 %v31_v43, %v30_v42 }
   0xc   :  { %88 = vmatpush.bf16.msra.mxu0 %v71_v16  ;;  %189 = vmatpush.bf16.msra.mxu2 %v71_v16  ;;  %v22_v46 = vld [vmem:[%s374_s0] sm:$0xff]  ;;  %v28_v50 = vld [vmem:[%s374_s0 + $0x30] sm:$0xff]  ;;  %v23_v51 = vld [vmem:[%s374_s0 + $0x8] sm:$0xff]  ;;  %v74_v52 = vpack.c.bf16 %v47_v45, %v46_v44 }
   0xd   :  { %107 = vmatpush.bf16.msra.mxu1 %v79_v17  ;;  %197 = vmatpush.bf16.msra.mxu3 %v79_v17  ;;  %v26_v49 = vld [vmem:[%s374_s0 + $0x20] sm:$0xff]  ;;  %v25_v53 = vld [vmem:[%s374_s0 + $0x18] sm:$0xff]  ;;  %v27_v54 = vld [vmem:[%s374_s0 + $0x28] sm:$0xff]  ;;  %v62_v56 = vpack.c.bf16 %v24_v47, %v22_v46 }
   0xe   :  { %v29_v55 = vld [vmem:[%s374_s0 + $0x38] sm:$0xff]  ;;  %v64_v57 = vpack.c.bf16 %v28_v50, %v26_v49  ;;  %v63_v58 = vpack.c.bf16 %v25_v53, %v23_v51  ;;  %v204_v62 = vld [vmem:[%s373_s2] ss:$0 sm:$0xff] }
   0xf   :  { %v65_v59 = vpack.c.bf16 %v29_v55, %v27_v54  ;;  %v151_v33 = vld [vmem:[%s375_s3] sm:$0x1] }
  0x10   :  { %89 = vmatpush.bf16.msra.mxu0 %v70_v22  ;;  %190 = vmatpush.bf16.msra.mxu2 %v70_v22  ;;  %v163_v36 = vld [vmem:[%s376_s4] sm:$0x1] }
  0x11   :  { %108 = vmatpush.bf16.msra.mxu1 %v78_v23  ;;  %198 = vmatpush.bf16.msra.mxu3 %v78_v23 }
  0x14   :  { %90 = vmatpush.bf16.msra.mxu0 %v69_v28  ;;  %191 = vmatpush.bf16.msra.mxu2 %v69_v28 }
  0x15   :  { %109 = vmatpush.bf16.msra.mxu1 %v77_v29  ;;  %199 = vmatpush.bf16.msra.mxu3 %v77_v29 }
  0x18   :  { %91 = vmatpush.bf16.msra.mxu0 %v68_v34  ;;  %192 = vmatpush.bf16.msra.mxu2 %v68_v34 }
  0x19   :  { %110 = vmatpush.bf16.msra.mxu1 %v76_v35  ;;  %200 = vmatpush.bf16.msra.mxu3 %v76_v35 }
  0x1c   :  { %92 = vmatpush.bf16.msra.mxu0 %v67_v40  ;;  %193 = vmatpush.bf16.msra.mxu2 %v67_v40 }
  0x1d   :  { %111 = vmatpush.bf16.msra.mxu1 %v75_v41  ;;  %201 = vmatpush.bf16.msra.mxu3 %v75_v41 }
  0x20   :  { %93 = vmatpush.bf16.msra.mxu0 %v66_v48  ;;  %194 = vmatpush.bf16.msra.mxu2 %v66_v48 }
  0x21   :  { %112 = vmatpush.bf16.msra.mxu1 %v74_v52  ;;  %202 = vmatpush.bf16.msra.mxu3 %v74_v52 }
  0x23   :  { %94 = vmatmul.bf16.vlgmr.msra.gmra.mxu0 %v62_v56  ;;  %99 = vmatmul.bf16.vlgmr.msra.gmra.mxu2 %v64_v57 }
  0x24   :  { %113 = vmatmul.bf16.vlgmr.msra.gmra.mxu1 %v63_v58  ;;  %118 = vmatmul.bf16.vlgmr.msra.gmra.mxu3 %v65_v59 }
  0xa0   :  { %v95_v61 = vpop.f32.mrf.mxu0 }
  0xa1   :  { %v114_v63 = vpop.f32.mrf.mxu1  ;;  %v96_v0 = vadd.f32 %v204_v62, %v95_v61 }
  0xa3   :  { %v115_v4 = vadd.f32 %v114_v63, %v96_v0 }
  0xa5   :  { %v164_v9 = vmul.f32 %v115_v4, %v115_v4 }
  0xa6   :  { %v100_v1 = vpop.f32.mrf.mxu2 }
  0xa7   :  { %v119_v2 = vpop.f32.mrf.mxu3  ;;  %v101_v5 = vadd.f32 %v204_v62, %v100_v1 }
  0xa8   :  { %v97_v3 = vpop.f32.mrf.mxu0 }
  0xa9   :  { %v98_v6 = vadd.f32 %v204_v62, %v97_v3  ;;  %v116_v7 = vpop.f32.mrf.mxu1  ;;  %v120_v10 = vadd.f32 %v119_v2, %v101_v5 }
  0xab   :  { %v117_v8 = vadd.f32 %v116_v7, %v98_v6  ;;  %v166_v17 = vmul.f32 %v120_v10, %v120_v10 }
  0xad   :  { %v152_v11 = vadd.f32 %v117_v8, %v115_v4  ;;  %v165_v12 = vmul.f32 %v117_v8, %v117_v8 }
  0xae   :  { %v102_v13 = vpop.f32.mrf.mxu2 }
  0xaf   :  { %v168_v14 = vadd.f32 %v165_v12, %v164_v9  ;;  %v103_v15 = vadd.f32 %v204_v62, %v102_v13  ;;  %v121_v16 = vpop.f32.mrf.mxu3  ;;  %v153_v19 = vadd.f32 %v152_v11, %v120_v10 }
  0xb1   :  { %v122_v18 = vadd.f32 %v121_v16, %v103_v15  ;;  %v169_v22 = vadd.f32 %v168_v14, %v166_v17 }
  0xb3   :  { %v154_v20 = vadd.f32 %v153_v19, %v122_v18  ;;  %v167_v21 = vmul.f32 %v122_v18, %v122_v18 }
  0xb5   :  { %v155_v23 = vrot.slane %v154_v20, 4  ;;  %v170_v24 = vadd.f32 %v169_v22, %v167_v21 }
  0xb7   :  { %v156_v25 = vadd.f32 %v155_v23, %v154_v20  ;;  %v171_v26 = vrot.slane %v170_v24, 4 }
  0xb9   :  { %v157_v27 = vrot.slane %v156_v25, 2  ;;  %v172_v28 = vadd.f32 %v171_v26, %v170_v24 }
  0xbb   :  { %v158_v29 = vadd.f32 %v157_v27, %v156_v25  ;;  %v173_v30 = vrot.slane %v172_v28, 2 }
  0xbd   :  { %v159_v31 = vrot.slane %v158_v29, 1  ;;  %v174_v32 = vadd.f32 %v173_v30, %v172_v28 }
  0xbf   :  { %v160_v34 = vadd.f32 %v159_v31, %v158_v29  ;;  %v175_v35 = vrot.slane %v174_v32, 1 }
  0xc1   :  { %v161_v37 = vadd.f32 %v160_v34, %v151_v33  ;;  %v176_v38 = vadd.f32 %v175_v35, %v174_v32 }
  0xc3   :  { %162 = vst [vmem:[%s375_s3] sm:$0x1] %v161_v37  ;;  %v177_v39 = vadd.f32 %v176_v38, %v163_v36 }
  0xc5   :  { %178 = vst [vmem:[%s376_s4] sm:$0x1] %v177_v39 }

// kernel: cat_encoder_forward.14
= control target key start
LH: loop header
LB: loop body
LE: loop exit
PB: predicated region body
PF: predicated region fallthrough
CT: control target
= control target key end

     0   :  { %s348_s1 = inlined_call_operand.vmem [shape: f32[256,128], index: 1, kind: input, shape index: {}]   ;;  %s349_s2 = inlined_call_operand.vmem [shape: f32[1,128], index: 2, kind: input, shape index: {}]   ;;  %s350_s0 = inlined_call_operand.vmem [shape: f32[32,256], index: 0, kind: input, shape index: {}]   ;;  %s351_s3 = inlined_call_operand.vmem [shape: f32[1,128], index: 3, kind: input, shape index: {}]   ;;  %s352_s4 = inlined_call_operand.vmem [shape: f32[1,128], index: 4, kind: input, shape index: {}]   ;;  %s353_s5 = inlined_call_operand.vmem [shape: f32[32,128], index: 5, kind: output, shape index: {}]  }
   0x1   :  { %v42_v0 = vld [vmem:[%s348_s1 + $0x70] sm:$0xff]  ;;  %v43_v1 = vld [vmem:[%s348_s1 + $0x78] sm:$0xff]  ;;  %v40_v5 = vld [vmem:[%s348_s1 + $0x60] sm:$0xff] }
   0x2   :  { %v58_v2 = vld [vmem:[%s348_s1 + $0xf0] sm:$0xff]  ;;  %v71_v3 = vpack.c.bf16 %v43_v1, %v42_v0  ;;  %v59_v4 = vld [vmem:[%s348_s1 + $0xf8] sm:$0xff]  ;;  %v41_v6 = vld [vmem:[%s348_s1 + $0x68] sm:$0xff] }
   0x3   :  { %v79_v7 = vpack.c.bf16 %v59_v4, %v58_v2  ;;  %v56_v8 = vld [vmem:[%s348_s1 + $0xe0] sm:$0xff]  ;;  %v57_v9 = vld [vmem:[%s348_s1 + $0xe8] sm:$0xff]  ;;  %v70_v10 = vpack.c.bf16 %v41_v6, %v40_v5  ;;  %v38_v12 = vld [vmem:[%s348_s1 + $0x50] sm:$0xff] }
   0x4   :  { %84 = vmatpush.bf16.msra.mxu0 %v71_v3  ;;  %158 = vmatpush.bf16.msra.mxu2 %v71_v3  ;;  %v78_v11 = vpack.c.bf16 %v57_v9, %v56_v8  ;;  %v39_v13 = vld [vmem:[%s348_s1 + $0x58] sm:$0xff]  ;;  %v54_v14 = vld [vmem:[%s348_s1 + $0xd0] sm:$0xff]  ;;  %v36_v18 = vld [vmem:[%s348_s1 + $0x40] sm:$0xff] }
   0x5   :  { %103 = vmatpush.bf16.msra.mxu1 %v79_v7  ;;  %166 = vmatpush.bf16.msra.mxu3 %v79_v7  ;;  %v55_v15 = vld [vmem:[%s348_s1 + $0xd8] sm:$0xff]  ;;  %v69_v16 = vpack.c.bf16 %v39_v13, %v38_v12  ;;  %v37_v19 = vld [vmem:[%s348_s1 + $0x48] sm:$0xff]  ;;  %v52_v20 = vld [vmem:[%s348_s1 + $0xc0] sm:$0xff] }
   0x6   :  { %v77_v17 = vpack.c.bf16 %v55_v15, %v54_v14  ;;  %v53_v21 = vld [vmem:[%s348_s1 + $0xc8] sm:$0xff]  ;;  %v68_v22 = vpack.c.bf16 %v37_v19, %v36_v18  ;;  %v34_v24 = vld [vmem:[%s348_s1 + $0x30] sm:$0xff]  ;;  %v35_v25 = vld [vmem:[%s348_s1 + $0x38] sm:$0xff] }
   0x7   :  { %v76_v23 = vpack.c.bf16 %v53_v21, %v52_v20  ;;  %v50_v26 = vld [vmem:[%s348_s1 + $0xb0] sm:$0xff]  ;;  %v51_v27 = vld [vmem:[%s348_s1 + $0xb8] sm:$0xff]  ;;  %v67_v28 = vpack.c.bf16 %v35_v25, %v34_v24  ;;  %v32_v30 = vld [vmem:[%s348_s1 + $0x20] sm:$0xff] }
   0x8   :  { %85 = vmatpush.bf16.msra.mxu0 %v70_v10  ;;  %159 = vmatpush.bf16.msra.mxu2 %v70_v10  ;;  %v75_v29 = vpack.c.bf16 %v51_v27, %v50_v26  ;;  %v33_v31 = vld [vmem:[%s348_s1 + $0x28] sm:$0xff]  ;;  %v48_v32 = vld [vmem:[%s348_s1 + $0xa0] sm:$0xff]  ;;  %v30_v36 = vld [vmem:[%s348_s1 + $0x10] sm:$0xff] }
   0x9   :  { %104 = vmatpush.bf16.msra.mxu1 %v78_v11  ;;  %167 = vmatpush.bf16.msra.mxu3 %v78_v11  ;;  %v49_v33 = vld [vmem:[%s348_s1 + $0xa8] sm:$0xff]  ;;  %v66_v34 = vpack.c.bf16 %v33_v31, %v32_v30  ;;  %v31_v37 = vld [vmem:[%s348_s1 + $0x18] sm:$0xff]  ;;  %v46_v38 = vld [vmem:[%s348_s1 + $0x90] sm:$0xff] }
   0xa   :  { %v74_v35 = vpack.c.bf16 %v49_v33, %v48_v32  ;;  %v47_v39 = vld [vmem:[%s348_s1 + $0x98] sm:$0xff]  ;;  %v65_v40 = vpack.c.bf16 %v31_v37, %v30_v36  ;;  %v28_v42 = vld [vmem:[%s348_s1] sm:$0xff]  ;;  %v29_v43 = vld [vmem:[%s348_s1 + $0x8] sm:$0xff] }
   0xb   :  { %v73_v41 = vpack.c.bf16 %v47_v39, %v46_v38  ;;  %v44_v44 = vld [vmem:[%s348_s1 + $0x80] sm:$0xff]  ;;  %v45_v45 = vld [vmem:[%s348_s1 + $0x88] sm:$0xff]  ;;  %v22_v47 = vld [vmem:[%s350_s0 + $0x10] sm:$0xff]  ;;  %v64_v48 = vpack.c.bf16 %v29_v43, %v28_v42 }
   0xc   :  { %86 = vmatpush.bf16.msra.mxu0 %v69_v16  ;;  %160 = vmatpush.bf16.msra.mxu2 %v69_v16  ;;  %v20_v46 = vld [vmem:[%s350_s0] sm:$0xff]  ;;  %v26_v50 = vld [vmem:[%s350_s0 + $0x30] sm:$0xff]  ;;  %v21_v51 = vld [vmem:[%s350_s0 + $0x8] sm:$0xff]  ;;  %v72_v52 = vpack.c.bf16 %v45_v45, %v44_v44 }
   0xd   :  { %105 = vmatpush.bf16.msra.mxu1 %v77_v17  ;;  %168 = vmatpush.bf16.msra.mxu3 %v77_v17  ;;  %v24_v49 = vld [vmem:[%s350_s0 + $0x20] sm:$0xff]  ;;  %v23_v53 = vld [vmem:[%s350_s0 + $0x18] sm:$0xff]  ;;  %v25_v54 = vld [vmem:[%s350_s0 + $0x28] sm:$0xff]  ;;  %v60_v56 = vpack.c.bf16 %v22_v47, %v20_v46 }
   0xe   :  { %v27_v55 = vld [vmem:[%s350_s0 + $0x38] sm:$0xff]  ;;  %v62_v57 = vpack.c.bf16 %v26_v50, %v24_v49  ;;  %v61_v58 = vpack.c.bf16 %v23_v53, %v21_v51  ;;  %v174_v60 = vld [vmem:[%s349_s2] ss:$0 sm:$0xff] }
   0xf   :  { %v63_v59 = vpack.c.bf16 %v27_v55, %v25_v54  ;;  %v175_v0 = vld [vmem:[%s351_s3] ss:$0 sm:$0xff] }
  0x10   :  { %87 = vmatpush.bf16.msra.mxu0 %v68_v22  ;;  %161 = vmatpush.bf16.msra.mxu2 %v68_v22  ;;  %v176_v2 = vld [vmem:[%s352_s4] ss:$0 sm:$0xff] }
  0x11   :  { %106 = vmatpush.bf16.msra.mxu1 %v76_v23  ;;  %169 = vmatpush.bf16.msra.mxu3 %v76_v23 }
  0x14   :  { %88 = vmatpush.bf16.msra.mxu0 %v67_v28  ;;  %162 = vmatpush.bf16.msra.mxu2 %v67_v28 }
  0x15   :  { %107 = vmatpush.bf16.msra.mxu1 %v75_v29  ;;  %170 = vmatpush.bf16.msra.mxu3 %v75_v29 }
  0x18   :  { %89 = vmatpush.bf16.msra.mxu0 %v66_v34  ;;  %163 = vmatpush.bf16.msra.mxu2 %v66_v34 }
  0x19   :  { %108 = vmatpush.bf16.msra.mxu1 %v74_v35  ;;  %171 = vmatpush.bf16.msra.mxu3 %v74_v35 }
  0x1c   :  { %90 = vmatpush.bf16.msra.mxu0 %v65_v40  ;;  %164 = vmatpush.bf16.msra.mxu2 %v65_v40 }
  0x1d   :  { %109 = vmatpush.bf16.msra.mxu1 %v73_v41  ;;  %172 = vmatpush.bf16.msra.mxu3 %v73_v41 }
  0x20   :  { %91 = vmatpush.bf16.msra.mxu0 %v64_v48  ;;  %165 = vmatpush.bf16.msra.mxu2 %v64_v48 }
  0x21   :  { %110 = vmatpush.bf16.msra.mxu1 %v72_v52  ;;  %173 = vmatpush.bf16.msra.mxu3 %v72_v52 }
  0x23   :  { %92 = vmatmul.bf16.vlgmr.msra.gmra.mxu0 %v60_v56  ;;  %97 = vmatmul.bf16.vlgmr.msra.gmra.mxu2 %v62_v57 }
  0x24   :  { %111 = vmatmul.bf16.vlgmr.msra.gmra.mxu1 %v61_v58  ;;  %116 = vmatmul.bf16.vlgmr.msra.gmra.mxu3 %v63_v59 }
  0xa0   :  { %v93_v61 = vpop.f32.mrf.mxu0 }
  0xa1   :  { %v94_v62 = vadd.f32 %v174_v60, %v93_v61  ;;  %v112_v63 = vpop.f32.mrf.mxu1 }
  0xa3   :  { %v113_v1 = vadd.f32 %v112_v63, %v94_v62 }
  0xa5   :  { %v126_v3 = vmul.f32 %v175_v0, %v113_v1 }
  0xa6   :  { %v98_v4 = vpop.f32.mrf.mxu2 }
  0xa7   :  { %v134_v5 = vadd.f32 %v176_v2, %v126_v3  ;;  %v99_v6 = vadd.f32 %v174_v60, %v98_v4  ;;  %v117_v7 = vpop.f32.mrf.mxu3 }
  0xa8   :  { %v95_v8 = vpop.f32.mrf.mxu0 }
  0xa9   :  { %vm138_vm0 = vcmp.ge.f32.partialorder %v134_v5, 0.0  ;;  %v142_v9 = vmul.f32 0.2, %v134_v5  ;;  %v118_v10 = vadd.f32 %v117_v7, %v99_v6  ;;  %v96_v11 = vadd.f32 %v174_v60, %v95_v8  ;;  %v114_v12 = vpop.f32.mrf.mxu1 }
  0xab   :  { %v146_v13 = vsel %vm138_vm0, %v134_v5, %v142_v9  ;;  %v128_v14 = vmul.f32 %v175_v0, %v118_v10  ;;  %v115_v15 = vadd.f32 %v114_v12, %v96_v11 }
  0xac   :  { %150 = vst [vmem:[%s353_s5] sm:$0xff] %v146_v13 }
  0xad   :  { %v136_v16 = vadd.f32 %v176_v2, %v128_v14  ;;  %v127_v17 = vmul.f32 %v175_v0, %v115_v15 }
  0xae   :  { %v100_v18 = vpop.f32.mrf.mxu2 }
  0xaf   :  { %vm140_vm1 = vcmp.ge.f32.partialorder %v136_v16, 0.0  ;;  %v144_v19 = vmul.f32 0.2, %v136_v16  ;;  %v135_v20 = vadd.f32 %v176_v2, %v127_v17  ;;  %v101_v21 = vadd.f32 %v174_v60, %v100_v18  ;;  %v119_v22 = vpop.f32.mrf.mxu3 }
  0xb1   :  { %v148_v23 = vsel %vm140_vm1, %v136_v16, %v144_v19  ;;  %vm139_vm2 = vcmp.ge.f32.partialorder %v135_v20, 0.0  ;;  %v143_v24 = vmul.f32 0.2, %v135_v20  ;;  %v120_v25 = vadd.f32 %v119_v22, %v101_v21 }
  0xb2   :  { %152 = vst [vmem:[%s353_s5 + $0x10] sm:$0xff] %v148_v23 }
  0xb3   :  { %v147_v26 = vsel %vm139_vm2, %v135_v20, %v143_v24  ;;  %v129_v27 = vmul.f32 %v175_v0, %v120_v25 }
  0xb4   :  { %151 = vst [vmem:[%s353_s5 + $0x8] sm:$0xff] %v147_v26 }
  0xb5   :  { %v137_v28 = vadd.f32 %v176_v2, %v129_v27 }
  0xb7   :  { %vm141_vm3 = vcmp.ge.f32.partialorder %v137_v28, 0.0  ;;  %v145_v29 = vmul.f32 0.2, %v137_v28 }
  0xb9   :  { %v149_v30 = vsel %vm141_vm3, %v137_v28, %v145_v29 }
  0xba   :  { %153 = vst [vmem:[%s353_s5 + $0x18] sm:$0xff] %v149_v30 }

// kernel: cat_encoder_forward.16
= control target key start
LH: loop header
LB: loop body
LE: loop exit
PB: predicated region body
PF: predicated region fallthrough
CT: control target
= control target key end

     0   :  { %s364_s1 = inlined_call_operand.vmem [shape: f32[256,128], index: 1, kind: input, shape index: {}]   ;;  %s365_s2 = inlined_call_operand.vmem [shape: f32[1,128], index: 2, kind: input, shape index: {}]   ;;  %s366_s0 = inlined_call_operand.vmem [shape: f32[32,256], index: 0, kind: input, shape index: {}]   ;;  %s367_s3 = inlined_call_operand.vmem [shape: f32[1,128], index: 3, kind: input, shape index: {}]   ;;  %s368_s4 = inlined_call_operand.vmem [shape: f32[1,128], index: 4, kind: input, shape index: {}]   ;;  %s369_s5 = inlined_call_operand.vmem [shape: f32[32,128], index: 5, kind: input, shape index: {}]   ;;  %s370_s6 = inlined_call_operand.vmem [shape: f32[32,128], index: 6, kind: output, shape index: {}]  }
   0x1   :  { %v45_v0 = vld [vmem:[%s364_s1 + $0x70] sm:$0xff]  ;;  %v46_v1 = vld [vmem:[%s364_s1 + $0x78] sm:$0xff]  ;;  %v43_v5 = vld [vmem:[%s364_s1 + $0x60] sm:$0xff] }
   0x2   :  { %v61_v2 = vld [vmem:[%s364_s1 + $0xf0] sm:$0xff]  ;;  %v74_v3 = vpack.c.bf16 %v46_v1, %v45_v0  ;;  %v62_v4 = vld [vmem:[%s364_s1 + $0xf8] sm:$0xff]  ;;  %v44_v6 = vld [vmem:[%s364_s1 + $0x68] sm:$0xff] }
   0x3   :  { %v82_v7 = vpack.c.bf16 %v62_v4, %v61_v2  ;;  %v59_v8 = vld [vmem:[%s364_s1 + $0xe0] sm:$0xff]  ;;  %v60_v9 = vld [vmem:[%s364_s1 + $0xe8] sm:$0xff]  ;;  %v73_v10 = vpack.c.bf16 %v44_v6, %v43_v5  ;;  %v41_v12 = vld [vmem:[%s364_s1 + $0x50] sm:$0xff] }
   0x4   :  { %87 = vmatpush.bf16.msra.mxu0 %v74_v3  ;;  %157 = vmatpush.bf16.msra.mxu2 %v74_v3  ;;  %v81_v11 = vpack.c.bf16 %v60_v9, %v59_v8  ;;  %v42_v13 = vld [vmem:[%s364_s1 + $0x58] sm:$0xff]  ;;  %v57_v14 = vld [vmem:[%s364_s1 + $0xd0] sm:$0xff]  ;;  %v39_v18 = vld [vmem:[%s364_s1 + $0x40] sm:$0xff] }
   0x5   :  { %106 = vmatpush.bf16.msra.mxu1 %v82_v7  ;;  %165 = vmatpush.bf16.msra.mxu3 %v82_v7  ;;  %v58_v15 = vld [vmem:[%s364_s1 + $0xd8] sm:$0xff]  ;;  %v72_v16 = vpack.c.bf16 %v42_v13, %v41_v12  ;;  %v40_v19 = vld [vmem:[%s364_s1 + $0x48] sm:$0xff]  ;;  %v55_v20 = vld [vmem:[%s364_s1 + $0xc0] sm:$0xff] }
   0x6   :  { %v80_v17 = vpack.c.bf16 %v58_v15, %v57_v14  ;;  %v56_v21 = vld [vmem:[%s364_s1 + $0xc8] sm:$0xff]  ;;  %v71_v22 = vpack.c.bf16 %v40_v19, %v39_v18  ;;  %v37_v24 = vld [vmem:[%s364_s1 + $0x30] sm:$0xff]  ;;  %v38_v25 = vld [vmem:[%s364_s1 + $0x38] sm:$0xff] }
   0x7   :  { %v79_v23 = vpack.c.bf16 %v56_v21, %v55_v20  ;;  %v53_v26 = vld [vmem:[%s364_s1 + $0xb0] sm:$0xff]  ;;  %v54_v27 = vld [vmem:[%s364_s1 + $0xb8] sm:$0xff]  ;;  %v70_v28 = vpack.c.bf16 %v38_v25, %v37_v24  ;;  %v35_v30 = vld [vmem:[%s364_s1 + $0x20] sm:$0xff] }
   0x8   :  { %88 = vmatpush.bf16.msra.mxu0 %v73_v10  ;;  %158 = vmatpush.bf16.msra.mxu2 %v73_v10  ;;  %v78_v29 = vpack.c.bf16 %v54_v27, %v53_v26  ;;  %v36_v31 = vld [vmem:[%s364_s1 + $0x28] sm:$0xff]  ;;  %v51_v32 = vld [vmem:[%s364_s1 + $0xa0] sm:$0xff]  ;;  %v33_v36 = vld [vmem:[%s364_s1 + $0x10] sm:$0xff] }
   0x9   :  { %107 = vmatpush.bf16.msra.mxu1 %v81_v11  ;;  %166 = vmatpush.bf16.msra.mxu3 %v81_v11  ;;  %v52_v33 = vld [vmem:[%s364_s1 + $0xa8] sm:$0xff]  ;;  %v69_v34 = vpack.c.bf16 %v36_v31, %v35_v30  ;;  %v34_v37 = vld [vmem:[%s364_s1 + $0x18] sm:$0xff]  ;;  %v49_v38 = vld [vmem:[%s364_s1 + $0x90] sm:$0xff] }
   0xa   :  { %v77_v35 = vpack.c.bf16 %v52_v33, %v51_v32  ;;  %v50_v39 = vld [vmem:[%s364_s1 + $0x98] sm:$0xff]  ;;  %v68_v40 = vpack.c.bf16 %v34_v37, %v33_v36  ;;  %v31_v42 = vld [vmem:[%s364_s1] sm:$0xff]  ;;  %v32_v43 = vld [vmem:[%s364_s1 + $0x8] sm:$0xff] }
   0xb   :  { %v76_v41 = vpack.c.bf16 %v50_v39, %v49_v38  ;;  %v47_v44 = vld [vmem:[%s364_s1 + $0x80] sm:$0xff]  ;;  %v48_v45 = vld [vmem:[%s364_s1 + $0x88] sm:$0xff]  ;;  %v25_v47 = vld [vmem:[%s366_s0 + $0x10] sm:$0xff]  ;;  %v67_v48 = vpack.c.bf16 %v32_v43, %v31_v42 }
   0xc   :  { %89 = vmatpush.bf16.msra.mxu0 %v72_v16  ;;  %159 = vmatpush.bf16.msra.mxu2 %v72_v16  ;;  %v23_v46 = vld [vmem:[%s366_s0] sm:$0xff]  ;;  %v29_v50 = vld [vmem:[%s366_s0 + $0x30] sm:$0xff]  ;;  %v24_v51 = vld [vmem:[%s366_s0 + $0x8] sm:$0xff]  ;;  %v75_v52 = vpack.c.bf16 %v48_v45, %v47_v44 }
   0xd   :  { %108 = vmatpush.bf16.msra.mxu1 %v80_v17  ;;  %167 = vmatpush.bf16.msra.mxu3 %v80_v17  ;;  %v27_v49 = vld [vmem:[%s366_s0 + $0x20] sm:$0xff]  ;;  %v26_v53 = vld [vmem:[%s366_s0 + $0x18] sm:$0xff]  ;;  %v28_v54 = vld [vmem:[%s366_s0 + $0x28] sm:$0xff]  ;;  %v63_v56 = vpack.c.bf16 %v25_v47, %v23_v46 }
   0xe   :  { %v30_v55 = vld [vmem:[%s366_s0 + $0x38] sm:$0xff]  ;;  %v65_v57 = vpack.c.bf16 %v29_v50, %v27_v49  ;;  %v64_v58 = vpack.c.bf16 %v26_v53, %v24_v51  ;;  %v173_v60 = vld [vmem:[%s365_s2] ss:$0 sm:$0xff]  ;;  %v143_v16 = vld [vmem:[%s369_s5 + $0x10] sm:$0xff] }
   0xf   :  { %v66_v59 = vpack.c.bf16 %v30_v55, %v28_v54  ;;  %v174_v0 = vld [vmem:[%s367_s3] ss:$0 sm:$0xff]  ;;  %v142_v19 = vld [vmem:[%s369_s5 + $0x8] sm:$0xff] }
  0x10   :  { %90 = vmatpush.bf16.msra.mxu0 %v71_v22  ;;  %160 = vmatpush.bf16.msra.mxu2 %v71_v22  ;;  %v175_v2 = vld [vmem:[%s368_s4] ss:$0 sm:$0xff] }
  0x11   :  { %109 = vmatpush.bf16.msra.mxu1 %v79_v23  ;;  %168 = vmatpush.bf16.msra.mxu3 %v79_v23  ;;  %v141_v4 = vld [vmem:[%s369_s5] sm:$0xff] }
  0x14   :  { %91 = vmatpush.bf16.msra.mxu0 %v70_v28  ;;  %161 = vmatpush.bf16.msra.mxu2 %v70_v28  ;;  %v144_v28 = vld [vmem:[%s369_s5 + $0x18] sm:$0xff] }
  0x15   :  { %110 = vmatpush.bf16.msra.mxu1 %v78_v29  ;;  %169 = vmatpush.bf16.msra.mxu3 %v78_v29 }
  0x18   :  { %92 = vmatpush.bf16.msra.mxu0 %v69_v34  ;;  %162 = vmatpush.bf16.msra.mxu2 %v69_v34 }
  0x19   :  { %111 = vmatpush.bf16.msra.mxu1 %v77_v35  ;;  %170 = vmatpush.bf16.msra.mxu3 %v77_v35 }
  0x1c   :  { %93 = vmatpush.bf16.msra.mxu0 %v68_v40  ;;  %163 = vmatpush.bf16.msra.mxu2 %v68_v40 }
  0x1d   :  { %112 = vmatpush.bf16.msra.mxu1 %v76_v41  ;;  %171 = vmatpush.bf16.msra.mxu3 %v76_v41 }
  0x20   :  { %94 = vmatpush.bf16.msra.mxu0 %v67_v48  ;;  %164 = vmatpush.bf16.msra.mxu2 %v67_v48 }
  0x21   :  { %113 = vmatpush.bf16.msra.mxu1 %v75_v52  ;;  %172 = vmatpush.bf16.msra.mxu3 %v75_v52 }
  0x23   :  { %95 = vmatmul.bf16.vlgmr.msra.gmra.mxu0 %v63_v56  ;;  %100 = vmatmul.bf16.vlgmr.msra.gmra.mxu2 %v65_v57 }
  0x24   :  { %114 = vmatmul.bf16.vlgmr.msra.gmra.mxu1 %v64_v58  ;;  %119 = vmatmul.bf16.vlgmr.msra.gmra.mxu3 %v66_v59 }
  0xa0   :  { %v96_v61 = vpop.f32.mrf.mxu0 }
  0xa1   :  { %v97_v62 = vadd.f32 %v173_v60, %v96_v61  ;;  %v115_v63 = vpop.f32.mrf.mxu1 }
  0xa3   :  { %v116_v1 = vadd.f32 %v115_v63, %v97_v62 }
  0xa5   :  { %v129_v3 = vmul.f32 %v174_v0, %v116_v1 }
  0xa6   :  { %v101_v5 = vpop.f32.mrf.mxu2 }
  0xa7   :  { %v137_v6 = vadd.f32 %v175_v2, %v129_v3  ;;  %v102_v7 = vadd.f32 %v173_v60, %v101_v5  ;;  %v120_v8 = vpop.f32.mrf.mxu3 }
  0xa8   :  { %v98_v9 = vpop.f32.mrf.mxu0 }
  0xa9   :  { %v145_v10 = vadd.f32 %v141_v4, %v137_v6  ;;  %v121_v11 = vadd.f32 %v120_v8, %v102_v7  ;;  %v99_v12 = vadd.f32 %v173_v60, %v98_v9  ;;  %v117_v13 = vpop.f32.mrf.mxu1 }
  0xab   :  { %149 = vst [vmem:[%s370_s6] sm:$0xff] %v145_v10  ;;  %v131_v14 = vmul.f32 %v174_v0, %v121_v11  ;;  %v118_v15 = vadd.f32 %v117_v13, %v99_v12 }
  0xad   :  { %v139_v17 = vadd.f32 %v175_v2, %v131_v14  ;;  %v130_v18 = vmul.f32 %v174_v0, %v118_v15 }
  0xae   :  { %v103_v20 = vpop.f32.mrf.mxu2 }
  0xaf   :  { %v147_v21 = vadd.f32 %v143_v16, %v139_v17  ;;  %v138_v22 = vadd.f32 %v175_v2, %v130_v18  ;;  %v104_v23 = vadd.f32 %v173_v60, %v103_v20  ;;  %v122_v24 = vpop.f32.mrf.mxu3 }
  0xb1   :  { %151 = vst [vmem:[%s370_s6 + $0x10] sm:$0xff] %v147_v21  ;;  %v146_v25 = vadd.f32 %v142_v19, %v138_v22  ;;  %v123_v26 = vadd.f32 %v122_v24, %v104_v23 }
  0xb3   :  { %150 = vst [vmem:[%s370_s6 + $0x8] sm:$0xff] %v146_v25  ;;  %v132_v27 = vmul.f32 %v174_v0, %v123_v26 }
  0xb5   :  { %v140_v29 = vadd.f32 %v175_v2, %v132_v27 }
  0xb7   :  { %v148_v30 = vadd.f32 %v144_v28, %v140_v29 }
  0xb9   :  { %152 = vst [vmem:[%s370_s6 + $0x18] sm:$0xff] %v148_v30 }

// kernel: cat_encoder_forward.17
= control target key start
LH: loop header
LB: loop body
LE: loop exit
PB: predicated region body
PF: predicated region fallthrough
CT: control target
= control target key end

     0   :  { %v40_v52 = vlaneseq  ;;  %v323_v53 = vmov 2.0   ;;  %v324_v61 = vmov 0.0   ;;  %s619_s1 = inlined_call_operand.vmem [shape: f32[256,128], index: 1, kind: input, shape index: {}]   ;;  %s620_s2 = inlined_call_operand.vmem [shape: f32[1,128], index: 2, kind: input, shape index: {}]   ;;  %s621_s0 = inlined_call_operand.vmem [shape: f32[8,256], index: 0, kind: input, shape index: {}]   ;;  %s622_s3 = inlined_call_operand.vmem [shape: f32[1,128], index: 3, kind: input, shape index: {}]   ;;  %s623_s4 = inlined_call_operand.vmem [shape: f32[1,128], index: 4, kind: input, shape index: {}]   ;;  %s624_s6 = inlined_call_operand.vmem [shape: f32[1,128], index: 6, kind: input, shape index: {}]   ;;  %s625_s7 = inlined_call_operand.vmem [shape: f32[1,128], index: 7, kind: input, shape index: {}]   ;;  %s626_s5 = inlined_call_operand.vmem [shape: f32[128,128], index: 5, kind: input, shape index: {}]   ;;  %s627_s8 = inlined_call_operand.vmem [shape: f32[1,128], index: 8, kind: input, shape index: {}]   ;;  %s628_s10 = inlined_call_operand.vmem [shape: f32[1,128], index: 10, kind: input, shape index: {}]   ;;  %s629_s9 = inlined_call_operand.vmem [shape: f32[128,128], index: 9, kind: input, shape index: {}]   ;;  %s630_s11 = inlined_call_operand.vmem [shape: f32[8,128], index: 11, kind: output, shape index: {}]  }
   0x1   :  { %v59_v0 = vld [vmem:[%s619_s1 + $0x70] sm:$0xff]  ;;  %v60_v1 = vld [vmem:[%s619_s1 + $0x78] sm:$0xff]  ;;  %v57_v5 = vld [vmem:[%s619_s1 + $0x60] sm:$0xff]  ;;  %317 = vrcp.f32 %v323_v53 }
   0x2   :  { %v75_v2 = vld [vmem:[%s619_s1 + $0xf0] sm:$0xff]  ;;  %v87_v3 = vpack.c.bf16 %v60_v1, %v59_v0  ;;  %v76_v4 = vld [vmem:[%s619_s1 + $0xf8] sm:$0xff]  ;;  %v58_v6 = vld [vmem:[%s619_s1 + $0x68] sm:$0xff]  ;;  %v41_v54 = vshrl.u32 %v40_v52, 7 }
   0x3   :  { %v95_v7 = vpack.c.bf16 %v76_v4, %v75_v2  ;;  %v73_v8 = vld [vmem:[%s619_s1 + $0xe0] sm:$0xff]  ;;  %v74_v9 = vld [vmem:[%s619_s1 + $0xe8] sm:$0xff]  ;;  %v86_v10 = vpack.c.bf16 %v58_v6, %v57_v5  ;;  %v55_v12 = vld [vmem:[%s619_s1 + $0x50] sm:$0xff] }
   0x4   :  { %99 = vmatpush.bf16.msra.mxu0 %v87_v3  ;;  %v94_v11 = vpack.c.bf16 %v74_v9, %v73_v8  ;;  %v56_v13 = vld [vmem:[%s619_s1 + $0x58] sm:$0xff]  ;;  %v71_v14 = vld [vmem:[%s619_s1 + $0xd0] sm:$0xff]  ;;  %v53_v18 = vld [vmem:[%s619_s1 + $0x40] sm:$0xff]  ;;  %vm42_vm0 = vcmp.lt.s32.totalorder %v41_v54, 2 }
   0x5   :  { %112 = vmatpush.bf16.msra.mxu1 %v95_v7  ;;  %v72_v15 = vld [vmem:[%s619_s1 + $0xd8] sm:$0xff]  ;;  %v85_v16 = vpack.c.bf16 %v56_v13, %v55_v12  ;;  %v54_v19 = vld [vmem:[%s619_s1 + $0x48] sm:$0xff]  ;;  %v69_v20 = vld [vmem:[%s619_s1 + $0xc0] sm:$0xff]  ;;  %v490_v62 = vsel %vm42_vm0, 1.0, %v324_v61 }
   0x6   :  { %v93_v17 = vpack.c.bf16 %v72_v15, %v71_v14  ;;  %v70_v21 = vld [vmem:[%s619_s1 + $0xc8] sm:$0xff]  ;;  %v84_v22 = vpack.c.bf16 %v54_v19, %v53_v18  ;;  %v51_v24 = vld [vmem:[%s619_s1 + $0x30] sm:$0xff]  ;;  %v52_v25 = vld [vmem:[%s619_s1 + $0x38] sm:$0xff] }
   0x7   :  { %v92_v23 = vpack.c.bf16 %v70_v21, %v69_v20  ;;  %v67_v26 = vld [vmem:[%s619_s1 + $0xb0] sm:$0xff]  ;;  %v68_v27 = vld [vmem:[%s619_s1 + $0xb8] sm:$0xff]  ;;  %v83_v28 = vpack.c.bf16 %v52_v25, %v51_v24  ;;  %v49_v30 = vld [vmem:[%s619_s1 + $0x20] sm:$0xff]  ;;  %v318_v55 = vpop.eup %317 }
   0x8   :  { %100 = vmatpush.bf16.msra.mxu0 %v86_v10  ;;  %v91_v29 = vpack.c.bf16 %v68_v27, %v67_v26  ;;  %v50_v31 = vld [vmem:[%s619_s1 + $0x28] sm:$0xff]  ;;  %v65_v32 = vld [vmem:[%s619_s1 + $0xa0] sm:$0xff]  ;;  %v47_v36 = vld [vmem:[%s619_s1 + $0x10] sm:$0xff]  ;;  %v135_v58 = vmul.f32 2.0, %v318_v55  ;;  %vm139_vm1 = vweird.f32 %v318_v55 }
   0x9   :  { %113 = vmatpush.bf16.msra.mxu1 %v94_v11  ;;  %v66_v33 = vld [vmem:[%s619_s1 + $0xa8] sm:$0xff]  ;;  %v82_v34 = vpack.c.bf16 %v50_v31, %v49_v30  ;;  %v48_v37 = vld [vmem:[%s619_s1 + $0x18] sm:$0xff]  ;;  %v63_v38 = vld [vmem:[%s619_s1 + $0x90] sm:$0xff] }
   0xa   :  { %v90_v35 = vpack.c.bf16 %v66_v33, %v65_v32  ;;  %v64_v39 = vld [vmem:[%s619_s1 + $0x98] sm:$0xff]  ;;  %v81_v40 = vpack.c.bf16 %v48_v37, %v47_v36  ;;  %v45_v42 = vld [vmem:[%s619_s1] sm:$0xff]  ;;  %v46_v43 = vld [vmem:[%s619_s1 + $0x8] sm:$0xff]  ;;  %v136_v0 = vsub.f32 1.0, %v135_v58 }
   0xb   :  { %v89_v41 = vpack.c.bf16 %v64_v39, %v63_v38  ;;  %v61_v44 = vld [vmem:[%s619_s1 + $0x80] sm:$0xff]  ;;  %v62_v45 = vld [vmem:[%s619_s1 + $0x88] sm:$0xff]  ;;  %v80_v46 = vpack.c.bf16 %v46_v43, %v45_v42  ;;  %v189_v3 = vld [vmem:[%s626_s5 + $0x70] sm:$0xff] }
   0xc   :  { %101 = vmatpush.bf16.msra.mxu0 %v85_v16  ;;  %v38_v47 = vld [vmem:[%s621_s0] sm:$0xff]  ;;  %v88_v48 = vpack.c.bf16 %v62_v45, %v61_v44  ;;  %v39_v49 = vld [vmem:[%s621_s0 + $0x8] sm:$0xff]  ;;  %v190_v4 = vld [vmem:[%s626_s5 + $0x78] sm:$0xff]  ;;  %v137_v5 = vmul.f32 %v318_v55, %v136_v0 }
   0xd   :  { %114 = vmatpush.bf16.msra.mxu1 %v93_v17  ;;  %v78_v50 = vpack.c.bf16 %v38_v47, %v38_v47  ;;  %v79_v51 = vpack.c.bf16 %v39_v49, %v39_v49  ;;  %v310_v56 = vld [vmem:[%s620_s2] ss:$0 sm:$0xff]  ;;  %v200_v7 = vpack.c.bf16 %v190_v4, %v189_v3  ;;  %v188_v12 = vld [vmem:[%s626_s5 + $0x68] sm:$0xff]  ;;  %v185_v17 = vld [vmem:[%s626_s5 + $0x50] sm:$0xff] }
   0xe   :  { %v187_v11 = vld [vmem:[%s626_s5 + $0x60] sm:$0xff]  ;;  %v138_v13 = vadd.f32 %v318_v55, %v137_v5  ;;  %v186_v18 = vld [vmem:[%s626_s5 + $0x58] sm:$0xff]  ;;  %v184_v24 = vld [vmem:[%s626_s5 + $0x48] sm:$0xff] }
   0xf   :  { %204 = vmatpush.bf16.msra.mxu2 %v200_v7  ;;  %v199_v14 = vpack.c.bf16 %v188_v12, %v187_v11  ;;  %v198_v20 = vpack.c.bf16 %v186_v18, %v185_v17  ;;  %v179_v33 = vld [vmem:[%s626_s5 + $0x20] sm:$0xff]  ;;  %v177_v38 = vld [vmem:[%s626_s5 + $0x10] sm:$0xff]  ;;  %v178_v39 = vld [vmem:[%s626_s5 + $0x18] sm:$0xff] }
  0x10   :  { %102 = vmatpush.bf16.msra.mxu0 %v84_v22  ;;  %v511_v19 = vsel %vm139_vm1, %v318_v55, %v138_v13  ;;  %v176_v42 = vld [vmem:[%s626_s5 + $0x8] sm:$0xff]  ;;  %v311_v55 = vld [vmem:[%s622_s3] ss:$0 sm:$0xff]  ;;  %v275_v7 = vld [vmem:[%s629_s9 + $0x78] sm:$0xff] }
  0x11   :  { %115 = vmatpush.bf16.msra.mxu1 %v92_v23  ;;  %v183_v23 = vld [vmem:[%s626_s5 + $0x40] sm:$0xff]  ;;  %v273_v13 = vld [vmem:[%s629_s9 + $0x68] sm:$0xff]  ;;  %v270_v17 = vld [vmem:[%s629_s9 + $0x50] sm:$0xff] }
  0x12   :  { %v197_v25 = vpack.c.bf16 %v184_v24, %v183_v23  ;;  %v312_v58 = vld [vmem:[%s623_s4] ss:$0 sm:$0xff]  ;;  %v271_v18 = vld [vmem:[%s629_s9 + $0x58] sm:$0xff]  ;;  %v269_v24 = vld [vmem:[%s629_s9 + $0x48] sm:$0xff] }
  0x13   :  { %205 = vmatpush.bf16.msra.mxu2 %v199_v14  ;;  %v272_v12 = vld [vmem:[%s629_s9 + $0x60] sm:$0xff] }
  0x14   :  { %103 = vmatpush.bf16.msra.mxu0 %v83_v28  ;;  %v181_v28 = vld [vmem:[%s626_s5 + $0x30] sm:$0xff]  ;;  %v284_v14 = vpack.c.bf16 %v273_v13, %v272_v12  ;;  %v268_v23 = vld [vmem:[%s629_s9 + $0x40] sm:$0xff] }
  0x15   :  { %116 = vmatpush.bf16.msra.mxu1 %v91_v29  ;;  %v182_v29 = vld [vmem:[%s626_s5 + $0x38] sm:$0xff] }
  0x16   :  { %v196_v30 = vpack.c.bf16 %v182_v29, %v181_v28  ;;  %v266_v28 = vld [vmem:[%s629_s9 + $0x30] sm:$0xff]  ;;  %v267_v29 = vld [vmem:[%s629_s9 + $0x38] sm:$0xff] }
  0x17   :  { %206 = vmatpush.bf16.msra.mxu2 %v198_v20  ;;  %v283_v20 = vpack.c.bf16 %v271_v18, %v270_v17 }
  0x18   :  { %104 = vmatpush.bf16.msra.mxu0 %v82_v34  ;;  %v180_v34 = vld [vmem:[%s626_s5 + $0x28] sm:$0xff] }
  0x19   :  { %117 = vmatpush.bf16.msra.mxu1 %v90_v35  ;;  %v195_v35 = vpack.c.bf16 %v180_v34, %v179_v33  ;;  %v264_v33 = vld [vmem:[%s629_s9 + $0x20] sm:$0xff]  ;;  %v265_v34 = vld [vmem:[%s629_s9 + $0x28] sm:$0xff] }
  0x1b   :  { %207 = vmatpush.bf16.msra.mxu2 %v197_v25  ;;  %v282_v25 = vpack.c.bf16 %v269_v24, %v268_v23 }
  0x1c   :  { %105 = vmatpush.bf16.msra.mxu0 %v81_v40  ;;  %v175_v40 = vld [vmem:[%s626_s5] sm:$0xff] }
  0x1d   :  { %118 = vmatpush.bf16.msra.mxu1 %v89_v41  ;;  %v194_v41 = vpack.c.bf16 %v178_v39, %v177_v38  ;;  %v193_v44 = vpack.c.bf16 %v176_v42, %v175_v40  ;;  %v262_v38 = vld [vmem:[%s629_s9 + $0x10] sm:$0xff]  ;;  %v260_v39 = vld [vmem:[%s629_s9] sm:$0xff] }
  0x1f   :  { %208 = vmatpush.bf16.msra.mxu2 %v196_v30  ;;  %v281_v30 = vpack.c.bf16 %v267_v29, %v266_v28 }
  0x20   :  { %106 = vmatpush.bf16.msra.mxu0 %v80_v46 }
  0x21   :  { %119 = vmatpush.bf16.msra.mxu1 %v88_v48 }
  0x23   :  { %107 = vmatmul.bf16.vlgmr.msra.gmra.mxu0 %v78_v50  ;;  %209 = vmatpush.bf16.msra.mxu2 %v195_v35  ;;  %v280_v35 = vpack.c.bf16 %v265_v34, %v264_v33 }
  0x24   :  { %120 = vmatmul.bf16.vlgmr.msra.gmra.mxu1 %v79_v51 }
  0x27   :  { %210 = vmatpush.bf16.msra.mxu2 %v194_v41  ;;  %v261_v41 = vld [vmem:[%s629_s9 + $0x8] sm:$0xff] }
  0x2b   :  { %211 = vmatpush.bf16.msra.mxu2 %v193_v44 }
  0xa0   :  { %v108_v57 = vpop.f32.mrf.mxu0 }
  0xa1   :  { %v109_v59 = vadd.f32 %v310_v56, %v108_v57  ;;  %v121_v60 = vpop.f32.mrf.mxu1 }
  0xa3   :  { %v122_v63 = vadd.f32 %v121_v60, %v109_v59 }
  0xa5   :  { %v127_v1 = vmul.f32 %v490_v62, %v122_v63 }
  0xa7   :  { %v128_v2 = vrot.slane %v127_v1, 4 }
  0xa8   :  { %v110_v6 = vpop.f32.mrf.mxu0 }
  0xa9   :  { %v129_v8 = vadd.f32 %v128_v2, %v127_v1  ;;  %v123_v9 = vpop.f32.mrf.mxu1  ;;  %v313_v1 = vld [vmem:[%s624_s6] ss:$0 sm:$0xff]  ;;  %v274_v6 = vld [vmem:[%s629_s9 + $0x70] sm:$0xff] }
  0xab   :  { %v130_v10 = vrot.slane %v129_v8, 2 }
  0xad   :  { %v131_v15 = vadd.f32 %v130_v10, %v129_v8  ;;  %v285_v8 = vpack.c.bf16 %v275_v7, %v274_v6 }
  0xaf   :  { %v132_v16 = vrot.slane %v131_v15, 1  ;;  %289 = vmatpush.bf16.msra.mxu3 %v285_v8 }
  0xb1   :  { %v133_v21 = vadd.f32 %v132_v16, %v131_v15 }
  0xb3   :  { %v141_v22 = vmul.f32 %v511_v19, %v133_v21  ;;  %290 = vmatpush.bf16.msra.mxu3 %v284_v14 }
  0xb5   :  { %v142_v26 = vsub.f32 %v122_v63, %v141_v22 }
  0xb7   :  { %v143_v27 = vmul.f32 %v142_v26, %v142_v26  ;;  %291 = vmatpush.bf16.msra.mxu3 %v283_v20 }
  0xb9   :  { %v144_v31 = vmul.f32 %v490_v62, %v143_v27 }
  0xbb   :  { %v145_v32 = vrot.slane %v144_v31, 4  ;;  %292 = vmatpush.bf16.msra.mxu3 %v282_v25 }
  0xbd   :  { %v146_v36 = vadd.f32 %v145_v32, %v144_v31 }
  0xbf   :  { %v147_v37 = vrot.slane %v146_v36, 2  ;;  %293 = vmatpush.bf16.msra.mxu3 %v281_v30 }
  0xc1   :  { %v148_v43 = vadd.f32 %v147_v37, %v146_v36 }
  0xc3   :  { %v149_v45 = vrot.slane %v148_v43, 1  ;;  %294 = vmatpush.bf16.msra.mxu3 %v280_v35 }
  0xc5   :  { %v150_v46 = vadd.f32 %v149_v45, %v148_v43  ;;  %v278_v43 = vpack.c.bf16 %v261_v41, %v260_v39 }
  0xc7   :  { %v151_v47 = vmul.f32 %v150_v46, %v511_v19 }
  0xc9   :  { %v152_v48 = vadd.f32 1e-05, %v151_v47 }
  0xcb   :  { %319 = vrsqrt.f32 %v152_v48  ;;  %vm159_vm3 = vweird.f32 %v152_v48 }
  0xd1   :  { %v320_v49 = vpop.eup %319 }
  0xd2   :  { %v154_v50 = vmul.f32 %v320_v49, %v152_v48  ;;  %vm160_vm2 = vweird.f32 %v320_v49 }
  0xd3   :  { %vm161_vm4 = vmor %vm159_vm3, %vm160_vm2 }
  0xd4   :  { %v155_v51 = vmul.f32 %v320_v49, %v154_v50 }
  0xd6   :  { %v156_v52 = vmul.f32 0.5, %v155_v51 }
  0xd8   :  { %v157_v53 = vsub.f32 1.5, %v156_v52 }
  0xda   :  { %v158_v54 = vmul.f32 %v320_v49, %v157_v53 }
  0xdc   :  { %v162_v56 = vsel %vm161_vm4, %v320_v49, %v158_v54  ;;  %v314_v54 = vld [vmem:[%s625_s7] ss:$0 sm:$0xff] }
  0xdd   :  { %v163_v57 = vmul.f32 %v162_v56, %v142_v26 }
  0xdf   :  { %v167_v59 = vmul.f32 %v311_v55, %v163_v57 }
  0xe1   :  { %v171_v60 = vadd.f32 %v312_v58, %v167_v59 }
  0xe3   :  { %vm172_vm5 = vcmp.ge.f32.partialorder %v171_v60, 0.0  ;;  %v173_v61 = vmul.f32 0.2, %v171_v60 }
  0xe5   :  { %v174_v63 = vsel %vm172_vm5, %v171_v60, %v173_v61 }
  0xe6   :  { %v192_v0 = vpack.c.bf16 %v174_v63, %v174_v63  ;;  %v316_v63 = vld [vmem:[%s628_s10] ss:$0 sm:$0xff] }
  0xe8   :  { %212 = vmatmul.bf16.vlgmr.msra.gmra.mxu2 %v192_v0 }
 0x16b   :  { %v213_v2 = vpop.f32.mrf.mxu2 }
 0x16c   :  { %v214_v3 = vadd.f32 %v313_v1, %v213_v2 }
 0x16e   :  { %v219_v4 = vmul.f32 %v490_v62, %v214_v3 }
 0x170   :  { %v220_v5 = vrot.slane %v219_v4, 4 }
 0x172   :  { %v221_v9 = vadd.f32 %v220_v5, %v219_v4 }
 0x173   :  { %v215_v10 = vpop.f32.mrf.mxu2 }
 0x174   :  { %v222_v11 = vrot.slane %v221_v9, 2 }
 0x176   :  { %v223_v15 = vadd.f32 %v222_v11, %v221_v9 }
 0x178   :  { %v224_v16 = vrot.slane %v223_v15, 1 }
 0x17a   :  { %v225_v21 = vadd.f32 %v224_v16, %v223_v15 }
 0x17c   :  { %v226_v22 = vmul.f32 %v225_v21, %v511_v19 }
 0x17e   :  { %v227_v26 = vsub.f32 %v214_v3, %v226_v22 }
 0x180   :  { %v228_v27 = vmul.f32 %v227_v26, %v227_v26 }
 0x182   :  { %v229_v31 = vmul.f32 %v490_v62, %v228_v27  ;;  %v263_v62 = vld [vmem:[%s629_s9 + $0x18] sm:$0xff] }
 0x183   :  { %v279_v40 = vpack.c.bf16 %v263_v62, %v262_v38 }
 0x184   :  { %v230_v32 = vrot.slane %v229_v31, 4 }
 0x185   :  { %295 = vmatpush.bf16.msra.mxu3 %v279_v40 }
 0x186   :  { %v231_v36 = vadd.f32 %v230_v32, %v229_v31 }
 0x188   :  { %v232_v37 = vrot.slane %v231_v36, 2 }
 0x189   :  { %296 = vmatpush.bf16.msra.mxu3 %v278_v43 }
 0x18a   :  { %v233_v42 = vadd.f32 %v232_v37, %v231_v36 }
 0x18c   :  { %v234_v44 = vrot.slane %v233_v42, 1 }
 0x18e   :  { %v235_v45 = vadd.f32 %v234_v44, %v233_v42 }
 0x190   :  { %v236_v46 = vmul.f32 %v235_v45, %v511_v19  ;;  %v315_v19 = vld [vmem:[%s627_s8] ss:$0 sm:$0xff] }
 0x192   :  { %v237_v47 = vadd.f32 1e-05, %v236_v46 }
 0x194   :  { %321 = vrsqrt.f32 %v237_v47  ;;  %vm244_vm7 = vweird.f32 %v237_v47 }
 0x19a   :  { %v322_v48 = vpop.eup %321 }
 0x19b   :  { %v239_v49 = vmul.f32 %v322_v48, %v237_v47  ;;  %vm245_vm6 = vweird.f32 %v322_v48 }
 0x19c   :  { %vm246_vm8 = vmor %vm244_vm7, %vm245_vm6 }
 0x19d   :  { %v240_v50 = vmul.f32 %v322_v48, %v239_v49 }
 0x19f   :  { %v241_v51 = vmul.f32 0.5, %v240_v50 }
 0x1a1   :  { %v242_v52 = vsub.f32 1.5, %v241_v51 }
 0x1a3   :  { %v243_v53 = vmul.f32 %v322_v48, %v242_v52 }
 0x1a5   :  { %v247_v55 = vsel %vm246_vm8, %v322_v48, %v243_v53 }
 0x1a6   :  { %v248_v56 = vmul.f32 %v247_v55, %v227_v26 }
 0x1a8   :  { %v252_v57 = vmul.f32 %v314_v54, %v248_v56 }
 0x1aa   :  { %v256_v58 = vadd.f32 %v315_v19, %v252_v57 }
 0x1ac   :  { %vm257_vm9 = vcmp.ge.f32.partialorder %v256_v58, 0.0  ;;  %v258_v59 = vmul.f32 0.2, %v256_v58 }
 0x1ae   :  { %v259_v60 = vsel %vm257_vm9, %v256_v58, %v258_v59 }
 0x1af   :  { %v277_v61 = vpack.c.bf16 %v259_v60, %v259_v60 }
 0x1b1   :  { %297 = vmatmul.bf16.vlgmr.msra.gmra.mxu3 %v277_v61 }
 0x234   :  { %v298_v0 = vpop.f32.mrf.mxu3 }
 0x235   :  { %v299_v1 = vadd.f32 %v316_v63, %v298_v0 }
 0x237   :  { %302 = vst [vmem:[%s630_s11] sm:$0xff] %v299_v1 }
 0x23c   :  { %v300_v2 = vpop.f32.mrf.mxu3 }

</bundles_post_ra>
